<compile_context>
chip_gen: v5e
topology: v5e:2x2
jax: 0.10.0
libtpu: 0.0.40
codegen_flags: <defaults>
</compile_context>

<pallas_src>
import functools

import jax
import jax.numpy as jnp
from jax.experimental import pallas as pl
from jax.experimental.pallas import tpu as pltpu

EPS = 1e-5
LANE = 128


# --------------------------------------------------------------------------- helpers
def _round_up(x, m):
    return (x + m - 1) // m * m


def _pad_to(a, shape):
    return jnp.pad(a, [(0, t - s) for s, t in zip(a.shape, shape)])


def _vmem_limit():
    """Generation-aware VMEM limit: 3/4 of the chip's capacity
    (96 MiB on v5e/v6e's 128 MiB, 48 MiB on v7x's 64 MiB)."""
    try:
        cap = int(pltpu.get_tpu_info().vmem_capacity_bytes)
    except Exception:  # conservative fallback if the HW query is unavailable
        cap = 64 * 1024 * 1024
    return max(32 * 1024 * 1024, cap * 3 // 4)


def _stage2_step_bytes(th, w, pp):
    """Rough per-grid-step VMEM footprint of the 3x3 stage (the largest stage)."""
    act = (th + 2) * w * pp * 2          # bf16 extended activation strip
    shifts = 2 * (th + 2) * w * pp * 2   # bf16 left/right column shifts
    lhs = th * w * 3 * pp * 2            # one per-row-tap im2col slab (bf16)
    acc = th * w * pp * 4                # f32 accumulator
    io = 2 * 2 * th * w * pp * 2         # double-buffered input + output tiles
    w2 = 9 * pp * pp * 2                 # 3x3 weights (single-buffered when supported)
    return act + shifts + lhs + acc + io + w2


def _pick_tile_h(n, h, w, pp, vmem_budget):
    """Largest row-tile (divisor of H) whose stage-2 footprint fits the VMEM budget;
    keep >= 2 grid steps when N == 1 so both v7x TensorCores stay busy."""
    divisors = [d for d in range(1, h + 1) if h % d == 0]
    fits = [d for d in divisors if _stage2_step_bytes(d, w, pp) <= vmem_budget]
    if not fits:
        fits = [1]
    if n == 1:
        multi = [d for d in fits if h // d >= 2]
        if multi:
            return max(multi)
    return max(fits)


@functools.lru_cache(maxsize=1)
def _single_buffer_ok():
    """Probe once whether pipeline_mode=pl.Buffered(1) (single-buffered constant
    operands) compiles and runs; fall back to default double buffering otherwise."""
    try:
        with jax.ensure_compile_time_eval():
            spec = pl.BlockSpec((8, 128), lambda i: (0, 0),
                                pipeline_mode=pl.Buffered(1))

            def _k(x_ref, o_ref):
                o_ref[...] = x_ref[...] + 1.0

            fn = pl.pallas_call(
                _k,
                grid=(2,),
                in_specs=[spec],
                out_specs=pl.BlockSpec((8, 128), lambda i: (0, 0)),
                out_shape=jax.ShapeDtypeStruct((8, 128), jnp.float32),
            )
            jax.block_until_ready(fn(jnp.zeros((8, 128), jnp.float32)))
        return True
    except Exception:
        return False


def _full_spec(a):
    """Whole-array operand (weights / folded BN scale+shift): constant block index;
    single-buffer it when supported to free VMEM for bigger activation tiles."""
    imap = lambda n, h: (0,) * a.ndim
    if _single_buffer_ok():
        return pl.BlockSpec(a.shape, imap, pipeline_mode=pl.Buffered(1))
    return pl.BlockSpec(a.shape, imap)


# --------------------------------------------------------------------------- kernels
def _write_stats(st_ref, h_f32):
    """Per-tile single-pass partial BN stats.  Sublane-padded to 8 rows so the store
    is an unmasked full-tile vst (row 0 = sum, row 1 = sum of squares)."""
    ch = h_f32.shape[-1]
    s = jnp.sum(h_f32, axis=0, keepdims=True)
    ss = jnp.sum(h_f32 * h_f32, axis=0, keepdims=True)
    pad = jnp.zeros((6, ch), jnp.float32)
    st_ref[...] = jnp.concatenate([s, ss, pad], axis=0).reshape(1, 1, 8, ch)


def _conv1_kernel(x_ref, w1_ref, h1_ref, st_ref):
    """1x1 conv (bf16 MXU operands, f32 accumulate) + partial BN stats."""
    _, TH, W, Cp = x_ref.shape
    Pp = w1_ref.shape[1]
    xf = x_ref[...].reshape(TH * W, Cp)                       # already bf16
    h = jnp.dot(xf, w1_ref[...], preferred_element_type=jnp.float32)
    h1_ref[...] = h.reshape(1, TH, W, Pp).astype(h1_ref.dtype)
    _write_stats(st_ref, h)


def _conv2_matmuls(a_ext, w2_ref, TH, W, Pp):
    """3x3 conv (stride 1, pad 1) on a zero/halo-extended (TH+2, W, Pp) bf16 strip,
    as three accumulating MXU matmuls (one per row tap, K = 3*Pp each) instead of a
    single 9*Pp-wide im2col slab (cuts VMEM temporaries ~3x)."""
    zcol = jnp.zeros((TH + 2, 1, Pp), jnp.bfloat16)
    ext_l = jnp.concatenate([zcol, a_ext[:, : W - 1, :]], axis=1)   # input at x-1
    ext_r = jnp.concatenate([a_ext[:, 1:, :], zcol], axis=1)        # input at x+1
    exts = (ext_l, a_ext, ext_r)                                    # dx = 0, 1, 2
    h2 = jnp.zeros((TH * W, Pp), jnp.float32)
    for dy in range(3):                                             # row taps dy = ky
        lhs = jnp.concatenate([e[dy:dy + TH] for e in exts],
                              axis=-1).reshape(TH * W, 3 * Pp)
        h2 = h2 + jnp.dot(lhs, w2_ref[3 * dy * Pp:(3 * dy + 3) * Pp, :],
                          preferred_element_type=jnp.float32)
    return h2


def _conv2_kernel_nohalo(h1_ref, sc1_ref, w2_ref, h2_ref, st_ref):
    """bn1 + relu + 3x3 conv when the row tile covers the whole image height
    (no halo inputs: the top/bottom rows are just zero padding)."""
    _, TH, W, Pp = h1_ref.shape
    scale, shift = sc1_ref[0], sc1_ref[1]
    a_mid = jnp.maximum(h1_ref[0].astype(jnp.float32) * scale + shift,
                        0.0).astype(jnp.bfloat16)
    zrow = jnp.zeros((1, W, Pp), jnp.bfloat16)
    a_ext = jnp.concatenate([zrow, a_mid, zrow], axis=0)
    h2 = _conv2_matmuls(a_ext, w2_ref, TH, W, Pp)
    h2_ref[...] = h2.reshape(1, TH, W, Pp).astype(h2_ref.dtype)
    _write_stats(st_ref, h2)


def _conv2_kernel_halo(h1_ref, top_ref, bot_ref, sc1_ref, w2_ref, h2_ref, st_ref):
    """Same as above with 1-row top/bottom halos (image split into several row tiles)."""
    _, TH, W, Pp = h1_ref.shape
    scale, shift = sc1_ref[0], sc1_ref[1]

    def act(v):  # folded BN (scale/shift from global stats) + ReLU, f32
        return jnp.maximum(v.astype(jnp.float32) * scale + shift, 0.0)

    ht = pl.program_id(1)
    top_keep = jnp.where(ht == 0, 0.0, 1.0)                        # zero pad at image top
    bot_keep = jnp.where(ht == pl.num_programs(1) - 1, 0.0, 1.0)   # ... and bottom
    a_top = (act(top_ref[0]) * top_keep).astype(jnp.bfloat16)      # (1,  W, Pp)
    a_bot = (act(bot_ref[0]) * bot_keep).astype(jnp.bfloat16)      # (1,  W, Pp)
    a_mid = act(h1_ref[0]).astype(jnp.bfloat16)                    # (TH, W, Pp)
    a_ext = jnp.concatenate([a_top, a_mid, a_bot], axis=0)
    h2 = _conv2_matmuls(a_ext, w2_ref, TH, W, Pp)
    h2_ref[...] = h2.reshape(1, TH, W, Pp).astype(h2_ref.dtype)
    _write_stats(st_ref, h2)


def _conv3_kernel(h2_ref, sc2_ref, w3_ref, h3_ref, st_ref):
    """bn2 + relu + 1x1 conv back to 4*planes channels."""
    _, TH, W, Pp = h2_ref.shape
    Cp = w3_ref.shape[1]
    a = jnp.maximum(h2_ref[...].astype(jnp.float32) * sc2_ref[0] + sc2_ref[1], 0.0)
    a = a.reshape(TH * W, Pp).astype(jnp.bfloat16)
    h3 = jnp.dot(a, w3_ref[...], preferred_element_type=jnp.float32)
    h3_ref[...] = h3.reshape(1, TH, W, Cp).astype(h3_ref.dtype)
    _write_stats(st_ref, h3)


def _residual_kernel(h3_ref, x_ref, sc3_ref, out_ref):
    """bn3 + identity residual + relu (bf16 residual read / bf16 store, f32 math)."""
    h = h3_ref[...].astype(jnp.float32) * sc3_ref[0] + sc3_ref[1]
    out_ref[...] = jnp.maximum(h + x_ref[...].astype(jnp.float32),
                               0.0).astype(out_ref.dtype)


# --------------------------------------------------------------------------- wrapper
def _fold_bn(stats, gamma, beta, count):
    """Per-tile (sum, sum_sq) partials -> per-channel (scale, shift): y = x*scale + shift."""
    s = jnp.sum(stats[:, :, 0, :], axis=(0, 1))
    ss = jnp.sum(stats[:, :, 1, :], axis=(0, 1))
    mean = s / count
    var = jnp.maximum(ss / count - mean * mean, 0.0)   # biased var; clamp cancellation
    scale = gamma * jax.lax.rsqrt(var + EPS)
    shift = beta - mean * scale
    return jnp.stack([scale, shift]).astype(jnp.float32)   # (2, ch)


def bottleneck_forward_nhwc(x, params, tile_h=None, out_dtype=jnp.bfloat16):
    """x: (N, H, W, C) with C == 4 * planes. Returns (N, H, W, C) in out_dtype."""
    N, H, W, C = x.shape
    P = params["w1"].shape[1]
    if C != 4 * P:
        raise ValueError("identity residual requires inplanes == 4 * planes")
    Cp, Pp = _round_up(C, LANE), _round_up(P, LANE)

    vmem_limit = _vmem_limit()
    TH = tile_h if tile_h is not None else _pick_tile_h(N, H, W, Pp, vmem_limit // 2)
    assert H % TH == 0
    num_h = H // TH
    grid = (N, num_h)
    cparams = pltpu.CompilerParams(
        dimension_semantics=("parallel", "parallel"),
        vmem_limit_bytes=vmem_limit,
    )
    cnt = jnp.float32(N * H * W)

    # bf16 on the HBM side everywhere: input, weights, intermediates, output.
    xp = _pad_to(x, (N, H, W, Cp)).astype(jnp.bfloat16)
    w1 = _pad_to(params["w1"], (Cp, Pp)).astype(jnp.bfloat16)
    w2 = _pad_to(params["w2"], (9, Pp, Pp)).reshape(9 * Pp, Pp).astype(jnp.bfloat16)
    w3 = _pad_to(params["w3"], (Pp, Cp)).astype(jnp.bfloat16)
    g1 = _pad_to(params["g1"].reshape(-1), (Pp,))
    b1 = _pad_to(params["b1"].reshape(-1), (Pp,))
    g2 = _pad_to(params["g2"].reshape(-1), (Pp,))
    b2 = _pad_to(params["b2"].reshape(-1), (Pp,))
    g3 = _pad_to(params["g3"].reshape(-1), (Cp,))
    b3 = _pad_to(params["b3"].reshape(-1), (Cp,))

    tile = lambda ch: pl.BlockSpec((1, TH, W, ch), lambda n, h: (n, h, 0, 0))
    stat = lambda ch: pl.BlockSpec((1, 1, 8, ch), lambda n, h: (n, h, 0, 0))

    # ---- stage 1: conv1 (1x1) ----------------------------------------------------
    h1, st1 = pl.pallas_call(
        _conv1_kernel,
        grid=grid,
        in_specs=[tile(Cp), _full_spec(w1)],
        out_specs=[tile(Pp), stat(Pp)],
        out_shape=[jax.ShapeDtypeStruct((N, H, W, Pp), jnp.bfloat16),
                   jax.ShapeDtypeStruct((N, num_h, 8, Pp), jnp.float32)],
        compiler_params=cparams,
    )(xp, w1)
    sc1 = _fold_bn(st1, g1, b1, cnt)

    # ---- stage 2: bn1 + relu + conv2 (3x3) -----------------------------------------
    h2_shapes = [jax.ShapeDtypeStruct((N, H, W, Pp), jnp.bfloat16),
                 jax.ShapeDtypeStruct((N, num_h, 8, Pp), jnp.float32)]
    if num_h == 1:
        h2, st2 = pl.pallas_call(
            _conv2_kernel_nohalo,
            grid=grid,
            in_specs=[tile(Pp), _full_spec(sc1), _full_spec(w2)],
            out_specs=[tile(Pp), stat(Pp)],
            out_shape=h2_shapes,
            compiler_params=cparams,
        )(h1, sc1, w2)
    else:
        halo_top = pl.BlockSpec((1, 1, W, Pp),
                                lambda n, h: (n, jnp.maximum(h * TH - 1, 0), 0, 0))
        halo_bot = pl.BlockSpec((1, 1, W, Pp),
                                lambda n, h: (n, jnp.minimum(h * TH + TH, H - 1), 0, 0))
        h2, st2 = pl.pallas_call(
            _conv2_kernel_halo,
            grid=grid,
            in_specs=[tile(Pp), halo_top, halo_bot, _full_spec(sc1), _full_spec(w2)],
            out_specs=[tile(Pp), stat(Pp)],
            out_shape=h2_shapes,
            compiler_params=cparams,
        )(h1, h1, h1, sc1, w2)
    sc2 = _fold_bn(st2, g2, b2, cnt)

    # ---- stage 3: bn2 + relu + conv3 (1x1) -----------------------------------------
    h3, st3 = pl.pallas_call(
        _conv3_kernel,
        grid=grid,
        in_specs=[tile(Pp), _full_spec(sc2), _full_spec(w3)],
        out_specs=[tile(Cp), stat(Cp)],
        out_shape=[jax.ShapeDtypeStruct((N, H, W, Cp), jnp.bfloat16),
                   jax.ShapeDtypeStruct((N, num_h, 8, Cp), jnp.float32)],
        compiler_params=cparams,
    )(h2, sc2, w3)
    sc3 = _fold_bn(st3, g3, b3, cnt)

    # ---- stage 4: bn3 + residual + relu --------------------------------------------
    out = pl.pallas_call(
        _residual_kernel,
        grid=grid,
        in_specs=[tile(Cp), tile(Cp), _full_spec(sc3)],
        out_specs=tile(Cp),
        out_shape=jax.ShapeDtypeStruct((N, H, W, Cp), out_dtype),
        compiler_params=cparams,
    )(h3, xp, sc3)

    return out if Cp == C else out[..., :C]


@jax.jit
def bottleneck_forward(x_nchw, params):
    # Thin PyTorch-layout adapter; a real NHWC network should call
    # bottleneck_forward_nhwc directly and skip both transposes (each is a full
    # extra HBM pass on a mem-bound block).
    x = jnp.transpose(x_nchw, (0, 2, 3, 1))
    out = bottleneck_forward_nhwc(x, params)
    return jnp.transpose(out, (0, 3, 1, 2))


# --------------------------------------------------------------------------- test setup
def init_params(key, inplanes, planes):
    """Deterministic synthetic parameters (same shapes as the PyTorch module)."""
    C, P = inplanes, planes
    ks = jax.random.split(key, 9)
    return {
        # conv1: torch weight (P, C, 1, 1) -> (C, P)
        "w1": jax.random.normal(ks[0], (C, P), jnp.float32) * (1.0 / jnp.sqrt(C)),
        "g1": 1.0 + 0.1 * jax.random.normal(ks[1], (1, P), jnp.float32),
        "b1": 0.1 * jax.random.normal(ks[2], (1, P), jnp.float32),
        # conv2: torch weight (P, P, 3, 3) -> taps (9, P_in, P_out), t = 3*dy + dx
        "w2": jax.random.normal(ks[3], (9, P, P), jnp.float32) * (1.0 / jnp.sqrt(9 * P)),
        "g2": 1.0 + 0.1 * jax.random.normal(ks[4], (1, P), jnp.float32),
        "b2": 0.1 * jax.random.normal(ks[5], (1, P), jnp.float32),
        # conv3: torch weight (4P, P, 1, 1) -> (P, 4P)
        "w3": jax.random.normal(ks[6], (P, 4 * P), jnp.float32) * (1.0 / jnp.sqrt(P)),
        "g3": 1.0 + 0.1 * jax.random.normal(ks[7], (1, 4 * P), jnp.float32),
        "b3": 0.1 * jax.random.normal(ks[8], (1, 4 * P), jnp.float32),
    }


def reference_forward(x_nchw, params):
    """Pure-JAX f32 reference (matches PyTorch training-mode forward)."""
    x = jnp.transpose(x_nchw, (0, 2, 3, 1))
    P = params["w1"].shape[1]

    def bn(h, g, b):
        mean = jnp.mean(h, axis=(0, 1, 2), keepdims=True)
        var = jnp.mean((h - mean) ** 2, axis=(0, 1, 2), keepdims=True)
        return (h - mean) * jax.lax.rsqrt(var + EPS) * g.reshape(1, 1, 1, -1) \
            + b.reshape(1, 1, 1, -1)

    h = jnp.einsum("nhwc,cp->nhwp", x, params["w1"])
    h = jax.nn.relu(bn(h, params["g1"], params["b1"]))
    w2_hwio = params["w2"].reshape(3, 3, P, P)
    h = jax.lax.conv_general_dilated(
        h, w2_hwio, window_strides=(1, 1), padding="SAME",
        dimension_numbers=("NHWC", "HWIO", "NHWC"))
    h = jax.nn.relu(bn(h, params["g2"], params["b2"]))
    h = jnp.einsum("nhwp,pc->nhwc", h, params["w3"])
    h = bn(h, params["g3"], params["b3"])
    out = jax.nn.relu(h + x)
    return jnp.transpose(out, (0, 3, 1, 2))


if __name__ == "__main__":
    planes = 4
    inplanes = planes * 4          # identity residual requires inplanes == 4 * planes
    N, H, W = 2, 16, 16

    key = jax.random.PRNGKey(0)
    kx, kp = jax.random.split(key)
    x = jax.random.normal(kx, (N, inplanes, H, W), jnp.float32)   # NCHW like PyTorch
    params = init_params(kp, inplanes, planes)

    _single_buffer_ok()   # prime the (eager) pipeline-mode probe before jit tracing

    out = jax.block_until_ready(bottleneck_forward(x, params))
    ref = reference_forward(x, params)

    assert out.shape == (N, inplanes, H, W), out.shape
    assert bool(jnp.all(jnp.isfinite(out)))
    err = float(jnp.max(jnp.abs(out - ref) / (1.0 + jnp.abs(ref))))
    assert err < 5e-2, f"normalized error vs f32 reference: {err}"

    print("KERNEL_OK")
</pallas_src>

<mosaic_0001>
module attributes {stable_mosaic.version = 11 : i64} {
  func.func @_k(%arg0: i32, %arg1: memref<8x128xf32, #tpu.memory_space<vmem>>, %arg2: memref<8x128xf32, #tpu.memory_space<vmem>>) attributes {dimension_semantics = [#tpu.dimension_semantics<arbitrary>], iteration_bounds = array<i64: 2>, scalar_prefetch = 0 : i64, scratch_operands = 0 : i64, tpu.core_type = #tpu.core_type<tc>, window_params = [{pipeline_mode = #tpu.pipeline_mode<synchronous>, transform_indices = @transform_0, window_bounds = array<i64: 8, 128>}, {pipeline_mode = #tpu.pipeline_mode<synchronous>, transform_indices = @transform_1, window_bounds = array<i64: 8, 128>}]} {
    %c0 = arith.constant 0 : index
    %c0_0 = arith.constant 0 : index
    %0 = vector.load %arg1[%c0, %c0_0] : memref<8x128xf32, #tpu.memory_space<vmem>>, vector<8x128xf32>
    %cst = arith.constant 1.000000e+00 : f32
    %1 = vector.broadcast %cst : f32 to vector<8x128xf32>
    %2 = arith.addf %0, %1 : vector<8x128xf32>
    %c0_1 = arith.constant 0 : index
    %c0_2 = arith.constant 0 : index
    %3 = vector.load %arg2[%c0_1, %c0_2] : memref<8x128xf32, #tpu.memory_space<vmem>>, vector<8x128xf32>
    tpu.vector_store %arg2[%c0_1, %c0_2], %2 {strides = array<i32>} : memref<8x128xf32, #tpu.memory_space<vmem>>, vector<8x128xf32>,
    return
  }
  func.func @transform_0(%arg0: i32) -> (i32, i32) {
    %c0_i32 = arith.constant 0 : i32
    %c0_i32_0 = arith.constant 0 : i32
    %c0_i32_1 = arith.constant 0 : i32
    return %c0_i32, %c0_i32_0 : i32, i32
  }
  func.func @transform_1(%arg0: i32) -> (i32, i32) {
    %c0_i32 = arith.constant 0 : i32
    %c0_i32_0 = arith.constant 0 : i32
    %c0_i32_1 = arith.constant 0 : i32
    return %c0_i32, %c0_i32_0 : i32, i32
  }
}

module attributes {stable_mosaic.version = 11 : i64} {
  func.func @_conv1_kernel(%arg0: i32, %arg1: i32, %arg2: memref<1x16x16x128xbf16, #tpu.memory_space<vmem>>, %arg3: memref<128x128xbf16, #tpu.memory_space<vmem>>, %arg4: memref<1x16x16x128xbf16, #tpu.memory_space<vmem>>, %arg5: memref<1x1x8x128xf32, #tpu.memory_space<vmem>>) attributes {dimension_semantics = [#tpu.dimension_semantics<parallel>, #tpu.dimension_semantics<parallel>], iteration_bounds = array<i64: 2, 1>, scalar_prefetch = 0 : i64, scratch_operands = 0 : i64, tpu.core_type = #tpu.core_type<tc>, window_params = [{transform_indices = @transform_0, window_bounds = array<i64: 1, 16, 16, 128>}, {pipeline_mode = #tpu.pipeline_mode<synchronous>, transform_indices = @transform_1, window_bounds = array<i64: 128, 128>}, {transform_indices = @transform_2, window_bounds = array<i64: 1, 16, 16, 128>}, {transform_indices = @transform_3, window_bounds = array<i64: 1, 1, 8, 128>}]} {
    %c0 = arith.constant 0 : index
    %c0_0 = arith.constant 0 : index
    %c0_1 = arith.constant 0 : index
    %c0_2 = arith.constant 0 : index
    %0 = vector.load %arg2[%c0, %c0_0, %c0_1, %c0_2] : memref<1x16x16x128xbf16, #tpu.memory_space<vmem>>, vector<1x16x16x128xbf16>
    %1 = vector.shape_cast %0 : vector<1x16x16x128xbf16> to vector<256x128xbf16>
    %c0_3 = arith.constant 0 : index
    %c0_4 = arith.constant 0 : index
    %2 = vector.load %arg3[%c0_3, %c0_4] : memref<128x128xbf16, #tpu.memory_space<vmem>>, vector<128x128xbf16>
    %cst = arith.constant dense<0.000000e+00> : vector<256x128xf32>
    %3 = tpu.matmul %1, %2, %cst {dimension_numbers = #tpu.dot_dimension_numbers<[1], [0], [0], [1], [0, 0, 1, 1], [], []>} : vector<256x128xbf16>, vector<128x128xbf16>, vector<256x128xf32> -> vector<256x128xf32>
    %4 = vector.shape_cast %3 : vector<256x128xf32> to vector<1x16x16x128xf32>
    %5 = arith.truncf %4 : vector<1x16x16x128xf32> to vector<1x16x16x128xbf16>
    %c0_5 = arith.constant 0 : index
    %c0_6 = arith.constant 0 : index
    %c0_7 = arith.constant 0 : index
    %c0_8 = arith.constant 0 : index
    %6 = vector.load %arg4[%c0_5, %c0_6, %c0_7, %c0_8] : memref<1x16x16x128xbf16, #tpu.memory_space<vmem>>, vector<1x16x16x128xbf16>
    tpu.vector_store %arg4[%c0_5, %c0_6, %c0_7, %c0_8], %5 {strides = array<i32>} : memref<1x16x16x128xbf16, #tpu.memory_space<vmem>>, vector<1x16x16x128xbf16>,
    %cst_9 = arith.constant dense<0.000000e+00> : vector<128xf32>
    %7 = vector.multi_reduction <add>, %3, %cst_9 [0] : vector<256x128xf32> to vector<128xf32>
    %8 = vector.shape_cast %7 : vector<128xf32> to vector<1x128xf32>
    %9 = arith.mulf %3, %3 : vector<256x128xf32>
    %cst_10 = arith.constant dense<0.000000e+00> : vector<128xf32>
    %10 = vector.multi_reduction <add>, %9, %cst_10 [0] : vector<256x128xf32> to vector<128xf32>
    %11 = vector.shape_cast %10 : vector<128xf32> to vector<1x128xf32>
    %cst_11 = arith.constant 0.000000e+00 : f32
    %12 = vector.broadcast %cst_11 : f32 to vector<6x128xf32>
    %13 = tpu.concatenate %8, %11, %12 in 0 : vector<1x128xf32>, vector<1x128xf32>, vector<6x128xf32> -> vector<8x128xf32>
    %14 = vector.shape_cast %13 : vector<8x128xf32> to vector<1x1x8x128xf32>
    %c0_12 = arith.constant 0 : index
    %c0_13 = arith.constant 0 : index
    %c0_14 = arith.constant 0 : index
    %c0_15 = arith.constant 0 : index
    %15 = vector.load %arg5[%c0_12, %c0_13, %c0_14, %c0_15] : memref<1x1x8x128xf32, #tpu.memory_space<vmem>>, vector<1x1x8x128xf32>
    tpu.vector_store %arg5[%c0_12, %c0_13, %c0_14, %c0_15], %14 {strides = array<i32>} : memref<1x1x8x128xf32, #tpu.memory_space<vmem>>, vector<1x1x8x128xf32>,
    return
  }
  func.func @transform_0(%arg0: i32, %arg1: i32) -> (i32, i32, i32, i32) {
    %c0_i32 = arith.constant 0 : i32
    %c0_i32_0 = arith.constant 0 : i32
    %c0_i32_1 = arith.constant 0 : i32
    return %arg0, %arg1, %c0_i32, %c0_i32_0 : i32, i32, i32, i32
  }
  func.func @transform_1(%arg0: i32, %arg1: i32) -> (i32, i32) {
    %c0_i32 = arith.constant 0 : i32
    %c0_i32_0 = arith.constant 0 : i32
    %c0_i32_1 = arith.constant 0 : i32
    return %c0_i32, %c0_i32_0 : i32, i32
  }
  func.func @transform_2(%arg0: i32, %arg1: i32) -> (i32, i32, i32, i32) {
    %c0_i32 = arith.constant 0 : i32
    %c0_i32_0 = arith.constant 0 : i32
    %c0_i32_1 = arith.constant 0 : i32
    return %arg0, %arg1, %c0_i32, %c0_i32_0 : i32, i32, i32, i32
  }
  func.func @transform_3(%arg0: i32, %arg1: i32) -> (i32, i32, i32, i32) {
    %c0_i32 = arith.constant 0 : i32
    %c0_i32_0 = arith.constant 0 : i32
    %c0_i32_1 = arith.constant 0 : i32
    return %arg0, %arg1, %c0_i32, %c0_i32_0 : i32, i32, i32, i32
  }
}

module attributes {stable_mosaic.version = 11 : i64} {
  func.func @_conv2_kernel_nohalo(%arg0: i32, %arg1: i32, %arg2: memref<1x16x16x128xbf16, #tpu.memory_space<vmem>>, %arg3: memref<2x128xf32, #tpu.memory_space<vmem>>, %arg4: memref<1152x128xbf16, #tpu.memory_space<vmem>>, %arg5: memref<1x16x16x128xbf16, #tpu.memory_space<vmem>>, %arg6: memref<1x1x8x128xf32, #tpu.memory_space<vmem>>) attributes {dimension_semantics = [#tpu.dimension_semantics<parallel>, #tpu.dimension_semantics<parallel>], iteration_bounds = array<i64: 2, 1>, scalar_prefetch = 0 : i64, scratch_operands = 0 : i64, tpu.core_type = #tpu.core_type<tc>, window_params = [{transform_indices = @transform_0, window_bounds = array<i64: 1, 16, 16, 128>}, {pipeline_mode = #tpu.pipeline_mode<synchronous>, transform_indices = @transform_1, window_bounds = array<i64: 2, 128>}, {pipeline_mode = #tpu.pipeline_mode<synchronous>, transform_indices = @transform_2, window_bounds = array<i64: 1152, 128>}, {transform_indices = @transform_3, window_bounds = array<i64: 1, 16, 16, 128>}, {transform_indices = @transform_4, window_bounds = array<i64: 1, 1, 8, 128>}]} {
    %c0 = arith.constant 0 : index
    %c0_0 = arith.constant 0 : index
    %0 = vector.load %arg3[%c0, %c0_0] : memref<2x128xf32, #tpu.memory_space<vmem>>, vector<1x128xf32>
    %1 = vector.shape_cast %0 : vector<1x128xf32> to vector<128xf32>
    %c1 = arith.constant 1 : index
    %c0_1 = arith.constant 0 : index
    %2 = vector.load %arg3[%c1, %c0_1] : memref<2x128xf32, #tpu.memory_space<vmem>>, vector<1x128xf32>
    %3 = vector.shape_cast %2 : vector<1x128xf32> to vector<128xf32>
    %c0_2 = arith.constant 0 : index
    %c0_3 = arith.constant 0 : index
    %c0_4 = arith.constant 0 : index
    %c0_5 = arith.constant 0 : index
    %4 = vector.load %arg2[%c0_2, %c0_3, %c0_4, %c0_5] : memref<1x16x16x128xbf16, #tpu.memory_space<vmem>>, vector<1x16x16x128xbf16>
    %5 = vector.shape_cast %4 : vector<1x16x16x128xbf16> to vector<16x16x128xbf16>
    %6 = arith.extf %5 : vector<16x16x128xbf16> to vector<16x16x128xf32>
    %7 = vector.shape_cast %1 : vector<128xf32> to vector<1x1x128xf32>
    %8 = vector.broadcast %7 : vector<1x1x128xf32> to vector<16x16x128xf32>
    %9 = arith.mulf %6, %8 : vector<16x16x128xf32>
    %10 = vector.shape_cast %3 : vector<128xf32> to vector<1x1x128xf32>
    %11 = vector.broadcast %10 : vector<1x1x128xf32> to vector<16x16x128xf32>
    %12 = arith.addf %9, %11 : vector<16x16x128xf32>
    %cst = arith.constant 0.000000e+00 : f32
    %13 = vector.broadcast %cst : f32 to vector<16x16x128xf32>
    %14 = arith.maximumf %12, %13 : vector<16x16x128xf32>
    %15 = arith.truncf %14 : vector<16x16x128xf32> to vector<16x16x128xbf16>
    %cst_6 = arith.constant 0.000000e+00 : bf16
    %16 = vector.broadcast %cst_6 : bf16 to vector<1x16x128xbf16>
    %17 = tpu.concatenate %16, %15, %16 in 0 : vector<1x16x128xbf16>, vector<16x16x128xbf16>, vector<1x16x128xbf16> -> vector<18x16x128xbf16>
    %cst_7 = arith.constant 0.000000e+00 : bf16
    %18 = vector.broadcast %cst_7 : bf16 to vector<18x1x128xbf16>
    %19 = vector.extract_strided_slice %17 {offsets = [0, 0, 0], sizes = [18, 15, 128], strides = [1, 1, 1]} : vector<18x16x128xbf16> to vector<18x15x128xbf16>
    %20 = tpu.concatenate %18, %19 in 1 : vector<18x1x128xbf16>, vector<18x15x128xbf16> -> vector<18x16x128xbf16>
    %21 = vector.extract_strided_slice %17 {offsets = [0, 1, 0], sizes = [18, 15, 128], strides = [1, 1, 1]} : vector<18x16x128xbf16> to vector<18x15x128xbf16>
    %22 = tpu.concatenate %21, %18 in 1 : vector<18x15x128xbf16>, vector<18x1x128xbf16> -> vector<18x16x128xbf16>
    %cst_8 = arith.constant 0.000000e+00 : f32
    %23 = vector.broadcast %cst_8 : f32 to vector<256x128xf32>
    %24 = vector.extract_strided_slice %20 {offsets = [0, 0, 0], sizes = [16, 16, 128], strides = [1, 1, 1]} : vector<18x16x128xbf16> to vector<16x16x128xbf16>
    %25 = vector.extract_strided_slice %17 {offsets = [0, 0, 0], sizes = [16, 16, 128], strides = [1, 1, 1]} : vector<18x16x128xbf16> to vector<16x16x128xbf16>
    %26 = vector.extract_strided_slice %22 {offsets = [0, 0, 0], sizes = [16, 16, 128], strides = [1, 1, 1]} : vector<18x16x128xbf16> to vector<16x16x128xbf16>
    %27 = tpu.concatenate %24, %25, %26 in 2 : vector<16x16x128xbf16>, vector<16x16x128xbf16>, vector<16x16x128xbf16> -> vector<16x16x384xbf16>
    %28 = vector.shape_cast %27 : vector<16x16x384xbf16> to vector<256x384xbf16>
    %c0_9 = arith.constant 0 : index
    %c0_10 = arith.constant 0 : index
    %29 = vector.load %arg4[%c0_9, %c0_10] : memref<1152x128xbf16, #tpu.memory_space<vmem>>, vector<384x128xbf16>
    %cst_11 = arith.constant dense<0.000000e+00> : vector<256x128xf32>
    %30 = tpu.matmul %28, %29, %cst_11 {dimension_numbers = #tpu.dot_dimension_numbers<[1], [0], [0], [1], [0, 0, 1, 1], [], []>} : vector<256x384xbf16>, vector<384x128xbf16>, vector<256x128xf32> -> vector<256x128xf32>
    %31 = arith.addf %23, %30 : vector<256x128xf32>
    %32 = vector.extract_strided_slice %20 {offsets = [1, 0, 0], sizes = [16, 16, 128], strides = [1, 1, 1]} : vector<18x16x128xbf16> to vector<16x16x128xbf16>
    %33 = vector.extract_strided_slice %17 {offsets = [1, 0, 0], sizes = [16, 16, 128], strides = [1, 1, 1]} : vector<18x16x128xbf16> to vector<16x16x128xbf16>
    %34 = vector.extract_strided_slice %22 {offsets = [1, 0, 0], sizes = [16, 16, 128], strides = [1, 1, 1]} : vector<18x16x128xbf16> to vector<16x16x128xbf16>
    %35 = tpu.concatenate %32, %33, %34 in 2 : vector<16x16x128xbf16>, vector<16x16x128xbf16>, vector<16x16x128xbf16> -> vector<16x16x384xbf16>
    %36 = vector.shape_cast %35 : vector<16x16x384xbf16> to vector<256x384xbf16>
    %c384 = arith.constant 384 : index
    %c0_12 = arith.constant 0 : index
    %37 = vector.load %arg4[%c384, %c0_12] : memref<1152x128xbf16, #tpu.memory_space<vmem>>, vector<384x128xbf16>
    %cst_13 = arith.constant dense<0.000000e+00> : vector<256x128xf32>
    %38 = tpu.matmul %36, %37, %cst_13 {dimension_numbers = #tpu.dot_dimension_numbers<[1], [0], [0], [1], [0, 0, 1, 1], [], []>} : vector<256x384xbf16>, vector<384x128xbf16>, vector<256x128xf32> -> vector<256x128xf32>
    %39 = arith.addf %31, %38 : vector<256x128xf32>
    %40 = vector.extract_strided_slice %20 {offsets = [2, 0, 0], sizes = [16, 16, 128], strides = [1, 1, 1]} : vector<18x16x128xbf16> to vector<16x16x128xbf16>
    %41 = vector.extract_strided_slice %17 {offsets = [2, 0, 0], sizes = [16, 16, 128], strides = [1, 1, 1]} : vector<18x16x128xbf16> to vector<16x16x128xbf16>
    %42 = vector.extract_strided_slice %22 {offsets = [2, 0, 0], sizes = [16, 16, 128], strides = [1, 1, 1]} : vector<18x16x128xbf16> to vector<16x16x128xbf16>
    %43 = tpu.concatenate %40, %41, %42 in 2 : vector<16x16x128xbf16>, vector<16x16x128xbf16>, vector<16x16x128xbf16> -> vector<16x16x384xbf16>
    %44 = vector.shape_cast %43 : vector<16x16x384xbf16> to vector<256x384xbf16>
    %c768 = arith.constant 768 : index
    %c0_14 = arith.constant 0 : index
    %45 = vector.load %arg4[%c768, %c0_14] : memref<1152x128xbf16, #tpu.memory_space<vmem>>, vector<384x128xbf16>
    %cst_15 = arith.constant dense<0.000000e+00> : vector<256x128xf32>
    %46 = tpu.matmul %44, %45, %cst_15 {dimension_numbers = #tpu.dot_dimension_numbers<[1], [0], [0], [1], [0, 0, 1, 1], [], []>} : vector<256x384xbf16>, vector<384x128xbf16>, vector<256x128xf32> -> vector<256x128xf32>
    %47 = arith.addf %39, %46 : vector<256x128xf32>
    %48 = vector.shape_cast %47 : vector<256x128xf32> to vector<1x16x16x128xf32>
    %49 = arith.truncf %48 : vector<1x16x16x128xf32> to vector<1x16x16x128xbf16>
    %c0_16 = arith.constant 0 : index
    %c0_17 = arith.constant 0 : index
    %c0_18 = arith.constant 0 : index
    %c0_19 = arith.constant 0 : index
    %50 = vector.load %arg5[%c0_16, %c0_17, %c0_18, %c0_19] : memref<1x16x16x128xbf16, #tpu.memory_space<vmem>>, vector<1x16x16x128xbf16>
    tpu.vector_store %arg5[%c0_16, %c0_17, %c0_18, %c0_19], %49 {strides = array<i32>} : memref<1x16x16x128xbf16, #tpu.memory_space<vmem>>, vector<1x16x16x128xbf16>,
    %cst_20 = arith.constant dense<0.000000e+00> : vector<128xf32>
    %51 = vector.multi_reduction <add>, %47, %cst_20 [0] : vector<256x128xf32> to vector<128xf32>
    %52 = vector.shape_cast %51 : vector<128xf32> to vector<1x128xf32>
    %53 = arith.mulf %47, %47 : vector<256x128xf32>
    %cst_21 = arith.constant dense<0.000000e+00> : vector<128xf32>
    %54 = vector.multi_reduction <add>, %53, %cst_21 [0] : vector<256x128xf32> to vector<128xf32>
    %55 = vector.shape_cast %54 : vector<128xf32> to vector<1x128xf32>
    %cst_22 = arith.constant 0.000000e+00 : f32
    %56 = vector.broadcast %cst_22 : f32 to vector<6x128xf32>
    %57 = tpu.concatenate %52, %55, %56 in 0 : vector<1x128xf32>, vector<1x128xf32>, vector<6x128xf32> -> vector<8x128xf32>
    %58 = vector.shape_cast %57 : vector<8x128xf32> to vector<1x1x8x128xf32>
    %c0_23 = arith.constant 0 : index
    %c0_24 = arith.constant 0 : index
    %c0_25 = arith.constant 0 : index
    %c0_26 = arith.constant 0 : index
    %59 = vector.load %arg6[%c0_23, %c0_24, %c0_25, %c0_26] : memref<1x1x8x128xf32, #tpu.memory_space<vmem>>, vector<1x1x8x128xf32>
    tpu.vector_store %arg6[%c0_23, %c0_24, %c0_25, %c0_26], %58 {strides = array<i32>} : memref<1x1x8x128xf32, #tpu.memory_space<vmem>>, vector<1x1x8x128xf32>,
    return
  }
  func.func @transform_0(%arg0: i32, %arg1: i32) -> (i32, i32, i32, i32) {
    %c0_i32 = arith.constant 0 : i32
    %c0_i32_0 = arith.constant 0 : i32
    %c0_i32_1 = arith.constant 0 : i32
    return %arg0, %arg1, %c0_i32, %c0_i32_0 : i32, i32, i32, i32
  }
  func.func @transform_1(%arg0: i32, %arg1: i32) -> (i32, i32) {
    %c0_i32 = arith.constant 0 : i32
    %c0_i32_0 = arith.constant 0 : i32
    %c0_i32_1 = arith.constant 0 : i32
    return %c0_i32, %c0_i32_0 : i32, i32
  }
  func.func @transform_2(%arg0: i32, %arg1: i32) -> (i32, i32) {
    %c0_i32 = arith.constant 0 : i32
    %c0_i32_0 = arith.constant 0 : i32
    %c0_i32_1 = arith.constant 0 : i32
    return %c0_i32, %c0_i32_0 : i32, i32
  }
  func.func @transform_3(%arg0: i32, %arg1: i32) -> (i32, i32, i32, i32) {
    %c0_i32 = arith.constant 0 : i32
    %c0_i32_0 = arith.constant 0 : i32
    %c0_i32_1 = arith.constant 0 : i32
    return %arg0, %arg1, %c0_i32, %c0_i32_0 : i32, i32, i32, i32
  }
  func.func @transform_4(%arg0: i32, %arg1: i32) -> (i32, i32, i32, i32) {
    %c0_i32 = arith.constant 0 : i32
    %c0_i32_0 = arith.constant 0 : i32
    %c0_i32_1 = arith.constant 0 : i32
    return %arg0, %arg1, %c0_i32, %c0_i32_0 : i32, i32, i32, i32
  }
}

module attributes {stable_mosaic.version = 11 : i64} {
  func.func @_conv3_kernel(%arg0: i32, %arg1: i32, %arg2: memref<1x16x16x128xbf16, #tpu.memory_space<vmem>>, %arg3: memref<2x128xf32, #tpu.memory_space<vmem>>, %arg4: memref<128x128xbf16, #tpu.memory_space<vmem>>, %arg5: memref<1x16x16x128xbf16, #tpu.memory_space<vmem>>, %arg6: memref<1x1x8x128xf32, #tpu.memory_space<vmem>>) attributes {dimension_semantics = [#tpu.dimension_semantics<parallel>, #tpu.dimension_semantics<parallel>], iteration_bounds = array<i64: 2, 1>, scalar_prefetch = 0 : i64, scratch_operands = 0 : i64, tpu.core_type = #tpu.core_type<tc>, window_params = [{transform_indices = @transform_0, window_bounds = array<i64: 1, 16, 16, 128>}, {pipeline_mode = #tpu.pipeline_mode<synchronous>, transform_indices = @transform_1, window_bounds = array<i64: 2, 128>}, {pipeline_mode = #tpu.pipeline_mode<synchronous>, transform_indices = @transform_2, window_bounds = array<i64: 128, 128>}, {transform_indices = @transform_3, window_bounds = array<i64: 1, 16, 16, 128>}, {transform_indices = @transform_4, window_bounds = array<i64: 1, 1, 8, 128>}]} {
    %c0 = arith.constant 0 : index
    %c0_0 = arith.constant 0 : index
    %c0_1 = arith.constant 0 : index
    %c0_2 = arith.constant 0 : index
    %0 = vector.load %arg2[%c0, %c0_0, %c0_1, %c0_2] : memref<1x16x16x128xbf16, #tpu.memory_space<vmem>>, vector<1x16x16x128xbf16>
    %1 = arith.extf %0 : vector<1x16x16x128xbf16> to vector<1x16x16x128xf32>
    %c0_3 = arith.constant 0 : index
    %c0_4 = arith.constant 0 : index
    %2 = vector.load %arg3[%c0_3, %c0_4] : memref<2x128xf32, #tpu.memory_space<vmem>>, vector<1x128xf32>
    %3 = vector.shape_cast %2 : vector<1x128xf32> to vector<128xf32>
    %4 = vector.shape_cast %3 : vector<128xf32> to vector<1x1x1x128xf32>
    %5 = vector.broadcast %4 : vector<1x1x1x128xf32> to vector<1x16x16x128xf32>
    %6 = arith.mulf %1, %5 : vector<1x16x16x128xf32>
    %c1 = arith.constant 1 : index
    %c0_5 = arith.constant 0 : index
    %7 = vector.load %arg3[%c1, %c0_5] : memref<2x128xf32, #tpu.memory_space<vmem>>, vector<1x128xf32>
    %8 = vector.shape_cast %7 : vector<1x128xf32> to vector<128xf32>
    %9 = vector.shape_cast %8 : vector<128xf32> to vector<1x1x1x128xf32>
    %10 = vector.broadcast %9 : vector<1x1x1x128xf32> to vector<1x16x16x128xf32>
    %11 = arith.addf %6, %10 : vector<1x16x16x128xf32>
    %cst = arith.constant 0.000000e+00 : f32
    %12 = vector.broadcast %cst : f32 to vector<1x16x16x128xf32>
    %13 = arith.maximumf %11, %12 : vector<1x16x16x128xf32>
    %14 = vector.shape_cast %13 : vector<1x16x16x128xf32> to vector<256x128xf32>
    %15 = arith.truncf %14 : vector<256x128xf32> to vector<256x128xbf16>
    %c0_6 = arith.constant 0 : index
    %c0_7 = arith.constant 0 : index
    %16 = vector.load %arg4[%c0_6, %c0_7] : memref<128x128xbf16, #tpu.memory_space<vmem>>, vector<128x128xbf16>
    %cst_8 = arith.constant dense<0.000000e+00> : vector<256x128xf32>
    %17 = tpu.matmul %15, %16, %cst_8 {dimension_numbers = #tpu.dot_dimension_numbers<[1], [0], [0], [1], [0, 0, 1, 1], [], []>} : vector<256x128xbf16>, vector<128x128xbf16>, vector<256x128xf32> -> vector<256x128xf32>
    %18 = vector.shape_cast %17 : vector<256x128xf32> to vector<1x16x16x128xf32>
    %19 = arith.truncf %18 : vector<1x16x16x128xf32> to vector<1x16x16x128xbf16>
    %c0_9 = arith.constant 0 : index
    %c0_10 = arith.constant 0 : index
    %c0_11 = arith.constant 0 : index
    %c0_12 = arith.constant 0 : index
    %20 = vector.load %arg5[%c0_9, %c0_10, %c0_11, %c0_12] : memref<1x16x16x128xbf16, #tpu.memory_space<vmem>>, vector<1x16x16x128xbf16>
    tpu.vector_store %arg5[%c0_9, %c0_10, %c0_11, %c0_12], %19 {strides = array<i32>} : memref<1x16x16x128xbf16, #tpu.memory_space<vmem>>, vector<1x16x16x128xbf16>,
    %cst_13 = arith.constant dense<0.000000e+00> : vector<128xf32>
    %21 = vector.multi_reduction <add>, %17, %cst_13 [0] : vector<256x128xf32> to vector<128xf32>
    %22 = vector.shape_cast %21 : vector<128xf32> to vector<1x128xf32>
    %23 = arith.mulf %17, %17 : vector<256x128xf32>
    %cst_14 = arith.constant dense<0.000000e+00> : vector<128xf32>
    %24 = vector.multi_reduction <add>, %23, %cst_14 [0] : vector<256x128xf32> to vector<128xf32>
    %25 = vector.shape_cast %24 : vector<128xf32> to vector<1x128xf32>
    %cst_15 = arith.constant 0.000000e+00 : f32
    %26 = vector.broadcast %cst_15 : f32 to vector<6x128xf32>
    %27 = tpu.concatenate %22, %25, %26 in 0 : vector<1x128xf32>, vector<1x128xf32>, vector<6x128xf32> -> vector<8x128xf32>
    %28 = vector.shape_cast %27 : vector<8x128xf32> to vector<1x1x8x128xf32>
    %c0_16 = arith.constant 0 : index
    %c0_17 = arith.constant 0 : index
    %c0_18 = arith.constant 0 : index
    %c0_19 = arith.constant 0 : index
    %29 = vector.load %arg6[%c0_16, %c0_17, %c0_18, %c0_19] : memref<1x1x8x128xf32, #tpu.memory_space<vmem>>, vector<1x1x8x128xf32>
    tpu.vector_store %arg6[%c0_16, %c0_17, %c0_18, %c0_19], %28 {strides = array<i32>} : memref<1x1x8x128xf32, #tpu.memory_space<vmem>>, vector<1x1x8x128xf32>,
    return
  }
  func.func @transform_0(%arg0: i32, %arg1: i32) -> (i32, i32, i32, i32) {
    %c0_i32 = arith.constant 0 : i32
    %c0_i32_0 = arith.constant 0 : i32
    %c0_i32_1 = arith.constant 0 : i32
    return %arg0, %arg1, %c0_i32, %c0_i32_0 : i32, i32, i32, i32
  }
  func.func @transform_1(%arg0: i32, %arg1: i32) -> (i32, i32) {
    %c0_i32 = arith.constant 0 : i32
    %c0_i32_0 = arith.constant 0 : i32
    %c0_i32_1 = arith.constant 0 : i32
    return %c0_i32, %c0_i32_0 : i32, i32
  }
  func.func @transform_2(%arg0: i32, %arg1: i32) -> (i32, i32) {
    %c0_i32 = arith.constant 0 : i32
    %c0_i32_0 = arith.constant 0 : i32
    %c0_i32_1 = arith.constant 0 : i32
    return %c0_i32, %c0_i32_0 : i32, i32
  }
  func.func @transform_3(%arg0: i32, %arg1: i32) -> (i32, i32, i32, i32) {
    %c0_i32 = arith.constant 0 : i32
    %c0_i32_0 = arith.constant 0 : i32
    %c0_i32_1 = arith.constant 0 : i32
    return %arg0, %arg1, %c0_i32, %c0_i32_0 : i32, i32, i32, i32
  }
  func.func @transform_4(%arg0: i32, %arg1: i32) -> (i32, i32, i32, i32) {
    %c0_i32 = arith.constant 0 : i32
    %c0_i32_0 = arith.constant 0 : i32
    %c0_i32_1 = arith.constant 0 : i32
    return %arg0, %arg1, %c0_i32, %c0_i32_0 : i32, i32, i32, i32
  }
}

module attributes {stable_mosaic.version = 11 : i64} {
  func.func @_residual_kernel(%arg0: i32, %arg1: i32, %arg2: memref<1x16x16x128xbf16, #tpu.memory_space<vmem>>, %arg3: memref<1x16x16x128xbf16, #tpu.memory_space<vmem>>, %arg4: memref<2x128xf32, #tpu.memory_space<vmem>>, %arg5: memref<1x16x16x128xbf16, #tpu.memory_space<vmem>>) attributes {dimension_semantics = [#tpu.dimension_semantics<parallel>, #tpu.dimension_semantics<parallel>], iteration_bounds = array<i64: 2, 1>, scalar_prefetch = 0 : i64, scratch_operands = 0 : i64, tpu.core_type = #tpu.core_type<tc>, window_params = [{transform_indices = @transform_0, window_bounds = array<i64: 1, 16, 16, 128>}, {transform_indices = @transform_1, window_bounds = array<i64: 1, 16, 16, 128>}, {pipeline_mode = #tpu.pipeline_mode<synchronous>, transform_indices = @transform_2, window_bounds = array<i64: 2, 128>}, {transform_indices = @transform_3, window_bounds = array<i64: 1, 16, 16, 128>}]} {
    %c0 = arith.constant 0 : index
    %c0_0 = arith.constant 0 : index
    %c0_1 = arith.constant 0 : index
    %c0_2 = arith.constant 0 : index
    %0 = vector.load %arg2[%c0, %c0_0, %c0_1, %c0_2] : memref<1x16x16x128xbf16, #tpu.memory_space<vmem>>, vector<1x16x16x128xbf16>
    %1 = arith.extf %0 : vector<1x16x16x128xbf16> to vector<1x16x16x128xf32>
    %c0_3 = arith.constant 0 : index
    %c0_4 = arith.constant 0 : index
    %2 = vector.load %arg4[%c0_3, %c0_4] : memref<2x128xf32, #tpu.memory_space<vmem>>, vector<1x128xf32>
    %3 = vector.shape_cast %2 : vector<1x128xf32> to vector<128xf32>
    %4 = vector.shape_cast %3 : vector<128xf32> to vector<1x1x1x128xf32>
    %5 = vector.broadcast %4 : vector<1x1x1x128xf32> to vector<1x16x16x128xf32>
    %6 = arith.mulf %1, %5 : vector<1x16x16x128xf32>
    %c1 = arith.constant 1 : index
    %c0_5 = arith.constant 0 : index
    %7 = vector.load %arg4[%c1, %c0_5] : memref<2x128xf32, #tpu.memory_space<vmem>>, vector<1x128xf32>
    %8 = vector.shape_cast %7 : vector<1x128xf32> to vector<128xf32>
    %9 = vector.shape_cast %8 : vector<128xf32> to vector<1x1x1x128xf32>
    %10 = vector.broadcast %9 : vector<1x1x1x128xf32> to vector<1x16x16x128xf32>
    %11 = arith.addf %6, %10 : vector<1x16x16x128xf32>
    %c0_6 = arith.constant 0 : index
    %c0_7 = arith.constant 0 : index
    %c0_8 = arith.constant 0 : index
    %c0_9 = arith.constant 0 : index
    %12 = vector.load %arg3[%c0_6, %c0_7, %c0_8, %c0_9] : memref<1x16x16x128xbf16, #tpu.memory_space<vmem>>, vector<1x16x16x128xbf16>
    %13 = arith.extf %12 : vector<1x16x16x128xbf16> to vector<1x16x16x128xf32>
    %14 = arith.addf %11, %13 : vector<1x16x16x128xf32>
    %cst = arith.constant 0.000000e+00 : f32
    %15 = vector.broadcast %cst : f32 to vector<1x16x16x128xf32>
    %16 = arith.maximumf %14, %15 : vector<1x16x16x128xf32>
    %17 = arith.truncf %16 : vector<1x16x16x128xf32> to vector<1x16x16x128xbf16>
    %c0_10 = arith.constant 0 : index
    %c0_11 = arith.constant 0 : index
    %c0_12 = arith.constant 0 : index
    %c0_13 = arith.constant 0 : index
    %18 = vector.load %arg5[%c0_10, %c0_11, %c0_12, %c0_13] : memref<1x16x16x128xbf16, #tpu.memory_space<vmem>>, vector<1x16x16x128xbf16>
    tpu.vector_store %arg5[%c0_10, %c0_11, %c0_12, %c0_13], %17 {strides = array<i32>} : memref<1x16x16x128xbf16, #tpu.memory_space<vmem>>, vector<1x16x16x128xbf16>,
    return
  }
  func.func @transform_0(%arg0: i32, %arg1: i32) -> (i32, i32, i32, i32) {
    %c0_i32 = arith.constant 0 : i32
    %c0_i32_0 = arith.constant 0 : i32
    %c0_i32_1 = arith.constant 0 : i32
    return %arg0, %arg1, %c0_i32, %c0_i32_0 : i32, i32, i32, i32
  }
  func.func @transform_1(%arg0: i32, %arg1: i32) -> (i32, i32, i32, i32) {
    %c0_i32 = arith.constant 0 : i32
    %c0_i32_0 = arith.constant 0 : i32
    %c0_i32_1 = arith.constant 0 : i32
    return %arg0, %arg1, %c0_i32, %c0_i32_0 : i32, i32, i32, i32
  }
  func.func @transform_2(%arg0: i32, %arg1: i32) -> (i32, i32) {
    %c0_i32 = arith.constant 0 : i32
    %c0_i32_0 = arith.constant 0 : i32
    %c0_i32_1 = arith.constant 0 : i32
    return %c0_i32, %c0_i32_0 : i32, i32
  }
  func.func @transform_3(%arg0: i32, %arg1: i32) -> (i32, i32, i32, i32) {
    %c0_i32 = arith.constant 0 : i32
    %c0_i32_0 = arith.constant 0 : i32
    %c0_i32_1 = arith.constant 0 : i32
    return %arg0, %arg1, %c0_i32, %c0_i32_0 : i32, i32, i32, i32
  }
}

</mosaic_0001>

<bundles_post_ra>
// kernel: tpu_custom_call.1
= control target key start
LH: loop header
LB: loop body
LE: loop exit
PB: predicated region body
PF: predicated region fallthrough
CT: control target
= control target key end

     0   :  { %6 = vsyncpa [#allocation3], 0  ;;  %s287_s0 = inlined_call_operand.hbm [shape: f32[8,128], index: 0, kind: input, shape index: {}]   ;;  %s288_s1 = inlined_call_operand.hbm [shape: f32[8,128], index: 1, kind: output, shape index: {}]  }
   0x1   :  { %7 = vsyncpa [#allocation4], 0  ;;  %s270_s6 = smov 0  }
   0x2 LB: > { %s149_s7 = sadd.s32 4294967295, %s256_s6   ;;  %p150_p0 = scmp.ge.s32.totalorder %s256_s6, 1  ;;  %s256_s6 = sphi %s270_s6, %s13_s6  }
   0x3   : > { %p60_p1 = scmp.lt.s32.totalorder %s256_s6, 3  ;;  %s72_s10 = sshll.u32 %s287_s0, 4  ;;  %s73_s10 = int_to_ptr.hbm [resolvable:$true] %s72_s10 }
   0x4   : > { %p170_p3 = scmp.eq.s32.totalorder %s149_s7, 0  ;;  %s258_s11 = smov [#allocation2]  }
   0x5   : > { %p61_p2 = pnand %p150_p0, %p60_p1  ;;  %s74_s12 = sshll.u32 %s258_s11, 4  ;;  %s75_s12 = int_to_ptr.vmem [resolvable:$true] %s74_s12 }
   0x7   : > { %p166_p4 = pneg %p61_p2  ;;  %87 = sbr.rel (%p61_p2) target bundleno = 20 (0x14), region = 24 }
   0x9   : > { %p167_p5 = pnand %p170_p3, %p166_p4 }
   0xb   : > { %169 = dma.hbm_to_vmem [thread:$0]  (!%p167_p5), %s73_s10, 128, %s75_s12, [#allocation3]  }
   0xc   : > { %247 = dma.done.wait (%p170_p3), [#allocation3], 128  }
   0xd   : > { %249 = vsyncadd (%p170_p3), [#allocation3], 4294967168  ;;  %s259_s13 = smov [#allocation5]   ;;  %s109_s17 = sshll.u32 %s288_s1, 4  ;;  %v98_v0 = vld [vmem:[#allocation2] sm:$0xff]  ;;  %s110_s17 = int_to_ptr.hbm [resolvable:$true] %s109_s17 }
   0xe   : > { %s107_s14 = sshll.u32 %s259_s13, 4  ;;  %p172_p6 = scmp.eq.s32.totalorder %s149_s7, 1  ;;  %v99_v1 = vadd.f32 1.0, %v98_v0  ;;  %s108_s14 = int_to_ptr.vmem [resolvable:$true] %s107_s14 }
  0x10   : > { %100 = vst [vmem:[#allocation5] sm:$0xff] %v99_v1 }
  0x11   : > { %163 = dma.vmem_to_hbm [thread:$0]  (%p172_p6), %s108_s14, 128, %s110_s17, [#allocation4]  }
  0x12   : > { %251 = dma.done.wait (%p172_p6), [#allocation4], 128  }
  0x13   : > { %253 = vsyncadd (%p172_p6), [#allocation4], 4294967168 }
  0x14 PF: > { %s13_s6 = sadd.s32 1, %s256_s6  }
  0x15   : > { %p10_p7 = scmp.ge.s32.totalorder %s13_s6, 4  }
  0x17   :  { %12 = sbr.rel (!%p10_p7) target bundleno = 2 (0x2), region = 53 }
  0x1c   :  { %123 = vsyncpa [#allocation3], 1 }
  0x1d   :  { %125 = vsyncpa [#allocation3 + $0x1], 1 }
  0x1e   :  { %126 = vsyncpa [#allocation4], 1 }
  0x1f   :  { %128 = vsyncpa [#allocation4 + $0x1], 1 }

// kernel: bottleneck_forward.4
= control target key start
LH: loop header
LB: loop body
LE: loop exit
PB: predicated region body
PF: predicated region fallthrough
CT: control target
= control target key end

     0   :  { %s1148_s12 = smov 0   ;;  %s1150_s13 = smov 0   ;;  %s1370_s0 = inlined_call_operand.vmem [shape: bf16[2,16,16,128], index: 0, kind: input, shape index: {}]   ;;  %s1371_s1 = inlined_call_operand.vmem [shape: bf16[128,128], index: 1, kind: input, shape index: {}]   ;;  %s1372_s2 = inlined_call_operand.vmem [shape: bf16[2,16,16,128], index: 2, kind: output, shape index: {0}]   ;;  %s1373_s3 = inlined_call_operand.vmem [shape: f32[2,1,8,128], index: 3, kind: output, shape index: {1}]  }
   0x1   :  { %s1152_s14 = smov 0  }
   0x2 LB: > { %s26_s15 = sadd.s32 1, %s1122_s13  ;;  %p831_p0 = scmp.ge.s32.totalorder %s1126_s14, 1  ;;  %s1126_s14 = sphi %s1152_s14, %s14_s14   ;;  %s1122_s13 = sphi %s1150_s13, %s1375_s13   ;;  %s1118_s12 = sphi %s1148_s12, %s1374_s12  }
   0x3   : > { %p28_p1 = scmp.ge.s32.totalorder %s26_s15, 2  ;;  %p164_p2 = scmp.lt.s32.totalorder %s1126_s14, 3 }
   0x5   : > { %s1377_s15 = smov (%p28_p1, %s26_s15), 0  ;;  %p165_p3 = pnand %p831_p0, %p164_p2 }
   0x6   : > { %p206_p4 = scmp.lt.s32.totalorder (!%p165_p3), %s1118_s12, 1 }
   0x7   : > { %168 = sbr.rel (%p165_p3) target bundleno = 293 (0x125), region = 28 }
   0xc   : > { %v960_v0 = vld [vmem:[%s1371_s1 + $0x38] sm:$0xff]  ;;  %v959_v1 = vld [vmem:[%s1371_s1 + $0x30] sm:$0xff]  ;;  %v958_v2 = vld [vmem:[%s1371_s1 + $0x28] sm:$0xff]  ;;  %s1379_s12 = smov (!%p206_p4, %s1118_s12), 1  ;;  %vm685_vm0 = vcmask 1040384   ;;  %vm687_vm1 = vcmask 1041408  }
   0xd   : > { %426 = vmatpush.bf16.msra.mxu0 %v960_v0  ;;  %1056 = vmatpush.bf16.msra.mxu1 %v960_v0  ;;  %v957_v3 = vld [vmem:[%s1371_s1 + $0x20] sm:$0xff]  ;;  %v956_v4 = vld [vmem:[%s1371_s1 + $0x18] sm:$0xff]  ;;  %v955_v5 = vld [vmem:[%s1371_s1 + $0x10] sm:$0xff]  ;;  %s935_s30 = sshll.u32 %s1379_s12, 7  ;;  %s836_s16 = sshll.u32 %s1379_s12, 3 }
   0xe   : > { %1057 = vmatpush.bf16.msra.mxu2 %v960_v0  ;;  %1058 = vmatpush.bf16.msra.mxu3 %v960_v0  ;;  %v954_v6 = vld [vmem:[%s1371_s1 + $0x8] sm:$0xff]  ;;  %v953_v7 = vld [vmem:[%s1371_s1] sm:$0xff]  ;;  %s1202_s8 = scalar_lea.vmem %s1370_s0, %s935_s30  ;;  %s1229_s11 = scalar_lea.vmem %s1372_s2, %s935_s30 }
   0xf   : > { %v937_v8 = vld [vmem:[%s1202_s8] sm:$0xff]  ;;  %v938_v12 = vld [vmem:[%s1202_s8 + $0x8] sm:$0xff]  ;;  %v939_v16 = vld [vmem:[%s1202_s8 + $0x10] sm:$0xff]  ;;  %s233_s19 = scalar_lea.vmem %s1373_s3, %s836_s16 }
  0x10   : > { %v941_v9 = vld [vmem:[%s1202_s8 + $0x20] sm:$0xff]  ;;  %v942_v13 = vld [vmem:[%s1202_s8 + $0x28] sm:$0xff]  ;;  %v943_v17 = vld [vmem:[%s1202_s8 + $0x30] sm:$0xff] }
  0x11   : > { %427 = vmatpush.bf16.msra.mxu0 %v959_v1  ;;  %1059 = vmatpush.bf16.msra.mxu1 %v959_v1  ;;  %v945_v10 = vld [vmem:[%s1202_s8 + $0x40] sm:$0xff]  ;;  %v946_v14 = vld [vmem:[%s1202_s8 + $0x48] sm:$0xff]  ;;  %v947_v18 = vld [vmem:[%s1202_s8 + $0x50] sm:$0xff] }
  0x12   : > { %1060 = vmatpush.bf16.msra.mxu2 %v959_v1  ;;  %1061 = vmatpush.bf16.msra.mxu3 %v959_v1  ;;  %v949_v11 = vld [vmem:[%s1202_s8 + $0x60] sm:$0xff]  ;;  %v950_v15 = vld [vmem:[%s1202_s8 + $0x68] sm:$0xff]  ;;  %v951_v19 = vld [vmem:[%s1202_s8 + $0x70] sm:$0xff] }
  0x13   : > { %v940_v20 = vld [vmem:[%s1202_s8 + $0x18] sm:$0xff] }
  0x14   : > { %v944_v21 = vld [vmem:[%s1202_s8 + $0x38] sm:$0xff] }
  0x15   : > { %428 = vmatpush.bf16.msra.mxu0 %v958_v2  ;;  %1062 = vmatpush.bf16.msra.mxu1 %v958_v2  ;;  %v948_v22 = vld [vmem:[%s1202_s8 + $0x58] sm:$0xff] }
  0x16   : > { %1063 = vmatpush.bf16.msra.mxu2 %v958_v2  ;;  %1064 = vmatpush.bf16.msra.mxu3 %v958_v2  ;;  %v952_v23 = vld [vmem:[%s1202_s8 + $0x78] sm:$0xff] }
  0x19   : > { %429 = vmatpush.bf16.msra.mxu0 %v957_v3  ;;  %1065 = vmatpush.bf16.msra.mxu1 %v957_v3 }
  0x1a   : > { %1066 = vmatpush.bf16.msra.mxu2 %v957_v3  ;;  %1067 = vmatpush.bf16.msra.mxu3 %v957_v3 }
  0x1d   : > { %430 = vmatpush.bf16.msra.mxu0 %v956_v4  ;;  %1068 = vmatpush.bf16.msra.mxu1 %v956_v4 }
  0x1e   : > { %1069 = vmatpush.bf16.msra.mxu2 %v956_v4  ;;  %1070 = vmatpush.bf16.msra.mxu3 %v956_v4 }
  0x21   : > { %431 = vmatpush.bf16.msra.mxu0 %v955_v5  ;;  %1071 = vmatpush.bf16.msra.mxu1 %v955_v5 }
  0x22   : > { %1072 = vmatpush.bf16.msra.mxu2 %v955_v5  ;;  %1073 = vmatpush.bf16.msra.mxu3 %v955_v5 }
  0x25   : > { %432 = vmatpush.bf16.msra.mxu0 %v954_v6  ;;  %1074 = vmatpush.bf16.msra.mxu1 %v954_v6 }
  0x26   : > { %1075 = vmatpush.bf16.msra.mxu2 %v954_v6  ;;  %1076 = vmatpush.bf16.msra.mxu3 %v954_v6 }
  0x29   : > { %433 = vmatpush.bf16.msra.mxu0 %v953_v7  ;;  %1077 = vmatpush.bf16.msra.mxu1 %v953_v7 }
  0x2a   : > { %1078 = vmatpush.bf16.msra.mxu2 %v953_v7  ;;  %1079 = vmatpush.bf16.msra.mxu3 %v953_v7 }
  0x2c   : > { %434 = vmatmul.bf16.vlgmr.msra.gmra.mxu0 %v937_v8  ;;  %454 = vmatmul.bf16.vlgmr.msra.gmra.mxu1 %v941_v9 }
  0x2d   : > { %474 = vmatmul.bf16.vlgmr.msra.gmra.mxu2 %v945_v10  ;;  %494 = vmatmul.bf16.vlgmr.msra.gmra.mxu3 %v949_v11 }
  0x3c   : > { %439 = vmatmul.bf16.gmra.mxu0 %v938_v12  ;;  %459 = vmatmul.bf16.gmra.mxu1 %v942_v13 }
  0x3d   : > { %479 = vmatmul.bf16.gmra.mxu2 %v946_v14  ;;  %499 = vmatmul.bf16.gmra.mxu3 %v950_v15 }
  0x4c   : > { %444 = vmatmul.bf16.gmra.mxu0 %v939_v16  ;;  %464 = vmatmul.bf16.gmra.mxu1 %v943_v17 }
  0x4d   : > { %484 = vmatmul.bf16.gmra.mxu2 %v947_v18  ;;  %504 = vmatmul.bf16.gmra.mxu3 %v951_v19 }
  0x5c   : > { %449 = vmatmul.bf16.gmra.mxu0 %v940_v20  ;;  %469 = vmatmul.bf16.gmra.mxu1 %v944_v21 }
  0x5d   : > { %489 = vmatmul.bf16.gmra.mxu2 %v948_v22  ;;  %509 = vmatmul.bf16.gmra.mxu3 %v952_v23 }
  0xa9   : > { %v435_v24 = vpop.f32.mrf.mxu0  ;;  %v1220_v25 = vpop.f32.mrf.mxu1 }
  0xaa   : > { %v616_v57 = vmul.f32 %v435_v24, %v435_v24 }
  0xb0   : > { %v1222_v26 = vpop.f32.mrf.mxu2  ;;  %v1235_v31 = vpop.f32.mrf.mxu3 }
  0xb1   : > { %v437_v27 = vpop.f32.mrf.mxu0  ;;  %v1231_v28 = vpop.f32.mrf.mxu1 }
  0xb2   : > { %v964_v29 = vpack.c.bf16 %v437_v27, %v435_v24  ;;  %v984_v30 = vpack.c.bf16 %v1231_v28, %v1220_v25  ;;  %v617_v56 = vmul.f32 %v437_v27, %v437_v27  ;;  %v579_v59 = vadd.f32 %v437_v27, %v435_v24 }
  0xb3   : > { %v624_v27 = vmul.f32 %v1220_v25, %v1220_v25 }
  0xb4   : > { %965 = vst [vmem:[%s1229_s11] sm:$0xff] %v964_v29   ;;  %v648_v60 = vadd.f32 %v617_v56, %v616_v57 }
  0xb5   : > { %1044 = vst [vmem:[%s1229_s11 + $0x20] sm:$0xff] %v984_v30  }
  0xb8   : > { %v1239_v32 = vpop.f32.mrf.mxu2  ;;  %v1245_v36 = vpop.f32.mrf.mxu3 }
  0xb9   : > { %v440_v33 = vpop.f32.mrf.mxu0  ;;  %v1241_v34 = vpop.f32.mrf.mxu1  ;;  %v1004_v35 = vpack.c.bf16 %v1239_v32, %v1222_v26  ;;  %v1024_v37 = vpack.c.bf16 %v1245_v36, %v1235_v31 }
  0xba   : > { %v618_v58 = vmul.f32 %v440_v33, %v440_v33  ;;  %v580_v62 = vadd.f32 %v579_v59, %v440_v33 }
  0xbb   : > { %1048 = vst [vmem:[%s1229_s11 + $0x40] sm:$0xff] %v1004_v35  }
  0xbc   : > { %1052 = vst [vmem:[%s1229_s11 + $0x60] sm:$0xff] %v1024_v37   ;;  %v649_v0 = vadd.f32 %v648_v60, %v618_v58 }
  0xc0   : > { %v1251_v38 = vpop.f32.mrf.mxu2  ;;  %v1257_v43 = vpop.f32.mrf.mxu3 }
  0xc1   : > { %v442_v39 = vpop.f32.mrf.mxu0  ;;  %v1253_v40 = vpop.f32.mrf.mxu1 }
  0xc2   : > { %v969_v41 = vpack.c.bf16 %v442_v39, %v440_v33  ;;  %v989_v42 = vpack.c.bf16 %v1253_v40, %v1241_v34  ;;  %v619_v61 = vmul.f32 %v442_v39, %v442_v39  ;;  %v581_v5 = vadd.f32 %v580_v62, %v442_v39 }
  0xc3   : > { %v625_v33 = vmul.f32 %v1231_v28, %v1231_v28  ;;  %v626_v39 = vmul.f32 %v1241_v34, %v1241_v34 }
  0xc4   : > { %1041 = vst [vmem:[%s1229_s11 + $0x8] sm:$0xff] %v969_v41   ;;  %v650_v7 = vadd.f32 %v649_v0, %v619_v61 }
  0xc5   : > { %1045 = vst [vmem:[%s1229_s11 + $0x28] sm:$0xff] %v989_v42  }
  0xc8   : > { %v1261_v44 = vpop.f32.mrf.mxu2  ;;  %v1267_v48 = vpop.f32.mrf.mxu3 }
  0xc9   : > { %v445_v45 = vpop.f32.mrf.mxu0  ;;  %v1263_v46 = vpop.f32.mrf.mxu1  ;;  %v1009_v47 = vpack.c.bf16 %v1261_v44, %v1251_v38  ;;  %v1029_v49 = vpack.c.bf16 %v1267_v48, %v1257_v43 }
  0xca   : > { %v620_v1 = vmul.f32 %v445_v45, %v445_v45  ;;  %v582_v10 = vadd.f32 %v581_v5, %v445_v45  ;;  %v633_v5 = vmul.f32 %v1239_v32, %v1239_v32 }
  0xcb   : > { %1049 = vst [vmem:[%s1229_s11 + $0x48] sm:$0xff] %v1009_v47  }
  0xcc   : > { %1053 = vst [vmem:[%s1229_s11 + $0x68] sm:$0xff] %v1029_v49   ;;  %v651_v11 = vadd.f32 %v650_v7, %v620_v1 }
  0xd0   : > { %v1273_v50 = vpop.f32.mrf.mxu2  ;;  %v1279_v55 = vpop.f32.mrf.mxu3 }
  0xd1   : > { %v447_v51 = vpop.f32.mrf.mxu0  ;;  %v1275_v52 = vpop.f32.mrf.mxu1 }
  0xd2   : > { %v974_v53 = vpack.c.bf16 %v447_v51, %v445_v45  ;;  %v994_v54 = vpack.c.bf16 %v1275_v52, %v1263_v46  ;;  %v621_v8 = vmul.f32 %v447_v51, %v447_v51  ;;  %v583_v13 = vadd.f32 %v582_v10, %v447_v51 }
  0xd3   : > { %v635_v10 = vmul.f32 %v1261_v44, %v1261_v44 }
  0xd4   : > { %1042 = vst [vmem:[%s1229_s11 + $0x10] sm:$0xff] %v974_v53   ;;  %v652_v14 = vadd.f32 %v651_v11, %v621_v8 }
  0xd5   : > { %1046 = vst [vmem:[%s1229_s11 + $0x30] sm:$0xff] %v994_v54   ;;  %v628_v54 = vmul.f32 %v1263_v46, %v1263_v46 }
  0xd8   : > { %v1283_v63 = vpop.f32.mrf.mxu2  ;;  %v1287_v6 = vpop.f32.mrf.mxu3 }
  0xd9   : > { %v450_v2 = vpop.f32.mrf.mxu0  ;;  %v470_v3 = vpop.f32.mrf.mxu1  ;;  %v1014_v4 = vpack.c.bf16 %v1283_v63, %v1273_v50  ;;  %v1034_v9 = vpack.c.bf16 %v1287_v6, %v1279_v55 }
  0xda   : > { %v622_v12 = vmul.f32 %v450_v2, %v450_v2  ;;  %v584_v15 = vadd.f32 %v583_v13, %v450_v2  ;;  %v630_v61 = vmul.f32 %v470_v3, %v470_v3 }
  0xdb   : > { %1050 = vst [vmem:[%s1229_s11 + $0x50] sm:$0xff] %v1014_v4  }
  0xdc   : > { %1054 = vst [vmem:[%s1229_s11 + $0x70] sm:$0xff] %v1034_v9   ;;  %v653_v17 = vadd.f32 %v652_v14, %v622_v12 }
  0xe0   : > { %v490_v16 = vpop.f32.mrf.mxu2  ;;  %v1293_v24 = vpop.f32.mrf.mxu3 }
  0xe1   : > { %v452_v18 = vpop.f32.mrf.mxu0  ;;  %v472_v19 = vpop.f32.mrf.mxu1 }
  0xe2   : > { %v979_v20 = vpack.c.bf16 %v452_v18, %v450_v2  ;;  %v585_v21 = vadd.f32 %v584_v15, %v452_v18  ;;  %v623_v22 = vmul.f32 %v452_v18, %v452_v18  ;;  %v999_v23 = vpack.c.bf16 %v472_v19, %v470_v3 }
  0xe3   : > { %v631_v1 = vmul.f32 %v472_v19, %v472_v19  ;;  %v632_v2 = vmul.f32 %v1222_v26, %v1222_v26  ;;  %v637_v15 = vmul.f32 %v1283_v63, %v1283_v63 }
  0xe4   : > { %1043 = vst [vmem:[%s1229_s11 + $0x18] sm:$0xff] %v979_v20   ;;  %v586_v29 = vadd.f32 %v585_v21, %v1220_v25  ;;  %v654_v30 = vadd.f32 %v653_v17, %v623_v22  ;;  %v627_v25 = vmul.f32 %v1253_v40, %v1253_v40 }
  0xe5   : > { %1047 = vst [vmem:[%s1229_s11 + $0x38] sm:$0xff] %v999_v23  }
  0xe6   : > { %v587_v35 = vadd.f32 %v586_v29, %v1231_v28  ;;  %v655_v37 = vadd.f32 %v654_v30, %v624_v27 }
  0xe8   : > { %v588_v41 = vadd.f32 %v587_v35, %v1241_v34  ;;  %v656_v42 = vadd.f32 %v655_v37, %v625_v33  ;;  %v492_v45 = vpop.f32.mrf.mxu2  ;;  %v512_v53 = vpop.f32.mrf.mxu3  ;;  %v629_v34 = vmul.f32 %v1275_v52, %v1275_v52  ;;  %v643_v35 = vmul.f32 %v1267_v48, %v1267_v48 }
  0xe9   : > { %v1019_v47 = vpack.c.bf16 %v492_v45, %v490_v16  ;;  %v1039_v28 = vpack.c.bf16 %v512_v53, %v1293_v24  ;;  %v639_v22 = vmul.f32 %v492_v45, %v492_v45 }
  0xea   : > { %v657_v49 = vadd.f32 %v656_v42, %v626_v39  ;;  %v589_v51 = vadd.f32 %v588_v41, %v1253_v40 }
  0xeb   : > { %1051 = vst [vmem:[%s1229_s11 + $0x58] sm:$0xff] %v1019_v47  }
  0xec   : > { %v590_v56 = vadd.f32 %v589_v51, %v1263_v46  ;;  %v658_v57 = vadd.f32 %v657_v49, %v627_v25  ;;  %1055 = vst [vmem:[%s1229_s11 + $0x78] sm:$0xff] %v1039_v28   ;;  %v646_v49 = vmul.f32 %v1293_v24, %v1293_v24  ;;  %v647_v28 = vmul.f32 %v512_v53, %v512_v53 }
  0xee   : > { %v591_v58 = vadd.f32 %v590_v56, %v1275_v52  ;;  %v659_v59 = vadd.f32 %v658_v57, %v628_v54  ;;  %v634_v52 = vmul.f32 %v1251_v38, %v1251_v38 }
  0xf0   : > { %v592_v60 = vadd.f32 %v591_v58, %v470_v3  ;;  %v660_v40 = vadd.f32 %v659_v59, %v629_v34 }
  0xf2   : > { %v661_v62 = vadd.f32 %v660_v40, %v630_v61  ;;  %v593_v0 = vadd.f32 %v592_v60, %v472_v19  ;;  %v638_v19 = vmul.f32 %v490_v16, %v490_v16 }
  0xf4   : > { %v594_v4 = vadd.f32 %v593_v0, %v1222_v26  ;;  %v662_v46 = vadd.f32 %v661_v62, %v631_v1  ;;  %v636_v26 = vmul.f32 %v1273_v50, %v1273_v50 }
  0xf6   : > { %v595_v7 = vadd.f32 %v594_v4, %v1239_v32  ;;  %v663_v8 = vadd.f32 %v662_v46, %v632_v2 }
  0xf8   : > { %v596_v3 = vadd.f32 %v595_v7, %v1251_v38  ;;  %v664_v9 = vadd.f32 %v663_v8, %v633_v5 }
  0xfa   : > { %v665_v11 = vadd.f32 %v664_v9, %v634_v52  ;;  %v597_v12 = vadd.f32 %v596_v3, %v1261_v44  ;;  %v640_v44 = vmul.f32 %v1235_v31, %v1235_v31 }
  0xfc   : > { %v598_v13 = vadd.f32 %v597_v12, %v1273_v50  ;;  %v666_v14 = vadd.f32 %v665_v11, %v635_v10  ;;  %v641_v50 = vmul.f32 %v1245_v36, %v1245_v36 }
  0xfe   : > { %v599_v32 = vadd.f32 %v598_v13, %v1283_v63  ;;  %v667_v17 = vadd.f32 %v666_v14, %v636_v26  ;;  %v642_v63 = vmul.f32 %v1257_v43, %v1257_v43 }
 0x100   : > { %v668_v38 = vadd.f32 %v667_v17, %v637_v15  ;;  %v600_v18 = vadd.f32 %v599_v32, %v490_v16 }
 0x102   : > { %v669_v20 = vadd.f32 %v668_v38, %v638_v19  ;;  %v601_v21 = vadd.f32 %v600_v18, %v492_v45  ;;  %v645_v45 = vmul.f32 %v1287_v6, %v1287_v6 }
 0x104   : > { %v602_v23 = vadd.f32 %v601_v21, %v1235_v31  ;;  %v670_v27 = vadd.f32 %v669_v20, %v639_v22  ;;  %v644_v31 = vmul.f32 %v1279_v55, %v1279_v55 }
 0x106   : > { %v603_v29 = vadd.f32 %v602_v23, %v1245_v36  ;;  %v671_v30 = vadd.f32 %v670_v27, %v640_v44 }
 0x108   : > { %v604_v16 = vadd.f32 %v603_v29, %v1257_v43  ;;  %v672_v33 = vadd.f32 %v671_v30, %v641_v50 }
 0x10a   : > { %v673_v37 = vadd.f32 %v672_v33, %v642_v63  ;;  %v605_v39 = vadd.f32 %v604_v16, %v1267_v48 }
 0x10c   : > { %v606_v41 = vadd.f32 %v605_v39, %v1279_v55  ;;  %v674_v42 = vadd.f32 %v673_v37, %v643_v35 }
 0x10e   : > { %v607_v36 = vadd.f32 %v606_v41, %v1287_v6  ;;  %v675_v47 = vadd.f32 %v674_v42, %v644_v31 }
 0x110   : > { %v676_v43 = vadd.f32 %v675_v47, %v645_v45  ;;  %v608_v25 = vadd.f32 %v607_v36, %v1293_v24 }
 0x112   : > { %v677_v48 = vadd.f32 %v676_v43, %v646_v49  ;;  %v609_v51 = vadd.f32 %v608_v25, %v512_v53 }
 0x114   : > { %v610_v54 = vrot.slane %v609_v51, 4  ;;  %v678_v56 = vadd.f32 %v677_v48, %v647_v28 }
 0x116   : > { %v611_v55 = vadd.f32 %v610_v54, %v609_v51  ;;  %v679_v57 = vrot.slane %v678_v56, 4 }
 0x118   : > { %v612_v34 = vrot.slane %v611_v55, 2  ;;  %v680_v58 = vadd.f32 %v679_v57, %v678_v56 }
 0x11a   : > { %v613_v59 = vadd.f32 %v612_v34, %v611_v55  ;;  %v681_v60 = vrot.slane %v680_v58, 2 }
 0x11c   : > { %v614_v6 = vrot.slane %v613_v59, 1  ;;  %v682_v61 = vadd.f32 %v681_v60, %v680_v58 }
 0x11e   : > { %v683_v40 = vrot.slane %v682_v61, 1  ;;  %v615_v62 = vadd.f32 %v614_v6, %v613_v59 }
 0x120   : > { %v684_v0 = vadd.f32 %v683_v40, %v682_v61 }
 0x122   : > { %v686_v24 = vsel %vm685_vm0, %v615_v62, %v684_v0 }
 0x123   : > { %v688_v53 = vsel %vm687_vm1, %v686_v24, 0.0 }
 0x124   : > { %689 = vst [vmem:[%s233_s19] sm:$0xff] %v688_v53 }
 0x125 PF: > { %s14_s14 = sadd.s32 1, %s1126_s14   ;;  %s1374_s12 = smov %s1122_s13 }
 0x126   : > { %p11_p5 = scmp.ge.s32.totalorder %s14_s14, 4   ;;  %s1375_s13 = smov %s1377_s15 }
 0x128   :  { %13 = sbr.rel (!%p11_p5) target bundleno = 2 (0x2), region = 70 }

// kernel: bottleneck_forward.6
= control target key start
LH: loop header
LB: loop body
LE: loop exit
PB: predicated region body
PF: predicated region fallthrough
CT: control target
= control target key end

     0   :  { %s1233_s15 = smov 0   ;;  %s1235_s16 = smov 0   ;;  %s1525_s0 = inlined_call_operand.vmem [shape: bf16[2,16,16,128], index: 0, kind: input, shape index: {}]   ;;  %s1526_s1 = inlined_call_operand.vmem [shape: f32[2,128], index: 1, kind: input, shape index: {}]   ;;  %s1527_s2 = inlined_call_operand.vmem [shape: bf16[128,128], index: 2, kind: input, shape index: {}]   ;;  %s1528_s3 = inlined_call_operand.vmem [shape: bf16[2,16,16,128], index: 3, kind: output, shape index: {0}]   ;;  %s1529_s4 = inlined_call_operand.vmem [shape: f32[2,1,8,128], index: 4, kind: output, shape index: {1}]  }
   0x1   :  { %s1237_s17 = smov 0  }
   0x2 LB: > { %s27_s18 = sadd.s32 1, %s1202_s16  ;;  %p910_p0 = scmp.ge.s32.totalorder %s1206_s17, 1  ;;  %s1206_s17 = sphi %s1237_s17, %s15_s17   ;;  %s1202_s16 = sphi %s1235_s16, %s1531_s16   ;;  %s1198_s15 = sphi %s1233_s15, %s1530_s15  }
   0x3   : > { %p29_p1 = scmp.ge.s32.totalorder %s27_s18, 2  ;;  %p189_p2 = scmp.lt.s32.totalorder %s1206_s17, 3 }
   0x5   : > { %s1533_s18 = smov (%p29_p1, %s27_s18), 0  ;;  %p190_p3 = pnand %p910_p0, %p189_p2 }
   0x6   : > { %p233_p4 = scmp.lt.s32.totalorder (!%p190_p3), %s1198_s15, 1 }
   0x7   : > { %193 = sbr.rel (%p190_p3) target bundleno = 293 (0x125), region = 32 }
   0xc   : > { %v959_v0 = vld [vmem:[%s1527_s2 + $0x38] sm:$0xff]  ;;  %v958_v1 = vld [vmem:[%s1527_s2 + $0x30] sm:$0xff]  ;;  %s1535_s15 = smov (!%p233_p4, %s1198_s15), 1  ;;  %v957_v2 = vld [vmem:[%s1527_s2 + $0x28] sm:$0xff]  ;;  %vm764_vm0 = vcmask 1040384   ;;  %vm766_vm1 = vcmask 1041408  }
   0xd   : > { %505 = vmatpush.bf16.msra.mxu0 %v959_v0  ;;  %1134 = vmatpush.bf16.msra.mxu1 %v959_v0  ;;  %s950_s23 = sshll.u32 %s1535_s15, 7  ;;  %v956_v4 = vld [vmem:[%s1527_s2 + $0x20] sm:$0xff]  ;;  %v955_v12 = vld [vmem:[%s1527_s2 + $0x18] sm:$0xff]  ;;  %v954_v20 = vld [vmem:[%s1527_s2 + $0x10] sm:$0xff] }
   0xe   : > { %1135 = vmatpush.bf16.msra.mxu2 %v959_v0  ;;  %1136 = vmatpush.bf16.msra.mxu3 %v959_v0  ;;  %s1268_s28 = scalar_lea.vmem %s1525_s0, %s950_s23  ;;  %v1279_v9 = vld [vmem:[%s1526_s1] ss:$0 sm:$0xff]  ;;  %v1289_v17 = vld [vmem:[%s1526_s1 + $0x1] ss:$0 sm:$0xff]  ;;  %v953_v27 = vld [vmem:[%s1527_s2 + $0x8] sm:$0xff]  ;;  %s1384_s24 = scalar_lea.vmem %s1528_s3, %s950_s23 }
   0xf   : > { %v961_v3 = vld [vmem:[%s1268_s28] sm:$0xff]   ;;  %v1104_v35 = vld [vmem:[%s1268_s28 + $0x8] sm:$0xff]   ;;  %s915_s23 = sshll.u32 %s1535_s15, 3 }
  0x10   : > { %v1107_v5 = vld [vmem:[%s1268_s28 + $0x20] sm:$0xff]   ;;  %v962_v7 = vunpack.c.l.bf16 %v961_v3  ;;  %v963_v8 = vunpack.c.h.bf16 %v961_v3  ;;  %v1108_v36 = vld [vmem:[%s1268_s28 + $0x28] sm:$0xff]   ;;  %v966_v45 = vunpack.c.l.bf16 %v1104_v35  ;;  %v967_v46 = vunpack.c.h.bf16 %v1104_v35  ;;  %s260_s27 = scalar_lea.vmem %s1529_s4, %s915_s23 }
  0x11   : > { %506 = vmatpush.bf16.msra.mxu0 %v958_v1  ;;  %1137 = vmatpush.bf16.msra.mxu1 %v958_v1  ;;  %v1111_v6 = vld [vmem:[%s1268_s28 + $0x40] sm:$0xff]   ;;  %v978_v10 = vunpack.c.l.bf16 %v1107_v5  ;;  %v979_v11 = vunpack.c.h.bf16 %v1107_v5  ;;  %v1112_v42 = vld [vmem:[%s1268_s28 + $0x48] sm:$0xff]   ;;  %v982_v47 = vunpack.c.l.bf16 %v1108_v36  ;;  %v983_v48 = vunpack.c.h.bf16 %v1108_v36 }
  0x12   : > { %1138 = vmatpush.bf16.msra.mxu2 %v958_v1  ;;  %1139 = vmatpush.bf16.msra.mxu3 %v958_v1  ;;  %v994_v13 = vunpack.c.l.bf16 %v1111_v6  ;;  %v995_v14 = vunpack.c.h.bf16 %v1111_v6  ;;  %v327_v15 = vmul.f32 %v1279_v9, %v962_v7  ;;  %v328_v16 = vmul.f32 %v1279_v9, %v963_v8  ;;  %v1115_v32 = vld [vmem:[%s1268_s28 + $0x60] sm:$0xff]  }
  0x13   : > { %v335_v18 = vmul.f32 %v1279_v9, %v978_v10  ;;  %v336_v19 = vmul.f32 %v1279_v9, %v979_v11  ;;  %v1010_v37 = vunpack.c.l.bf16 %v1115_v32  ;;  %v1011_v38 = vunpack.c.h.bf16 %v1115_v32  ;;  %v952_v39 = vld [vmem:[%s1527_s2] sm:$0xff] }
  0x14   : > { %v343_v21 = vmul.f32 %v1279_v9, %v994_v13  ;;  %v344_v22 = vmul.f32 %v1279_v9, %v995_v14  ;;  %v361_v23 = vadd.f32 %v1289_v17, %v327_v15  ;;  %v362_v24 = vadd.f32 %v1289_v17, %v328_v16  ;;  %v1105_v13 = vld [vmem:[%s1268_s28 + $0x10] sm:$0xff]  }
  0x15   : > { %507 = vmatpush.bf16.msra.mxu0 %v957_v2  ;;  %1140 = vmatpush.bf16.msra.mxu1 %v957_v2  ;;  %v369_v25 = vadd.f32 %v1289_v17, %v335_v18  ;;  %v370_v26 = vadd.f32 %v1289_v17, %v336_v19  ;;  %v351_v43 = vmul.f32 %v1279_v9, %v1010_v37  ;;  %v998_v54 = vunpack.c.l.bf16 %v1112_v42  ;;  %v1109_v19 = vld [vmem:[%s1268_s28 + $0x30] sm:$0xff]  }
  0x16   : > { %1141 = vmatpush.bf16.msra.mxu2 %v957_v2  ;;  %1142 = vmatpush.bf16.msra.mxu3 %v957_v2  ;;  %v377_v28 = vadd.f32 %v1289_v17, %v343_v21  ;;  %v378_v29 = vadd.f32 %v1289_v17, %v344_v22  ;;  %v393_v30 = vmax.f32 %v361_v23, 0.0  ;;  %v394_v31 = vmax.f32 %v362_v24, 0.0 }
  0x17   : > { %v401_v33 = vmax.f32 %v369_v25, 0.0  ;;  %v402_v34 = vmax.f32 %v370_v26, 0.0  ;;  %v352_v44 = vmul.f32 %v1279_v9, %v1011_v38  ;;  %v385_v51 = vadd.f32 %v1289_v17, %v351_v43  ;;  %v1117_v43 = vld [vmem:[%s1268_s28 + $0x70] sm:$0xff]  }
  0x18   : > { %v409_v40 = vmax.f32 %v377_v28, 0.0  ;;  %v410_v41 = vmax.f32 %v378_v29, 0.0  ;;  %v425_v49 = vpack.c.bf16 %v394_v31, %v393_v30  ;;  %v999_v55 = vunpack.c.h.bf16 %v1112_v42 }
  0x19   : > { %508 = vmatpush.bf16.msra.mxu0 %v956_v4  ;;  %1143 = vmatpush.bf16.msra.mxu1 %v956_v4  ;;  %v429_v50 = vpack.c.bf16 %v402_v34, %v401_v33  ;;  %v386_v52 = vadd.f32 %v1289_v17, %v352_v44  ;;  %v417_v56 = vmax.f32 %v385_v51, 0.0  ;;  %v329_v58 = vmul.f32 %v1279_v9, %v966_v45 }
  0x1a   : > { %1144 = vmatpush.bf16.msra.mxu2 %v956_v4  ;;  %1145 = vmatpush.bf16.msra.mxu3 %v956_v4  ;;  %v433_v53 = vpack.c.bf16 %v410_v41, %v409_v40  ;;  %v330_v59 = vmul.f32 %v1279_v9, %v967_v46  ;;  %v337_v60 = vmul.f32 %v1279_v9, %v982_v47  ;;  %v970_v25 = vunpack.c.l.bf16 %v1105_v13 }
  0x1b   : > { %v418_v57 = vmax.f32 %v386_v52, 0.0  ;;  %v338_v61 = vmul.f32 %v1279_v9, %v983_v48  ;;  %v345_v63 = vmul.f32 %v1279_v9, %v998_v54  ;;  %v346_v0 = vmul.f32 %v1279_v9, %v999_v55 }
  0x1c   : > { %v363_v1 = vadd.f32 %v1289_v17, %v329_v58  ;;  %v364_v2 = vadd.f32 %v1289_v17, %v330_v59  ;;  %v371_v3 = vadd.f32 %v1289_v17, %v337_v60  ;;  %v971_v26 = vunpack.c.h.bf16 %v1105_v13  ;;  %v1106_v60 = vld [vmem:[%s1268_s28 + $0x18] sm:$0xff]  }
  0x1d   : > { %509 = vmatpush.bf16.msra.mxu0 %v955_v12  ;;  %1146 = vmatpush.bf16.msra.mxu1 %v955_v12  ;;  %v437_v62 = vpack.c.bf16 %v418_v57, %v417_v56  ;;  %v372_v4 = vadd.f32 %v1289_v17, %v338_v61  ;;  %v379_v5 = vadd.f32 %v1289_v17, %v345_v63  ;;  %v987_v28 = vunpack.c.h.bf16 %v1109_v19  ;;  %v1110_v63 = vld [vmem:[%s1268_s28 + $0x38] sm:$0xff]  }
  0x1e   : > { %1147 = vmatpush.bf16.msra.mxu2 %v955_v12  ;;  %1148 = vmatpush.bf16.msra.mxu3 %v955_v12  ;;  %v380_v6 = vadd.f32 %v1289_v17, %v346_v0  ;;  %v395_v7 = vmax.f32 %v363_v1, 0.0  ;;  %v396_v8 = vmax.f32 %v364_v2, 0.0  ;;  %v403_v10 = vmax.f32 %v371_v3, 0.0  ;;  %v1116_v12 = vld [vmem:[%s1268_s28 + $0x68] sm:$0xff]   ;;  %v1114_v0 = vld [vmem:[%s1268_s28 + $0x58] sm:$0xff]  }
  0x1f   : > { %v404_v11 = vmax.f32 %v372_v4, 0.0  ;;  %v1014_v14 = vunpack.c.l.bf16 %v1116_v12  ;;  %v1015_v15 = vunpack.c.h.bf16 %v1116_v12  ;;  %v411_v16 = vmax.f32 %v379_v5, 0.0  ;;  %v1118_v5 = vld [vmem:[%s1268_s28 + $0x78] sm:$0xff]  }
  0x20   : > { %v412_v18 = vmax.f32 %v380_v6, 0.0  ;;  %v426_v23 = vpack.c.bf16 %v396_v8, %v395_v7  ;;  %v331_v36 = vmul.f32 %v1279_v9, %v970_v25  ;;  %v332_v37 = vmul.f32 %v1279_v9, %v971_v26 }
  0x21   : > { %510 = vmatpush.bf16.msra.mxu0 %v954_v20  ;;  %1149 = vmatpush.bf16.msra.mxu1 %v954_v20  ;;  %v353_v21 = vmul.f32 %v1279_v9, %v1014_v14  ;;  %v354_v22 = vmul.f32 %v1279_v9, %v1015_v15  ;;  %v430_v24 = vpack.c.bf16 %v404_v11, %v403_v10  ;;  %v1018_v44 = vunpack.c.l.bf16 %v1117_v43 }
  0x22   : > { %1150 = vmatpush.bf16.msra.mxu2 %v954_v20  ;;  %1151 = vmatpush.bf16.msra.mxu3 %v954_v20  ;;  %v1113_v20 = vld [vmem:[%s1268_s28 + $0x50] sm:$0xff]   ;;  %v434_v31 = vpack.c.bf16 %v412_v18, %v411_v16  ;;  %v1019_v45 = vunpack.c.h.bf16 %v1117_v43  ;;  %v365_v46 = vadd.f32 %v1289_v17, %v331_v36  ;;  %v366_v47 = vadd.f32 %v1289_v17, %v332_v37 }
  0x23   : > { %v387_v29 = vadd.f32 %v1289_v17, %v353_v21  ;;  %v388_v30 = vadd.f32 %v1289_v17, %v354_v22  ;;  %v1002_v32 = vunpack.c.l.bf16 %v1113_v20  ;;  %v1003_v33 = vunpack.c.h.bf16 %v1113_v20 }
  0x24   : > { %v356_v51 = vmul.f32 %v1279_v9, %v1019_v45  ;;  %v397_v56 = vmax.f32 %v365_v46, 0.0  ;;  %v398_v57 = vmax.f32 %v366_v47, 0.0  ;;  %v974_v4 = vunpack.c.l.bf16 %v1106_v60 }
  0x25   : > { %511 = vmatpush.bf16.msra.mxu0 %v953_v27  ;;  %1152 = vmatpush.bf16.msra.mxu1 %v953_v27  ;;  %v419_v34 = vmax.f32 %v387_v29, 0.0  ;;  %v420_v35 = vmax.f32 %v388_v30, 0.0  ;;  %v347_v41 = vmul.f32 %v1279_v9, %v1002_v32  ;;  %v348_v42 = vmul.f32 %v1279_v9, %v1003_v33 }
  0x26   : > { %1153 = vmatpush.bf16.msra.mxu2 %v953_v27  ;;  %1154 = vmatpush.bf16.msra.mxu3 %v953_v27  ;;  %v986_v27 = vunpack.c.l.bf16 %v1109_v19  ;;  %v390_v55 = vadd.f32 %v1289_v17, %v356_v51  ;;  %v427_v3 = vpack.c.bf16 %v398_v57, %v397_v56  ;;  %v975_v7 = vunpack.c.h.bf16 %v1106_v60 }
  0x27   : > { %v438_v40 = vpack.c.bf16 %v420_v35, %v419_v34  ;;  %v381_v52 = vadd.f32 %v1289_v17, %v347_v41  ;;  %v990_v8 = vunpack.c.l.bf16 %v1110_v63  ;;  %v991_v10 = vunpack.c.h.bf16 %v1110_v63 }
  0x28   : > { %v339_v38 = vmul.f32 %v1279_v9, %v986_v27  ;;  %v422_v2 = vmax.f32 %v390_v55, 0.0  ;;  %v1006_v12 = vunpack.c.l.bf16 %v1114_v0  ;;  %v1007_v13 = vunpack.c.h.bf16 %v1114_v0 }
  0x29   : > { %512 = vmatpush.bf16.msra.mxu0 %v952_v39  ;;  %1155 = vmatpush.bf16.msra.mxu1 %v952_v39  ;;  %v413_v61 = vmax.f32 %v381_v52, 0.0  ;;  %v1022_v15 = vunpack.c.l.bf16 %v1118_v5  ;;  %v1023_v16 = vunpack.c.h.bf16 %v1118_v5  ;;  %v333_v18 = vmul.f32 %v1279_v9, %v974_v4 }
  0x2a   : > { %1156 = vmatpush.bf16.msra.mxu2 %v952_v39  ;;  %1157 = vmatpush.bf16.msra.mxu3 %v952_v39  ;;  %v340_v39 = vmul.f32 %v1279_v9, %v987_v28  ;;  %v373_v48 = vadd.f32 %v1289_v17, %v339_v38  ;;  %v334_v19 = vmul.f32 %v1279_v9, %v975_v7 }
  0x2b   : > { %v341_v20 = vmul.f32 %v1279_v9, %v990_v8  ;;  %v342_v21 = vmul.f32 %v1279_v9, %v991_v10  ;;  %v349_v22 = vmul.f32 %v1279_v9, %v1006_v12  ;;  %v358_v25 = vmul.f32 %v1279_v9, %v1023_v16 }
  0x2c   : > { %513 = vmatmul.bf16.vlgmr.msra.gmra.mxu0 %v425_v49  ;;  %533 = vmatmul.bf16.vlgmr.msra.gmra.mxu1 %v429_v50  ;;  %v374_v49 = vadd.f32 %v1289_v17, %v340_v39  ;;  %v355_v50 = vmul.f32 %v1279_v9, %v1018_v44  ;;  %v405_v58 = vmax.f32 %v373_v48, 0.0  ;;  %v367_v26 = vadd.f32 %v1289_v17, %v333_v18 }
  0x2d   : > { %553 = vmatmul.bf16.vlgmr.msra.gmra.mxu2 %v433_v53  ;;  %573 = vmatmul.bf16.vlgmr.msra.gmra.mxu3 %v437_v62  ;;  %v382_v53 = vadd.f32 %v1289_v17, %v348_v42  ;;  %v368_v27 = vadd.f32 %v1289_v17, %v334_v19  ;;  %v375_v28 = vadd.f32 %v1289_v17, %v341_v20 }
  0x2e   : > { %v389_v54 = vadd.f32 %v1289_v17, %v355_v50  ;;  %v406_v59 = vmax.f32 %v374_v49, 0.0  ;;  %v376_v29 = vadd.f32 %v1289_v17, %v342_v21  ;;  %v383_v30 = vadd.f32 %v1289_v17, %v349_v22 }
  0x2f   : > { %v414_v62 = vmax.f32 %v382_v53, 0.0  ;;  %v392_v33 = vadd.f32 %v1289_v17, %v358_v25  ;;  %v399_v34 = vmax.f32 %v367_v26, 0.0  ;;  %v400_v35 = vmax.f32 %v368_v27, 0.0 }
  0x30   : > { %v421_v1 = vmax.f32 %v389_v54, 0.0  ;;  %v431_v6 = vpack.c.bf16 %v406_v59, %v405_v58  ;;  %v407_v36 = vmax.f32 %v375_v28, 0.0  ;;  %v415_v37 = vmax.f32 %v383_v30, 0.0 }
  0x31   : > { %v435_v11 = vpack.c.bf16 %v414_v62, %v413_v61  ;;  %v428_v41 = vpack.c.bf16 %v400_v35, %v399_v34 }
  0x32   : > { %v439_v14 = vpack.c.bf16 %v422_v2, %v421_v1 }
  0x3c   : > { %518 = vmatmul.bf16.gmra.mxu0 %v426_v23  ;;  %538 = vmatmul.bf16.gmra.mxu1 %v430_v24  ;;  %v350_v23 = vmul.f32 %v1279_v9, %v1007_v13  ;;  %v357_v24 = vmul.f32 %v1279_v9, %v1022_v15  ;;  %v408_v9 = vmax.f32 %v376_v29, 0.0 }
  0x3d   : > { %558 = vmatmul.bf16.gmra.mxu2 %v434_v31  ;;  %578 = vmatmul.bf16.gmra.mxu3 %v438_v40  ;;  %v424_v40 = vmax.f32 %v392_v33, 0.0 }
  0x3e   : > { %v384_v31 = vadd.f32 %v1289_v17, %v350_v23  ;;  %v391_v32 = vadd.f32 %v1289_v17, %v357_v24  ;;  %v432_v42 = vpack.c.bf16 %v408_v9, %v407_v36 }
  0x40   : > { %v416_v38 = vmax.f32 %v384_v31, 0.0  ;;  %v423_v39 = vmax.f32 %v391_v32, 0.0 }
  0x42   : > { %v436_v43 = vpack.c.bf16 %v416_v38, %v415_v37  ;;  %v440_v44 = vpack.c.bf16 %v424_v40, %v423_v39 }
  0x4c   : > { %523 = vmatmul.bf16.gmra.mxu0 %v427_v3  ;;  %543 = vmatmul.bf16.gmra.mxu1 %v431_v6 }
  0x4d   : > { %563 = vmatmul.bf16.gmra.mxu2 %v435_v11  ;;  %583 = vmatmul.bf16.gmra.mxu3 %v439_v14 }
  0x5c   : > { %528 = vmatmul.bf16.gmra.mxu0 %v428_v41  ;;  %548 = vmatmul.bf16.gmra.mxu1 %v432_v42 }
  0x5d   : > { %568 = vmatmul.bf16.gmra.mxu2 %v436_v43  ;;  %588 = vmatmul.bf16.gmra.mxu3 %v440_v44 }
  0xa9   : > { %v514_v45 = vpop.f32.mrf.mxu0  ;;  %v1375_v46 = vpop.f32.mrf.mxu1 }
  0xaa   : > { %v695_v14 = vmul.f32 %v514_v45, %v514_v45 }
  0xb0   : > { %v1377_v17 = vpop.f32.mrf.mxu2  ;;  %v1390_v51 = vpop.f32.mrf.mxu3 }
  0xb1   : > { %v516_v47 = vpop.f32.mrf.mxu0  ;;  %v1386_v48 = vpop.f32.mrf.mxu1 }
  0xb2   : > { %v1027_v49 = vpack.c.bf16 %v516_v47, %v514_v45  ;;  %v1047_v50 = vpack.c.bf16 %v1386_v48, %v1375_v46  ;;  %v696_v13 = vmul.f32 %v516_v47, %v516_v47  ;;  %v658_v16 = vadd.f32 %v516_v47, %v514_v45 }
  0xb3   : > { %v703_v47 = vmul.f32 %v1375_v46, %v1375_v46 }
  0xb4   : > { %1028 = vst [vmem:[%s1384_s24] sm:$0xff] %v1027_v49   ;;  %v727_v18 = vadd.f32 %v696_v13, %v695_v14 }
  0xb5   : > { %1122 = vst [vmem:[%s1384_s24 + $0x20] sm:$0xff] %v1047_v50  }
  0xb8   : > { %v1394_v52 = vpop.f32.mrf.mxu2  ;;  %v1400_v56 = vpop.f32.mrf.mxu3 }
  0xb9   : > { %v519_v53 = vpop.f32.mrf.mxu0  ;;  %v1396_v54 = vpop.f32.mrf.mxu1  ;;  %v1067_v55 = vpack.c.bf16 %v1394_v52, %v1377_v17  ;;  %v1087_v57 = vpack.c.bf16 %v1400_v56, %v1390_v51 }
  0xba   : > { %v697_v15 = vmul.f32 %v519_v53, %v519_v53  ;;  %v659_v20 = vadd.f32 %v658_v16, %v519_v53 }
  0xbb   : > { %1126 = vst [vmem:[%s1384_s24 + $0x40] sm:$0xff] %v1067_v55  }
  0xbc   : > { %1130 = vst [vmem:[%s1384_s24 + $0x60] sm:$0xff] %v1087_v57   ;;  %v728_v22 = vadd.f32 %v727_v18, %v697_v15 }
  0xc0   : > { %v1406_v58 = vpop.f32.mrf.mxu2  ;;  %v1412_v63 = vpop.f32.mrf.mxu3 }
  0xc1   : > { %v521_v59 = vpop.f32.mrf.mxu0  ;;  %v1408_v60 = vpop.f32.mrf.mxu1 }
  0xc2   : > { %v1032_v61 = vpack.c.bf16 %v521_v59, %v519_v53  ;;  %v1052_v62 = vpack.c.bf16 %v1408_v60, %v1396_v54  ;;  %v698_v19 = vmul.f32 %v521_v59, %v521_v59  ;;  %v660_v27 = vadd.f32 %v659_v20, %v521_v59 }
  0xc3   : > { %v704_v53 = vmul.f32 %v1386_v48, %v1386_v48  ;;  %v705_v59 = vmul.f32 %v1396_v54, %v1396_v54 }
  0xc4   : > { %1119 = vst [vmem:[%s1384_s24 + $0x8] sm:$0xff] %v1032_v61   ;;  %v729_v29 = vadd.f32 %v728_v22, %v698_v19 }
  0xc5   : > { %1123 = vst [vmem:[%s1384_s24 + $0x28] sm:$0xff] %v1052_v62  }
  0xc8   : > { %v1416_v0 = vpop.f32.mrf.mxu2  ;;  %v1422_v4 = vpop.f32.mrf.mxu3 }
  0xc9   : > { %v524_v1 = vpop.f32.mrf.mxu0  ;;  %v1418_v2 = vpop.f32.mrf.mxu1  ;;  %v1072_v3 = vpack.c.bf16 %v1416_v0, %v1406_v58  ;;  %v1092_v5 = vpack.c.bf16 %v1422_v4, %v1412_v63 }
  0xca   : > { %v699_v23 = vmul.f32 %v524_v1, %v524_v1  ;;  %v661_v32 = vadd.f32 %v660_v27, %v524_v1  ;;  %v712_v27 = vmul.f32 %v1394_v52, %v1394_v52 }
  0xcb   : > { %1127 = vst [vmem:[%s1384_s24 + $0x48] sm:$0xff] %v1072_v3  }
  0xcc   : > { %1131 = vst [vmem:[%s1384_s24 + $0x68] sm:$0xff] %v1092_v5   ;;  %v730_v33 = vadd.f32 %v729_v29, %v699_v23 }
  0xd0   : > { %v1428_v6 = vpop.f32.mrf.mxu2  ;;  %v1434_v12 = vpop.f32.mrf.mxu3 }
  0xd1   : > { %v526_v7 = vpop.f32.mrf.mxu0  ;;  %v1430_v8 = vpop.f32.mrf.mxu1 }
  0xd2   : > { %v1037_v10 = vpack.c.bf16 %v526_v7, %v524_v1  ;;  %v1057_v11 = vpack.c.bf16 %v1430_v8, %v1418_v2  ;;  %v700_v30 = vmul.f32 %v526_v7, %v526_v7  ;;  %v662_v35 = vadd.f32 %v661_v32, %v526_v7 }
  0xd3   : > { %v714_v32 = vmul.f32 %v1416_v0, %v1416_v0 }
  0xd4   : > { %1120 = vst [vmem:[%s1384_s24 + $0x10] sm:$0xff] %v1037_v10   ;;  %v731_v36 = vadd.f32 %v730_v33, %v700_v30 }
  0xd5   : > { %1124 = vst [vmem:[%s1384_s24 + $0x30] sm:$0xff] %v1057_v11   ;;  %v707_v11 = vmul.f32 %v1418_v2, %v1418_v2 }
  0xd8   : > { %v1438_v21 = vpop.f32.mrf.mxu2  ;;  %v1442_v28 = vpop.f32.mrf.mxu3 }
  0xd9   : > { %v529_v24 = vpop.f32.mrf.mxu0  ;;  %v549_v25 = vpop.f32.mrf.mxu1  ;;  %v1077_v26 = vpack.c.bf16 %v1438_v21, %v1428_v6  ;;  %v1097_v31 = vpack.c.bf16 %v1442_v28, %v1434_v12 }
  0xda   : > { %v701_v34 = vmul.f32 %v529_v24, %v529_v24  ;;  %v663_v9 = vadd.f32 %v662_v35, %v529_v24  ;;  %v709_v19 = vmul.f32 %v549_v25, %v549_v25 }
  0xdb   : > { %1128 = vst [vmem:[%s1384_s24 + $0x50] sm:$0xff] %v1077_v26  }
  0xdc   : > { %1132 = vst [vmem:[%s1384_s24 + $0x70] sm:$0xff] %v1097_v31   ;;  %v732_v38 = vadd.f32 %v731_v36, %v701_v34 }
  0xe0   : > { %v569_v37 = vpop.f32.mrf.mxu2  ;;  %v1448_v45 = vpop.f32.mrf.mxu3 }
  0xe1   : > { %v531_v39 = vpop.f32.mrf.mxu0  ;;  %v551_v40 = vpop.f32.mrf.mxu1 }
  0xe2   : > { %v1042_v41 = vpack.c.bf16 %v531_v39, %v529_v24  ;;  %v664_v42 = vadd.f32 %v663_v9, %v531_v39  ;;  %v702_v43 = vmul.f32 %v531_v39, %v531_v39  ;;  %v1062_v44 = vpack.c.bf16 %v551_v40, %v549_v25 }
  0xe3   : > { %v710_v23 = vmul.f32 %v551_v40, %v551_v40  ;;  %v711_v24 = vmul.f32 %v1377_v17, %v1377_v17  ;;  %v716_v9 = vmul.f32 %v1438_v21, %v1438_v21 }
  0xe4   : > { %1121 = vst [vmem:[%s1384_s24 + $0x18] sm:$0xff] %v1042_v41   ;;  %v665_v49 = vadd.f32 %v664_v42, %v1375_v46  ;;  %v733_v50 = vadd.f32 %v732_v38, %v702_v43  ;;  %v706_v46 = vmul.f32 %v1408_v60, %v1408_v60 }
  0xe5   : > { %1125 = vst [vmem:[%s1384_s24 + $0x38] sm:$0xff] %v1062_v44  }
  0xe6   : > { %v666_v55 = vadd.f32 %v665_v49, %v1386_v48  ;;  %v734_v57 = vadd.f32 %v733_v50, %v703_v47 }
  0xe8   : > { %v667_v61 = vadd.f32 %v666_v55, %v1396_v54  ;;  %v735_v62 = vadd.f32 %v734_v57, %v704_v53  ;;  %v571_v1 = vpop.f32.mrf.mxu2  ;;  %v591_v10 = vpop.f32.mrf.mxu3  ;;  %v708_v54 = vmul.f32 %v1430_v8, %v1430_v8  ;;  %v722_v55 = vmul.f32 %v1422_v4, %v1422_v4 }
  0xe9   : > { %v1082_v3 = vpack.c.bf16 %v571_v1, %v569_v37  ;;  %v1102_v48 = vpack.c.bf16 %v591_v10, %v1448_v45  ;;  %v718_v43 = vmul.f32 %v571_v1, %v571_v1 }
  0xea   : > { %v736_v5 = vadd.f32 %v735_v62, %v705_v59  ;;  %v668_v7 = vadd.f32 %v667_v61, %v1408_v60 }
  0xeb   : > { %1129 = vst [vmem:[%s1384_s24 + $0x58] sm:$0xff] %v1082_v3  }
  0xec   : > { %v669_v13 = vadd.f32 %v668_v7, %v1418_v2  ;;  %v737_v14 = vadd.f32 %v736_v5, %v706_v46  ;;  %1133 = vst [vmem:[%s1384_s24 + $0x78] sm:$0xff] %v1102_v48   ;;  %v725_v5 = vmul.f32 %v1448_v45, %v1448_v45  ;;  %v726_v48 = vmul.f32 %v591_v10, %v591_v10 }
  0xee   : > { %v670_v15 = vadd.f32 %v669_v13, %v1430_v8  ;;  %v738_v16 = vadd.f32 %v737_v14, %v707_v11  ;;  %v713_v8 = vmul.f32 %v1406_v58, %v1406_v58 }
  0xf0   : > { %v671_v18 = vadd.f32 %v670_v15, %v549_v25  ;;  %v739_v60 = vadd.f32 %v738_v16, %v708_v54 }
  0xf2   : > { %v740_v20 = vadd.f32 %v739_v60, %v709_v19  ;;  %v672_v22 = vadd.f32 %v671_v18, %v551_v40  ;;  %v717_v40 = vmul.f32 %v569_v37, %v569_v37 }
  0xf4   : > { %v673_v26 = vadd.f32 %v672_v22, %v1377_v17  ;;  %v741_v2 = vadd.f32 %v740_v20, %v710_v23  ;;  %v715_v17 = vmul.f32 %v1428_v6, %v1428_v6 }
  0xf6   : > { %v674_v29 = vadd.f32 %v673_v26, %v1394_v52  ;;  %v742_v30 = vadd.f32 %v741_v2, %v711_v24 }
  0xf8   : > { %v675_v25 = vadd.f32 %v674_v29, %v1406_v58  ;;  %v743_v31 = vadd.f32 %v742_v30, %v712_v27 }
  0xfa   : > { %v744_v33 = vadd.f32 %v743_v31, %v713_v8  ;;  %v676_v34 = vadd.f32 %v675_v25, %v1416_v0  ;;  %v719_v0 = vmul.f32 %v1390_v51, %v1390_v51 }
  0xfc   : > { %v677_v35 = vadd.f32 %v676_v34, %v1428_v6  ;;  %v745_v36 = vadd.f32 %v744_v33, %v714_v32  ;;  %v720_v6 = vmul.f32 %v1400_v56, %v1400_v56 }
  0xfe   : > { %v678_v52 = vadd.f32 %v677_v35, %v1438_v21  ;;  %v746_v38 = vadd.f32 %v745_v36, %v715_v17  ;;  %v721_v21 = vmul.f32 %v1412_v63, %v1412_v63 }
 0x100   : > { %v747_v58 = vadd.f32 %v746_v38, %v716_v9  ;;  %v679_v39 = vadd.f32 %v678_v52, %v569_v37 }
 0x102   : > { %v748_v41 = vadd.f32 %v747_v58, %v717_v40  ;;  %v680_v42 = vadd.f32 %v679_v39, %v571_v1  ;;  %v724_v1 = vmul.f32 %v1442_v28, %v1442_v28 }
 0x104   : > { %v681_v44 = vadd.f32 %v680_v42, %v1390_v51  ;;  %v749_v47 = vadd.f32 %v748_v41, %v718_v43  ;;  %v723_v51 = vmul.f32 %v1434_v12, %v1434_v12 }
 0x106   : > { %v682_v49 = vadd.f32 %v681_v44, %v1400_v56  ;;  %v750_v50 = vadd.f32 %v749_v47, %v719_v0 }
 0x108   : > { %v683_v37 = vadd.f32 %v682_v49, %v1412_v63  ;;  %v751_v53 = vadd.f32 %v750_v50, %v720_v6 }
 0x10a   : > { %v752_v57 = vadd.f32 %v751_v53, %v721_v21  ;;  %v684_v59 = vadd.f32 %v683_v37, %v1422_v4 }
 0x10c   : > { %v685_v61 = vadd.f32 %v684_v59, %v1434_v12  ;;  %v753_v62 = vadd.f32 %v752_v57, %v722_v55 }
 0x10e   : > { %v686_v56 = vadd.f32 %v685_v61, %v1442_v28  ;;  %v754_v3 = vadd.f32 %v753_v62, %v723_v51 }
 0x110   : > { %v755_v63 = vadd.f32 %v754_v3, %v724_v1  ;;  %v687_v46 = vadd.f32 %v686_v56, %v1448_v45 }
 0x112   : > { %v756_v4 = vadd.f32 %v755_v63, %v725_v5  ;;  %v688_v7 = vadd.f32 %v687_v46, %v591_v10 }
 0x114   : > { %v689_v11 = vrot.slane %v688_v7, 4  ;;  %v757_v13 = vadd.f32 %v756_v4, %v726_v48 }
 0x116   : > { %v690_v12 = vadd.f32 %v689_v11, %v688_v7  ;;  %v758_v14 = vrot.slane %v757_v13, 4 }
 0x118   : > { %v691_v54 = vrot.slane %v690_v12, 2  ;;  %v759_v15 = vadd.f32 %v758_v14, %v757_v13 }
 0x11a   : > { %v692_v16 = vadd.f32 %v691_v54, %v690_v12  ;;  %v760_v18 = vrot.slane %v759_v15, 2 }
 0x11c   : > { %v693_v28 = vrot.slane %v692_v16, 1  ;;  %v761_v19 = vadd.f32 %v760_v18, %v759_v15 }
 0x11e   : > { %v762_v60 = vrot.slane %v761_v19, 1  ;;  %v694_v20 = vadd.f32 %v693_v28, %v692_v16 }
 0x120   : > { %v763_v22 = vadd.f32 %v762_v60, %v761_v19 }
 0x122   : > { %v765_v45 = vsel %vm764_vm0, %v694_v20, %v763_v22 }
 0x123   : > { %v767_v10 = vsel %vm766_vm1, %v765_v45, 0.0 }
 0x124   : > { %768 = vst [vmem:[%s260_s27] sm:$0xff] %v767_v10 }
 0x125 PF: > { %s15_s17 = sadd.s32 1, %s1206_s17   ;;  %s1530_s15 = smov %s1202_s16 }
 0x126   : > { %p12_p5 = scmp.ge.s32.totalorder %s15_s17, 4   ;;  %s1531_s16 = smov %s1533_s18 }
 0x128   :  { %14 = sbr.rel (!%p12_p5) target bundleno = 2 (0x2), region = 74 }

// kernel: bottleneck_forward.7
= control target key start
LH: loop header
LB: loop body
LE: loop exit
PB: predicated region body
PF: predicated region fallthrough
CT: control target
= control target key end

     0   :  { %s1034_s12 = smov 0   ;;  %s1036_s13 = smov 0   ;;  %s1203_s0 = inlined_call_operand.vmem [shape: bf16[2,16,16,128], index: 0, kind: input, shape index: {}]   ;;  %s1204_s1 = inlined_call_operand.vmem [shape: bf16[2,16,16,128], index: 1, kind: input, shape index: {}]   ;;  %s1205_s2 = inlined_call_operand.vmem [shape: f32[2,128], index: 2, kind: input, shape index: {}]   ;;  %s1206_s3 = inlined_call_operand.vmem [shape: bf16[2,16,16,128], index: 3, kind: output, shape index: {}]  }
   0x1   :  { %s1038_s14 = smov 0  }
   0x2 LB: > { %s25_s15 = sadd.s32 1, %s1008_s13  ;;  %p699_p0 = scmp.ge.s32.totalorder %s1012_s14, 1  ;;  %s1012_s14 = sphi %s1038_s14, %s13_s14   ;;  %s1008_s13 = sphi %s1036_s13, %s1208_s13   ;;  %s1004_s12 = sphi %s1034_s12, %s1207_s12  }
   0x3   : > { %p27_p1 = scmp.ge.s32.totalorder %s25_s15, 2  ;;  %p177_p2 = scmp.lt.s32.totalorder %s1012_s14, 3 }
   0x5   : > { %s1210_s15 = smov (%p27_p1, %s25_s15), 0  ;;  %p178_p3 = pnand %p699_p0, %p177_p2 }
   0x6   : > { %p222_p4 = scmp.lt.s32.totalorder (!%p178_p3), %s1004_s12, 1 }
   0x7   : > { %181 = sbr.rel (%p178_p3) target bundleno = 75 (0x4b), region = 32 }
   0xc   : > { %s1212_s12 = smov (!%p222_p4, %s1004_s12), 1  ;;  %v1069_v0 = vld [vmem:[%s1205_s2] ss:$0 sm:$0xff]  ;;  %v1074_v1 = vld [vmem:[%s1205_s2 + $0x1] ss:$0 sm:$0xff] }
   0xd   : > { %s1052_s16 = sshll.u32 %s1212_s12, 7 }
   0xe   : > { %s1058_s19 = scalar_lea.vmem %s1203_s0, %s1052_s16  ;;  %s1064_s22 = scalar_lea.vmem %s1204_s1, %s1052_s16 }
   0xf   : > { %v712_v2 = vld [vmem:[%s1058_s19] sm:$0xff]   ;;  %v919_v4 = vld [vmem:[%s1058_s19 + $0x8] sm:$0xff]   ;;  %v920_v10 = vld [vmem:[%s1058_s19 + $0x10] sm:$0xff]   ;;  %s1103_s29 = scalar_lea.vmem %s1206_s3, %s1052_s16 }
  0x10   : > { %v776_v3 = vld [vmem:[%s1064_s22] sm:$0xff]   ;;  %v713_v5 = vunpack.c.l.bf16 %v712_v2  ;;  %v714_v6 = vunpack.c.h.bf16 %v712_v2  ;;  %v934_v9 = vld [vmem:[%s1064_s22 + $0x8] sm:$0xff]   ;;  %v935_v11 = vld [vmem:[%s1064_s22 + $0x10] sm:$0xff]   ;;  %v717_v12 = vunpack.c.l.bf16 %v919_v4  ;;  %v718_v13 = vunpack.c.h.bf16 %v919_v4 }
  0x11   : > { %v777_v7 = vunpack.c.l.bf16 %v776_v3  ;;  %v778_v8 = vunpack.c.h.bf16 %v776_v3  ;;  %v781_v14 = vunpack.c.l.bf16 %v934_v9  ;;  %v782_v15 = vunpack.c.h.bf16 %v934_v9  ;;  %v921_v20 = vld [vmem:[%s1058_s19 + $0x18] sm:$0xff]   ;;  %v922_v46 = vld [vmem:[%s1058_s19 + $0x20] sm:$0xff]   ;;  %v923_v56 = vld [vmem:[%s1058_s19 + $0x28] sm:$0xff]  }
  0x12   : > { %v320_v16 = vmul.f32 %v1069_v0, %v713_v5  ;;  %v321_v17 = vmul.f32 %v1069_v0, %v714_v6  ;;  %v721_v18 = vunpack.c.l.bf16 %v920_v10  ;;  %v722_v19 = vunpack.c.h.bf16 %v920_v10  ;;  %v936_v41 = vld [vmem:[%s1064_s22 + $0x18] sm:$0xff]   ;;  %v937_v51 = vld [vmem:[%s1064_s22 + $0x20] sm:$0xff]   ;;  %v938_v61 = vld [vmem:[%s1064_s22 + $0x28] sm:$0xff]  }
  0x13   : > { %v322_v21 = vmul.f32 %v1069_v0, %v717_v12  ;;  %v323_v22 = vmul.f32 %v1069_v0, %v718_v13  ;;  %v785_v23 = vunpack.c.l.bf16 %v935_v11  ;;  %v786_v24 = vunpack.c.h.bf16 %v935_v11  ;;  %v939_v9 = vld [vmem:[%s1064_s22 + $0x30] sm:$0xff]  }
  0x14   : > { %v354_v25 = vadd.f32 %v1074_v1, %v320_v16  ;;  %v355_v26 = vadd.f32 %v1074_v1, %v321_v17  ;;  %v324_v27 = vmul.f32 %v1069_v0, %v721_v18  ;;  %v325_v28 = vmul.f32 %v1069_v0, %v722_v19 }
  0x15   : > { %v356_v29 = vadd.f32 %v1074_v1, %v322_v21  ;;  %v357_v30 = vadd.f32 %v1074_v1, %v323_v22  ;;  %v725_v31 = vunpack.c.l.bf16 %v921_v20  ;;  %v726_v32 = vunpack.c.h.bf16 %v921_v20  ;;  %v925_v22 = vld [vmem:[%s1058_s19 + $0x38] sm:$0xff]  }
  0x16   : > { %v450_v33 = vadd.f32 %v777_v7, %v354_v25  ;;  %v451_v34 = vadd.f32 %v778_v8, %v355_v26  ;;  %v358_v35 = vadd.f32 %v1074_v1, %v324_v27  ;;  %v359_v36 = vadd.f32 %v1074_v1, %v325_v28  ;;  %v924_v8 = vld [vmem:[%s1058_s19 + $0x30] sm:$0xff]  }
  0x17   : > { %v452_v37 = vadd.f32 %v781_v14, %v356_v29  ;;  %v453_v38 = vadd.f32 %v782_v15, %v357_v30  ;;  %v326_v39 = vmul.f32 %v1069_v0, %v725_v31  ;;  %v327_v40 = vmul.f32 %v1069_v0, %v726_v32  ;;  %v940_v31 = vld [vmem:[%s1064_s22 + $0x38] sm:$0xff]  }
  0x18   : > { %v482_v42 = vmax.f32 %v450_v33, 0.0  ;;  %v483_v43 = vmax.f32 %v451_v34, 0.0  ;;  %v454_v44 = vadd.f32 %v785_v23, %v358_v35  ;;  %v455_v45 = vadd.f32 %v786_v24, %v359_v36 }
  0x19   : > { %v484_v47 = vmax.f32 %v452_v37, 0.0  ;;  %v485_v48 = vmax.f32 %v453_v38, 0.0  ;;  %v360_v49 = vadd.f32 %v1074_v1, %v326_v39  ;;  %v361_v50 = vadd.f32 %v1074_v1, %v327_v40  ;;  %v926_v40 = vld [vmem:[%s1058_s19 + $0x40] sm:$0xff]  }
  0x1a   : > { %v842_v52 = vpack.c.bf16 %v483_v43, %v482_v42  ;;  %v486_v53 = vmax.f32 %v454_v44, 0.0  ;;  %v487_v54 = vmax.f32 %v455_v45, 0.0  ;;  %v789_v55 = vunpack.c.l.bf16 %v936_v41 }
  0x1b   : > { %v847_v57 = vpack.c.bf16 %v485_v48, %v484_v47  ;;  %v790_v58 = vunpack.c.h.bf16 %v936_v41  ;;  %v729_v59 = vunpack.c.l.bf16 %v922_v46  ;;  %v730_v60 = vunpack.c.h.bf16 %v922_v46 }
  0x1c   : > { %843 = vst [vmem:[%s1103_s29] sm:$0xff] %v842_v52   ;;  %v852_v62 = vpack.c.bf16 %v487_v54, %v486_v53  ;;  %v456_v63 = vadd.f32 %v789_v55, %v360_v49  ;;  %v793_v2 = vunpack.c.l.bf16 %v937_v51  ;;  %v794_v3 = vunpack.c.h.bf16 %v937_v51  ;;  %v941_v49 = vld [vmem:[%s1064_s22 + $0x40] sm:$0xff]   ;;  %v927_v54 = vld [vmem:[%s1058_s19 + $0x48] sm:$0xff]  }
  0x1d   : > { %949 = vst [vmem:[%s1103_s29 + $0x8] sm:$0xff] %v847_v57   ;;  %v457_v4 = vadd.f32 %v790_v58, %v361_v50  ;;  %v328_v5 = vmul.f32 %v1069_v0, %v729_v59  ;;  %v329_v6 = vmul.f32 %v1069_v0, %v730_v60  ;;  %v733_v7 = vunpack.c.l.bf16 %v923_v56 }
  0x1e   : > { %950 = vst [vmem:[%s1103_s29 + $0x10] sm:$0xff] %v852_v62   ;;  %v488_v10 = vmax.f32 %v456_v63, 0.0  ;;  %v734_v11 = vunpack.c.h.bf16 %v923_v56  ;;  %v797_v12 = vunpack.c.l.bf16 %v938_v61  ;;  %v798_v13 = vunpack.c.h.bf16 %v938_v61  ;;  %v942_v63 = vld [vmem:[%s1064_s22 + $0x48] sm:$0xff]  }
  0x1f   : > { %v489_v14 = vmax.f32 %v457_v4, 0.0  ;;  %v362_v15 = vadd.f32 %v1074_v1, %v328_v5  ;;  %v363_v16 = vadd.f32 %v1074_v1, %v329_v6  ;;  %v330_v17 = vmul.f32 %v1069_v0, %v733_v7  ;;  %v928_v6 = vld [vmem:[%s1058_s19 + $0x50] sm:$0xff]  }
  0x20   : > { %v331_v18 = vmul.f32 %v1069_v0, %v734_v11  ;;  %v737_v19 = vunpack.c.l.bf16 %v924_v8  ;;  %v738_v20 = vunpack.c.h.bf16 %v924_v8  ;;  %v801_v21 = vunpack.c.l.bf16 %v939_v9  ;;  %v943_v11 = vld [vmem:[%s1064_s22 + $0x50] sm:$0xff]  }
  0x21   : > { %v857_v23 = vpack.c.bf16 %v489_v14, %v488_v10  ;;  %v458_v24 = vadd.f32 %v793_v2, %v362_v15  ;;  %v459_v25 = vadd.f32 %v794_v3, %v363_v16  ;;  %v364_v26 = vadd.f32 %v1074_v1, %v330_v17 }
  0x22   : > { %v365_v27 = vadd.f32 %v1074_v1, %v331_v18  ;;  %v332_v28 = vmul.f32 %v1069_v0, %v737_v19  ;;  %v333_v29 = vmul.f32 %v1069_v0, %v738_v20  ;;  %v802_v30 = vunpack.c.h.bf16 %v939_v9  ;;  %v929_v20 = vld [vmem:[%s1058_s19 + $0x58] sm:$0xff]  }
  0x23   : > { %951 = vst [vmem:[%s1103_s29 + $0x18] sm:$0xff] %v857_v23   ;;  %v490_v32 = vmax.f32 %v458_v24, 0.0  ;;  %v491_v33 = vmax.f32 %v459_v25, 0.0  ;;  %v460_v34 = vadd.f32 %v797_v12, %v364_v26  ;;  %v741_v35 = vunpack.c.l.bf16 %v925_v22 }
  0x24   : > { %v461_v36 = vadd.f32 %v798_v13, %v365_v27  ;;  %v366_v37 = vadd.f32 %v1074_v1, %v332_v28  ;;  %v367_v38 = vadd.f32 %v1074_v1, %v333_v29  ;;  %v742_v39 = vunpack.c.h.bf16 %v925_v22  ;;  %v944_v29 = vld [vmem:[%s1064_s22 + $0x58] sm:$0xff]  }
  0x25   : > { %v862_v41 = vpack.c.bf16 %v491_v33, %v490_v32  ;;  %v492_v42 = vmax.f32 %v460_v34, 0.0  ;;  %v334_v43 = vmul.f32 %v1069_v0, %v741_v35  ;;  %v805_v44 = vunpack.c.l.bf16 %v940_v31 }
  0x26   : > { %v493_v45 = vmax.f32 %v461_v36, 0.0  ;;  %v462_v46 = vadd.f32 %v801_v21, %v366_v37  ;;  %v463_v47 = vadd.f32 %v802_v30, %v367_v38  ;;  %v335_v48 = vmul.f32 %v1069_v0, %v742_v39  ;;  %v930_v38 = vld [vmem:[%s1058_s19 + $0x60] sm:$0xff]  }
  0x27   : > { %952 = vst [vmem:[%s1103_s29 + $0x20] sm:$0xff] %v862_v41   ;;  %v368_v50 = vadd.f32 %v1074_v1, %v334_v43  ;;  %v806_v51 = vunpack.c.h.bf16 %v940_v31  ;;  %v745_v52 = vunpack.c.l.bf16 %v926_v40  ;;  %v746_v53 = vunpack.c.h.bf16 %v926_v40  ;;  %v945_v43 = vld [vmem:[%s1064_s22 + $0x60] sm:$0xff]  }
  0x28   : > { %v867_v55 = vpack.c.bf16 %v493_v45, %v492_v42  ;;  %v494_v56 = vmax.f32 %v462_v46, 0.0  ;;  %v495_v57 = vmax.f32 %v463_v47, 0.0  ;;  %v369_v58 = vadd.f32 %v1074_v1, %v335_v48 }
  0x29   : > { %v464_v59 = vadd.f32 %v805_v44, %v368_v50  ;;  %v336_v60 = vmul.f32 %v1069_v0, %v745_v52  ;;  %v337_v61 = vmul.f32 %v1069_v0, %v746_v53  ;;  %v809_v62 = vunpack.c.l.bf16 %v941_v49  ;;  %v931_v52 = vld [vmem:[%s1058_s19 + $0x68] sm:$0xff]  }
  0x2a   : > { %953 = vst [vmem:[%s1103_s29 + $0x28] sm:$0xff] %v867_v55   ;;  %v872_v2 = vpack.c.bf16 %v495_v57, %v494_v56  ;;  %v465_v3 = vadd.f32 %v806_v51, %v369_v58  ;;  %v810_v4 = vunpack.c.h.bf16 %v941_v49  ;;  %v749_v5 = vunpack.c.l.bf16 %v927_v54 }
  0x2b   : > { %v496_v7 = vmax.f32 %v464_v59, 0.0  ;;  %v370_v8 = vadd.f32 %v1074_v1, %v336_v60  ;;  %v371_v9 = vadd.f32 %v1074_v1, %v337_v61  ;;  %v750_v10 = vunpack.c.h.bf16 %v927_v54  ;;  %v946_v61 = vld [vmem:[%s1064_s22 + $0x68] sm:$0xff]  }
  0x2c   : > { %954 = vst [vmem:[%s1103_s29 + $0x30] sm:$0xff] %v872_v2   ;;  %v497_v12 = vmax.f32 %v465_v3, 0.0  ;;  %v338_v13 = vmul.f32 %v1069_v0, %v749_v5  ;;  %v813_v14 = vunpack.c.l.bf16 %v942_v63  ;;  %v814_v15 = vunpack.c.h.bf16 %v942_v63 }
  0x2d   : > { %v466_v16 = vadd.f32 %v809_v62, %v370_v8  ;;  %v467_v17 = vadd.f32 %v810_v4, %v371_v9  ;;  %v339_v18 = vmul.f32 %v1069_v0, %v750_v10  ;;  %v753_v19 = vunpack.c.l.bf16 %v928_v6  ;;  %v932_v4 = vld [vmem:[%s1058_s19 + $0x70] sm:$0xff]  }
  0x2e   : > { %v877_v21 = vpack.c.bf16 %v497_v12, %v496_v7  ;;  %v372_v22 = vadd.f32 %v1074_v1, %v338_v13  ;;  %v754_v23 = vunpack.c.h.bf16 %v928_v6  ;;  %v817_v24 = vunpack.c.l.bf16 %v943_v11  ;;  %v947_v13 = vld [vmem:[%s1064_s22 + $0x70] sm:$0xff]  }
  0x2f   : > { %v498_v25 = vmax.f32 %v466_v16, 0.0  ;;  %v499_v26 = vmax.f32 %v467_v17, 0.0  ;;  %v373_v27 = vadd.f32 %v1074_v1, %v339_v18  ;;  %v340_v28 = vmul.f32 %v1069_v0, %v753_v19 }
  0x30   : > { %955 = vst [vmem:[%s1103_s29 + $0x38] sm:$0xff] %v877_v21   ;;  %v468_v30 = vadd.f32 %v813_v14, %v372_v22  ;;  %v341_v31 = vmul.f32 %v1069_v0, %v754_v23  ;;  %v818_v32 = vunpack.c.h.bf16 %v943_v11  ;;  %v757_v33 = vunpack.c.l.bf16 %v929_v20  ;;  %v933_v22 = vld [vmem:[%s1058_s19 + $0x78] sm:$0xff]  }
  0x31   : > { %v882_v34 = vpack.c.bf16 %v499_v26, %v498_v25  ;;  %v469_v35 = vadd.f32 %v814_v15, %v373_v27  ;;  %v374_v36 = vadd.f32 %v1074_v1, %v340_v28  ;;  %v758_v37 = vunpack.c.h.bf16 %v929_v20  ;;  %v948_v27 = vld [vmem:[%s1064_s22 + $0x78] sm:$0xff]  }
  0x32   : > { %v500_v39 = vmax.f32 %v468_v30, 0.0  ;;  %v375_v40 = vadd.f32 %v1074_v1, %v341_v31  ;;  %v342_v41 = vmul.f32 %v1069_v0, %v757_v33  ;;  %v821_v42 = vunpack.c.l.bf16 %v944_v29 }
  0x33   : > { %956 = vst [vmem:[%s1103_s29 + $0x40] sm:$0xff] %v882_v34   ;;  %v501_v44 = vmax.f32 %v469_v35, 0.0  ;;  %v470_v45 = vadd.f32 %v817_v24, %v374_v36  ;;  %v343_v46 = vmul.f32 %v1069_v0, %v758_v37  ;;  %v822_v47 = vunpack.c.h.bf16 %v944_v29 }
  0x34   : > { %v471_v48 = vadd.f32 %v818_v32, %v375_v40  ;;  %v376_v49 = vadd.f32 %v1074_v1, %v342_v41  ;;  %v761_v50 = vunpack.c.l.bf16 %v930_v38  ;;  %v762_v51 = vunpack.c.h.bf16 %v930_v38 }
  0x35   : > { %v887_v53 = vpack.c.bf16 %v501_v44, %v500_v39  ;;  %v502_v54 = vmax.f32 %v470_v45, 0.0  ;;  %v377_v55 = vadd.f32 %v1074_v1, %v343_v46  ;;  %v825_v56 = vunpack.c.l.bf16 %v945_v43 }
  0x36   : > { %v503_v57 = vmax.f32 %v471_v48, 0.0  ;;  %v472_v58 = vadd.f32 %v821_v42, %v376_v49  ;;  %v344_v59 = vmul.f32 %v1069_v0, %v761_v50  ;;  %v345_v60 = vmul.f32 %v1069_v0, %v762_v51 }
  0x37   : > { %957 = vst [vmem:[%s1103_s29 + $0x48] sm:$0xff] %v887_v53   ;;  %v473_v62 = vadd.f32 %v822_v47, %v377_v55  ;;  %v826_v63 = vunpack.c.h.bf16 %v945_v43  ;;  %v765_v2 = vunpack.c.l.bf16 %v931_v52  ;;  %v766_v3 = vunpack.c.h.bf16 %v931_v52 }
  0x38   : > { %v892_v5 = vpack.c.bf16 %v503_v57, %v502_v54  ;;  %v504_v6 = vmax.f32 %v472_v58, 0.0  ;;  %v378_v7 = vadd.f32 %v1074_v1, %v344_v59  ;;  %v379_v8 = vadd.f32 %v1074_v1, %v345_v60 }
  0x39   : > { %v505_v9 = vmax.f32 %v473_v62, 0.0  ;;  %v346_v10 = vmul.f32 %v1069_v0, %v765_v2  ;;  %v347_v11 = vmul.f32 %v1069_v0, %v766_v3  ;;  %v829_v12 = vunpack.c.l.bf16 %v946_v61 }
  0x3a   : > { %958 = vst [vmem:[%s1103_s29 + $0x50] sm:$0xff] %v892_v5   ;;  %v474_v14 = vadd.f32 %v825_v56, %v378_v7  ;;  %v475_v15 = vadd.f32 %v826_v63, %v379_v8  ;;  %v830_v16 = vunpack.c.h.bf16 %v946_v61  ;;  %v769_v17 = vunpack.c.l.bf16 %v932_v4 }
  0x3b   : > { %v897_v18 = vpack.c.bf16 %v505_v9, %v504_v6  ;;  %v380_v19 = vadd.f32 %v1074_v1, %v346_v10  ;;  %v381_v20 = vadd.f32 %v1074_v1, %v347_v11  ;;  %v770_v21 = vunpack.c.h.bf16 %v932_v4 }
  0x3c   : > { %v506_v23 = vmax.f32 %v474_v14, 0.0  ;;  %v507_v24 = vmax.f32 %v475_v15, 0.0  ;;  %v348_v25 = vmul.f32 %v1069_v0, %v769_v17  ;;  %v833_v26 = vunpack.c.l.bf16 %v947_v13 }
  0x3d   : > { %959 = vst [vmem:[%s1103_s29 + $0x58] sm:$0xff] %v897_v18   ;;  %v476_v28 = vadd.f32 %v829_v12, %v380_v19  ;;  %v477_v29 = vadd.f32 %v830_v16, %v381_v20  ;;  %v349_v30 = vmul.f32 %v1069_v0, %v770_v21  ;;  %v834_v31 = vunpack.c.h.bf16 %v947_v13 }
  0x3e   : > { %v902_v32 = vpack.c.bf16 %v507_v24, %v506_v23  ;;  %v382_v33 = vadd.f32 %v1074_v1, %v348_v25  ;;  %v773_v34 = vunpack.c.l.bf16 %v933_v22  ;;  %v774_v35 = vunpack.c.h.bf16 %v933_v22 }
  0x3f   : > { %v508_v36 = vmax.f32 %v476_v28, 0.0  ;;  %v509_v37 = vmax.f32 %v477_v29, 0.0  ;;  %v383_v38 = vadd.f32 %v1074_v1, %v349_v30  ;;  %v837_v39 = vunpack.c.l.bf16 %v948_v27 }
  0x40   : > { %960 = vst [vmem:[%s1103_s29 + $0x60] sm:$0xff] %v902_v32   ;;  %v478_v40 = vadd.f32 %v833_v26, %v382_v33  ;;  %v350_v41 = vmul.f32 %v1069_v0, %v773_v34  ;;  %v351_v42 = vmul.f32 %v1069_v0, %v774_v35  ;;  %v838_v43 = vunpack.c.h.bf16 %v948_v27 }
  0x41   : > { %v907_v44 = vpack.c.bf16 %v509_v37, %v508_v36  ;;  %v479_v45 = vadd.f32 %v834_v31, %v383_v38 }
  0x42   : > { %v510_v46 = vmax.f32 %v478_v40, 0.0  ;;  %v384_v47 = vadd.f32 %v1074_v1, %v350_v41  ;;  %v385_v48 = vadd.f32 %v1074_v1, %v351_v42 }
  0x43   : > { %961 = vst [vmem:[%s1103_s29 + $0x68] sm:$0xff] %v907_v44   ;;  %v511_v49 = vmax.f32 %v479_v45, 0.0 }
  0x44   : > { %v480_v50 = vadd.f32 %v837_v39, %v384_v47  ;;  %v481_v51 = vadd.f32 %v838_v43, %v385_v48 }
  0x45   : > { %v912_v52 = vpack.c.bf16 %v511_v49, %v510_v46 }
  0x46   : > { %v512_v53 = vmax.f32 %v480_v50, 0.0  ;;  %v513_v54 = vmax.f32 %v481_v51, 0.0 }
  0x47   : > { %962 = vst [vmem:[%s1103_s29 + $0x70] sm:$0xff] %v912_v52  }
  0x48   : > { %v917_v55 = vpack.c.bf16 %v513_v54, %v512_v53 }
  0x4a   : > { %963 = vst [vmem:[%s1103_s29 + $0x78] sm:$0xff] %v917_v55  }
  0x4b PF: > { %s13_s14 = sadd.s32 1, %s1012_s14   ;;  %s1207_s12 = smov %s1008_s13 }
  0x4c   : > { %p10_p5 = scmp.ge.s32.totalorder %s13_s14, 4   ;;  %s1208_s13 = smov %s1210_s15 }
  0x4e   :  { %12 = sbr.rel (!%p10_p5) target bundleno = 2 (0x2), region = 65 }

// kernel: bottleneck_forward.5
= control target key start
LH: loop header
LB: loop body
LE: loop exit
PB: predicated region body
PF: predicated region fallthrough
CT: control target
= control target key end

     0   :  { %s3151_s15 = smov 0   ;;  %s3153_s16 = smov 0   ;;  %s4202_s0 = inlined_call_operand.vmem [shape: bf16[2,16,16,128], index: 0, kind: input, shape index: {}]   ;;  %s4203_s1 = inlined_call_operand.vmem [shape: f32[2,128], index: 1, kind: input, shape index: {}]   ;;  %s4204_s2 = inlined_call_operand.vmem [shape: bf16[1152,128], index: 2, kind: input, shape index: {}]   ;;  %s4205_s3 = inlined_call_operand.vmem [shape: bf16[2,16,16,128], index: 3, kind: output, shape index: {0}]   ;;  %s4206_s4 = inlined_call_operand.vmem [shape: f32[2,1,8,128], index: 4, kind: output, shape index: {1}]  }
   0x1   :  { %s3155_s17 = smov 0  }
   0x2 LB: > { %s27_s18 = sadd.s32 1, %s3119_s16  ;;  %p2506_p0 = scmp.ge.s32.totalorder %s3123_s17, 1  ;;  %s3123_s17 = sphi %s3155_s17, %s15_s17   ;;  %s3119_s16 = sphi %s3153_s16, %s4348_s16   ;;  %s3115_s15 = sphi %s3151_s15, %s4347_s15  }
   0x3   : > { %p29_p1 = scmp.ge.s32.totalorder %s27_s18, 2  ;;  %p189_p2 = scmp.lt.s32.totalorder %s3123_s17, 3 }
   0x5   : > { %s4350_s18 = smov (%p29_p1, %s27_s18), 0  ;;  %p190_p3 = pnand %p2506_p0, %p189_p2 }
   0x7   : > { %193 = sbr.rel (%p190_p3) target bundleno = 779 (0x30b), region = 32 }
   0xc   : > { %v2835_v0 = vld [vmem:[%s4204_s2 + $0xf8] sm:$0xff]  ;;  %p233_p4 = scmp.lt.s32.totalorder %s3115_s15, 1  ;;  %v2834_v1 = vld [vmem:[%s4204_s2 + $0xf0] sm:$0xff]  ;;  %v2833_v2 = vld [vmem:[%s4204_s2 + $0xe8] sm:$0xff]  ;;  %vm690_vm0 = vcmask 1040384   ;;  %vm761_vm3 = vcmask 1047552  }
   0xd   : > { %1021 = vmatpush.bf16.msra.mxu0 %v2835_v0  ;;  %3050 = vmatpush.bf16.msra.mxu1 %v2835_v0  ;;  %v3191_v3 = vld [vmem:[%s4203_s1] ss:$0 sm:$0xff]  ;;  %v3199_v9 = vld [vmem:[%s4203_s1 + $0x1] ss:$0 sm:$0xff]  ;;  %vm691_vm1 = vsmask.f32 256 }
   0xe   : > { %s4352_s15 = smov (!%p233_p4, %s3115_s15), 1  ;;  %3051 = vmatpush.bf16.msra.mxu2 %v2835_v0  ;;  %3052 = vmatpush.bf16.msra.mxu3 %v2835_v0  ;;  %v2832_v22 = vld [vmem:[%s4204_s2 + $0xe0] sm:$0xff]  ;;  %v2831_v39 = vld [vmem:[%s4204_s2 + $0xd8] sm:$0xff]  ;;  %v2830_v57 = vld [vmem:[%s4204_s2 + $0xd0] sm:$0xff]  ;;  %vm762_vm4 = vsmask.f32 7424 }
   0xf   : > { %s2802_s23 = sshll.u32 %s4352_s15, 7  ;;  %vm3259_vm2 = vmand %vm690_vm0, %vm691_vm1  ;;  %vm2362_vm6 = vcmask 1041408  }
  0x10   : > { %s3186_s28 = scalar_lea.vmem %s4202_s0, %s2802_s23  ;;  %vm3627_vm5 = vmand %vm761_vm3, %vm762_vm4  ;;  %s4116_s29 = scalar_lea.vmem %s4205_s3, %s2802_s23 }
  0x11   : > { %1022 = vmatpush.bf16.msra.mxu0 %v2834_v1  ;;  %3053 = vmatpush.bf16.msra.mxu1 %v2834_v1  ;;  %v2877_v4 = vld [vmem:[%s3186_s28] sm:$0xff]   ;;  %v3203_v13 = vld [vmem:[%s3186_s28 + $0x8] sm:$0xff]   ;;  %s2511_s23 = sshll.u32 %s4352_s15, 3 }
  0x12   : > { %v3023_v5 = vld [vmem:[%s3186_s28 + $0x20] sm:$0xff]   ;;  %3054 = vmatpush.bf16.msra.mxu2 %v2834_v1  ;;  %3055 = vmatpush.bf16.msra.mxu3 %v2834_v1  ;;  %v2878_v7 = vunpack.c.l.bf16 %v2877_v4  ;;  %v2879_v8 = vunpack.c.h.bf16 %v2877_v4  ;;  %v2882_v26 = vunpack.c.l.bf16 %v3203_v13  ;;  %v2883_v30 = vunpack.c.h.bf16 %v3203_v13  ;;  %v3024_v56 = vld [vmem:[%s3186_s28 + $0x28] sm:$0xff]   ;;  %s260_s6 = scalar_lea.vmem %s4206_s4, %s2511_s23 }
  0x13   : > { %v3027_v6 = vld [vmem:[%s3186_s28 + $0x40] sm:$0xff]   ;;  %v2894_v10 = vunpack.c.l.bf16 %v3023_v5  ;;  %v2895_v11 = vunpack.c.h.bf16 %v3023_v5 }
  0x14   : > { %v3031_v12 = vld [vmem:[%s3186_s28 + $0x60] sm:$0xff]   ;;  %v2910_v14 = vunpack.c.l.bf16 %v3027_v6  ;;  %v2911_v15 = vunpack.c.h.bf16 %v3027_v6  ;;  %v329_v18 = vmul.f32 %v3191_v3, %v2878_v7  ;;  %v330_v19 = vmul.f32 %v3191_v3, %v2879_v8 }
  0x15   : > { %v2926_v16 = vunpack.c.l.bf16 %v3031_v12  ;;  %v2927_v17 = vunpack.c.h.bf16 %v3031_v12  ;;  %v337_v20 = vmul.f32 %v3191_v3, %v2894_v10  ;;  %v338_v21 = vmul.f32 %v3191_v3, %v2895_v11  ;;  %1023 = vmatpush.bf16.msra.mxu0 %v2833_v2  ;;  %3056 = vmatpush.bf16.msra.mxu1 %v2833_v2  ;;  %v2829_v12 = vld [vmem:[%s4204_s2 + $0xc8] sm:$0xff] }
  0x16   : > { %v345_v23 = vmul.f32 %v3191_v3, %v2910_v14  ;;  %v346_v24 = vmul.f32 %v3191_v3, %v2911_v15  ;;  %3057 = vmatpush.bf16.msra.mxu2 %v2833_v2  ;;  %3058 = vmatpush.bf16.msra.mxu3 %v2833_v2  ;;  %v362_v27 = vadd.f32 %v3199_v9, %v329_v18  ;;  %v2898_v6 = vunpack.c.l.bf16 %v3024_v56 }
  0x17   : > { %v353_v25 = vmul.f32 %v3191_v3, %v2926_v16  ;;  %v363_v28 = vadd.f32 %v3199_v9, %v330_v19  ;;  %v370_v29 = vadd.f32 %v3199_v9, %v337_v20  ;;  %v371_v31 = vadd.f32 %v3199_v9, %v338_v21  ;;  %v3028_v21 = vld [vmem:[%s3186_s28 + $0x48] sm:$0xff]  }
  0x18   : > { %v378_v32 = vadd.f32 %v3199_v9, %v345_v23  ;;  %v379_v33 = vadd.f32 %v3199_v9, %v346_v24  ;;  %v354_v34 = vmul.f32 %v3191_v3, %v2927_v17  ;;  %v394_v35 = vmax.f32 %v362_v27, 0.0 }
  0x19   : > { %v395_v36 = vmax.f32 %v363_v28, 0.0  ;;  %v402_v37 = vmax.f32 %v370_v29, 0.0  ;;  %v386_v38 = vadd.f32 %v3199_v9, %v353_v25  ;;  %1024 = vmatpush.bf16.msra.mxu0 %v2832_v22  ;;  %3059 = vmatpush.bf16.msra.mxu1 %v2832_v22  ;;  %v403_v40 = vmax.f32 %v371_v31, 0.0  ;;  %v2828_v31 = vld [vmem:[%s4204_s2 + $0xc0] sm:$0xff] }
  0x1a   : > { %v410_v41 = vmax.f32 %v378_v32, 0.0  ;;  %v411_v42 = vmax.f32 %v379_v33, 0.0  ;;  %v387_v43 = vadd.f32 %v3199_v9, %v354_v34  ;;  %3060 = vmatpush.bf16.msra.mxu2 %v2832_v22  ;;  %3061 = vmatpush.bf16.msra.mxu3 %v2832_v22  ;;  %v426_v44 = vpack.c.bf16 %v394_v35, %v394_v35  ;;  %v2874_v22 = vld [vmem:[%s4204_s2 + $0x230] sm:$0xff] }
  0x1b   : > { %v427_v45 = vpack.c.bf16 %v395_v36, %v395_v36  ;;  %v434_v46 = vpack.c.bf16 %v402_v37, %v402_v37  ;;  %v418_v47 = vmax.f32 %v386_v38, 0.0  ;;  %v435_v48 = vpack.c.bf16 %v403_v40, %v403_v40  ;;  %v3032_v40 = vld [vmem:[%s3186_s28 + $0x68] sm:$0xff]  }
  0x1c   : > { %v442_v49 = vpack.c.bf16 %v410_v41, %v410_v41  ;;  %v443_v50 = vpack.c.bf16 %v411_v42, %v411_v42  ;;  %v419_v51 = vmax.f32 %v387_v43, 0.0  ;;  %v490_v52 = vunpack.c.l.b16 %v426_v44  ;;  %v2851_v43 = vld [vmem:[%s4204_s2 + $0x178] sm:$0xff] }
  0x1d   : > { %v491_v53 = vunpack.c.l.b16 %v427_v45  ;;  %v498_v54 = vunpack.c.l.b16 %v434_v46  ;;  %v450_v55 = vpack.c.bf16 %v418_v47, %v418_v47  ;;  %1025 = vmatpush.bf16.msra.mxu0 %v2831_v39  ;;  %3062 = vmatpush.bf16.msra.mxu1 %v2831_v39  ;;  %v499_v58 = vunpack.c.l.b16 %v435_v48  ;;  %v2811_v44 = vld [vmem:[%s4204_s2 + $0x38] sm:$0xff] }
  0x1e   : > { %v506_v59 = vunpack.c.l.b16 %v442_v49  ;;  %v507_v60 = vunpack.c.l.b16 %v443_v50  ;;  %v451_v61 = vpack.c.bf16 %v419_v51, %v419_v51  ;;  %3063 = vmatpush.bf16.msra.mxu2 %v2831_v39  ;;  %3064 = vmatpush.bf16.msra.mxu3 %v2831_v39  ;;  %v331_v0 = vmul.f32 %v3191_v3, %v2882_v26 }
  0x1f   : > { %v3233_v62 = vpack.c.b16 %v491_v53, %v490_v52  ;;  %v514_v63 = vunpack.c.l.b16 %v450_v55  ;;  %v332_v1 = vmul.f32 %v3191_v3, %v2883_v30  ;;  %v3237_v2 = vpack.c.b16 %v499_v58, %v498_v54 }
  0x20   : > { %v3239_v4 = vpack.c.b16 %v507_v60, %v506_v59  ;;  %v515_v5 = vunpack.c.l.b16 %v451_v61  ;;  %v364_v10 = vadd.f32 %v3199_v9, %v331_v0  ;;  %v2899_v25 = vunpack.c.h.bf16 %v3024_v56  ;;  %v2843_v56 = vld [vmem:[%s4204_s2 + $0x138] sm:$0xff]  ;;  %v3021_v61 = vld [vmem:[%s3186_s28 + $0x10] sm:$0xff]  }
  0x21   : > { %4251 = vst [vmem:[#allocation2_spill] sm:$0xff] %v3237_v2  ;;  %v562_v7 = vshrl.u32 %v3233_v62, 16  ;;  %v565_v8 = vshll.u32 %v3233_v62, 16  ;;  %v365_v11 = vadd.f32 %v3199_v9, %v332_v1  ;;  %1026 = vmatpush.bf16.msra.mxu0 %v2830_v57  ;;  %3065 = vmatpush.bf16.msra.mxu1 %v2830_v57  ;;  %v590_v13 = vshrl.u32 %v3237_v2, 16  ;;  %v2810_v0 = vld [vmem:[%s4204_s2 + $0x30] sm:$0xff] }
  0x22   : > { %4252 = vst [vmem:[#allocation3_spill] sm:$0xff] %v3239_v4  ;;  %v593_v14 = vshll.u32 %v3237_v2, 16  ;;  %v4223_v15 = vshrl.u32 %v3239_v4, 16  ;;  %v4224_v16 = vshll.u32 %v3239_v4, 16  ;;  %3066 = vmatpush.bf16.msra.mxu2 %v2830_v57  ;;  %3067 = vmatpush.bf16.msra.mxu3 %v2830_v57  ;;  %v3254_v18 = vpack.c.b16 %v515_v5, %v514_v63  ;;  %v2819_v57 = vld [vmem:[%s4204_s2 + $0x78] sm:$0xff]  ;;  %v2850_v63 = vld [vmem:[%s4204_s2 + $0x170] sm:$0xff] }
  0x23   : > { %v564_v17 = vrot.slane %v562_v7, 7  ;;  %v396_v19 = vmax.f32 %v364_v10, 0.0  ;;  %v397_v20 = vmax.f32 %v365_v11, 0.0  ;;  %v592_v23 = vrot.slane %v590_v13, 7 }
  0x24   : > { %v620_v24 = vrot.slane %v4223_v15, 7  ;;  %v339_v26 = vmul.f32 %v3191_v3, %v2898_v6  ;;  %v4209_v28 = vshrl.u32 %v3254_v18, 16  ;;  %v4210_v29 = vshll.u32 %v3254_v18, 16 }
  0x25   : > { %v567_v27 = vor.u32 %v565_v8, %v564_v17  ;;  %v428_v30 = vpack.c.bf16 %v396_v19, %v396_v19  ;;  %1027 = vmatpush.bf16.msra.mxu0 %v2829_v12  ;;  %3068 = vmatpush.bf16.msra.mxu1 %v2829_v12  ;;  %v595_v32 = vor.u32 %v593_v14, %v592_v23  ;;  %v2914_v35 = vunpack.c.l.bf16 %v3028_v21 }
  0x26   : > { %v623_v33 = vor.u32 %v4224_v16, %v620_v24  ;;  %v429_v34 = vpack.c.bf16 %v397_v20, %v397_v20  ;;  %3069 = vmatpush.bf16.msra.mxu2 %v2829_v12  ;;  %3070 = vmatpush.bf16.msra.mxu3 %v2829_v12  ;;  %v648_v37 = vrot.slane %v4209_v28, 7  ;;  %v340_v39 = vmul.f32 %v3191_v3, %v2899_v25 }
  0x27   : > { %v3281_v36 = vsel %vm3259_vm2, 0, %v567_v27  ;;  %v492_v38 = vunpack.c.l.b16 %v428_v30  ;;  %v3289_v41 = vsel %vm3259_vm2, 0, %v595_v32  ;;  %v372_v46 = vadd.f32 %v3199_v9, %v339_v26  ;;  %v2818_v32 = vld [vmem:[%s4204_s2 + $0x70] sm:$0xff] }
  0x28   : > { %4255 = vst [vmem:[#allocation4_spill] sm:$0xff] %v3289_v41  ;;  %v3293_v42 = vsel %vm3259_vm2, 0, %v623_v33  ;;  %v493_v45 = vunpack.c.l.b16 %v429_v34  ;;  %v651_v47 = vor.u32 %v4210_v29, %v648_v37  ;;  %v373_v48 = vadd.f32 %v3199_v9, %v340_v39  ;;  %v2809_v37 = vld [vmem:[%s4204_s2 + $0x28] sm:$0xff] }
  0x29   : > { %v2915_v49 = vunpack.c.h.bf16 %v3028_v21  ;;  %v347_v50 = vmul.f32 %v3191_v3, %v2914_v35  ;;  %1028 = vmatpush.bf16.msra.mxu0 %v2828_v31  ;;  %3071 = vmatpush.bf16.msra.mxu1 %v2828_v31  ;;  %v404_v52 = vmax.f32 %v372_v46, 0.0  ;;  %v2930_v53 = vunpack.c.l.bf16 %v3032_v40  ;;  %v2849_v35 = vld [vmem:[%s4204_s2 + $0x168] sm:$0xff]  ;;  %v3025_v46 = vld [vmem:[%s3186_s28 + $0x30] sm:$0xff]  }
  0x2a   : > { %v3306_v51 = vpack.c.b16 %v493_v45, %v492_v38  ;;  %v2931_v54 = vunpack.c.h.bf16 %v3032_v40  ;;  %3072 = vmatpush.bf16.msra.mxu2 %v2828_v31  ;;  %3073 = vmatpush.bf16.msra.mxu3 %v2828_v31  ;;  %v3310_v55 = vsel %vm3259_vm2, 0, %v651_v47  ;;  %v405_v58 = vmax.f32 %v373_v48, 0.0  ;;  %v2842_v31 = vld [vmem:[%s4204_s2 + $0x130] sm:$0xff] }
  0x2b   : > { %v348_v59 = vmul.f32 %v3191_v3, %v2915_v49  ;;  %v380_v60 = vadd.f32 %v3199_v9, %v347_v50  ;;  %v436_v6 = vpack.c.bf16 %v404_v52, %v404_v52  ;;  %v355_v10 = vmul.f32 %v3191_v3, %v2930_v53 }
  0x2c   : > { %v569_v1 = vshrl.u32 %v3306_v51, 16  ;;  %v572_v5 = vshll.u32 %v3306_v51, 16  ;;  %1029 = vmatmul.bf16.vlgmr.msra.gmra.mxu0 %v3281_v36  ;;  %1049 = vmatmul.bf16.vlgmr.msra.gmra.mxu1 %v3289_v41  ;;  %v437_v11 = vpack.c.bf16 %v405_v58, %v405_v58  ;;  %v356_v19 = vmul.f32 %v3191_v3, %v2931_v54  ;;  %v2817_v58 = vld [vmem:[%s4204_s2 + $0x68] sm:$0xff] }
  0x2d   : > { %v381_v12 = vadd.f32 %v3199_v9, %v348_v59  ;;  %v412_v17 = vmax.f32 %v380_v60, 0.0  ;;  %1069 = vmatmul.bf16.vlgmr.msra.gmra.mxu2 %v3293_v42  ;;  %1089 = vmatmul.bf16.vlgmr.msra.gmra.mxu3 %v3310_v55  ;;  %v500_v21 = vunpack.c.l.b16 %v436_v6  ;;  %v388_v23 = vadd.f32 %v3199_v9, %v355_v10  ;;  %v3029_v59 = vld [vmem:[%s3186_s28 + $0x50] sm:$0xff]  }
  0x2e   : > { %1199 = vmatpush.bf16.msrb.mxu2 %v2851_v43  ;;  %1432 = vmatpush.bf16.msrb.mxu3 %v2811_v44  ;;  %v571_v20 = vrot.slane %v569_v1, 7  ;;  %v2886_v24 = vunpack.c.l.bf16 %v3021_v61  ;;  %v501_v25 = vunpack.c.l.b16 %v437_v11  ;;  %v389_v30 = vadd.f32 %v3199_v9, %v356_v19 }
  0x2f   : > { %1110 = vmatpush.bf16.msrb.mxu1 %v2843_v56  ;;  %1521 = vmatpush.bf16.msrb.mxu0 %v2819_v57  ;;  %v413_v26 = vmax.f32 %v381_v12, 0.0  ;;  %v444_v27 = vpack.c.bf16 %v412_v17, %v412_v17  ;;  %v420_v34 = vmax.f32 %v388_v23, 0.0  ;;  %v2887_v38 = vunpack.c.h.bf16 %v3021_v61  ;;  %v2841_v57 = vld [vmem:[%s4204_s2 + $0x128] sm:$0xff]  ;;  %v2848_v61 = vld [vmem:[%s4204_s2 + $0x160] sm:$0xff] }
  0x30   : > { %v574_v33 = vor.u32 %v572_v5, %v571_v20  ;;  %v333_v39 = vmul.f32 %v3191_v3, %v2886_v24  ;;  %v3355_v40 = vpack.c.b16 %v501_v25, %v500_v21  ;;  %v421_v45 = vmax.f32 %v389_v30, 0.0 }
  0x31   : > { %v445_v43 = vpack.c.bf16 %v413_v26, %v413_v26  ;;  %v508_v44 = vunpack.c.l.b16 %v444_v27  ;;  %v452_v48 = vpack.c.bf16 %v420_v34, %v420_v34  ;;  %v334_v49 = vmul.f32 %v3191_v3, %v2887_v38  ;;  %v3033_v38 = vld [vmem:[%s3186_s28 + $0x70] sm:$0xff]  }
  0x32   : > { %1200 = vmatpush.bf16.msrb.mxu2 %v2850_v63  ;;  %1433 = vmatpush.bf16.msrb.mxu3 %v2810_v0  ;;  %4256 = vst [vmem:[#allocation5_spill] sm:$0xff] %v3355_v40  ;;  %v3360_v47 = vsel %vm3259_vm2, 0, %v574_v33  ;;  %v366_v50 = vadd.f32 %v3199_v9, %v333_v39  ;;  %v597_v52 = vshrl.u32 %v3355_v40, 16  ;;  %v600_v53 = vshll.u32 %v3355_v40, 16  ;;  %v2808_v63 = vld [vmem:[%s4204_s2 + $0x20] sm:$0xff]  ;;  %v2847_v39 = vld [vmem:[%s4204_s2 + $0x158] sm:$0xff] }
  0x33   : > { %v509_v54 = vunpack.c.l.b16 %v445_v43  ;;  %v453_v56 = vpack.c.bf16 %v421_v45, %v421_v45  ;;  %1111 = vmatpush.bf16.msrb.mxu1 %v2842_v31  ;;  %1522 = vmatpush.bf16.msrb.mxu0 %v2818_v32  ;;  %v516_v60 = vunpack.c.l.b16 %v452_v48  ;;  %v367_v0 = vadd.f32 %v3199_v9, %v334_v49  ;;  %v2840_v31 = vld [vmem:[%s4204_s2 + $0x120] sm:$0xff]  ;;  %v2807_v43 = vld [vmem:[%s4204_s2 + $0x18] sm:$0xff] }
  0x34   : > { %v398_v6 = vmax.f32 %v366_v50, 0.0  ;;  %v2902_v10 = vunpack.c.l.bf16 %v3025_v46  ;;  %v599_v11 = vrot.slane %v597_v52, 7  ;;  %v2903_v19 = vunpack.c.h.bf16 %v3025_v46  ;;  %v2816_v32 = vld [vmem:[%s4204_s2 + $0x60] sm:$0xff] }
  0x35   : > { %v3382_v12 = vpack.c.b16 %v509_v54, %v508_v44  ;;  %v517_v17 = vunpack.c.l.b16 %v453_v56  ;;  %v399_v20 = vmax.f32 %v367_v0, 0.0  ;;  %v2918_v24 = vunpack.c.l.bf16 %v3029_v59 }
  0x36   : > { %1201 = vmatpush.bf16.msrb.mxu2 %v2849_v35  ;;  %1434 = vmatpush.bf16.msrb.mxu3 %v2809_v37  ;;  %v430_v21 = vpack.c.bf16 %v398_v6, %v398_v6  ;;  %v341_v23 = vmul.f32 %v3191_v3, %v2902_v10  ;;  %v602_v25 = vor.u32 %v600_v53, %v599_v11  ;;  %v2919_v56 = vunpack.c.h.bf16 %v3029_v59  ;;  %v2815_v59 = vld [vmem:[%s4204_s2 + $0x58] sm:$0xff] }
  0x37   : > { %v4214_v26 = vshrl.u32 %v3382_v12, 16  ;;  %v4222_v27 = vshll.u32 %v3382_v12, 16  ;;  %v3389_v30 = vpack.c.b16 %v517_v17, %v516_v60  ;;  %1112 = vmatpush.bf16.msrb.mxu1 %v2841_v57  ;;  %1523 = vmatpush.bf16.msrb.mxu0 %v2817_v58  ;;  %v431_v33 = vpack.c.bf16 %v399_v20, %v399_v20  ;;  %v2846_v17 = vld [vmem:[%s4204_s2 + $0x150] sm:$0xff] }
  0x38   : > { %v494_v34 = vunpack.c.l.b16 %v430_v21  ;;  %v342_v35 = vmul.f32 %v3191_v3, %v2903_v19  ;;  %v374_v37 = vadd.f32 %v3199_v9, %v341_v23  ;;  %v3408_v44 = vsel %vm3259_vm2, 0, %v602_v25  ;;  %v3022_v25 = vld [vmem:[%s3186_s28 + $0x18] sm:$0xff]  }
  0x39   : > { %4257 = vst [vmem:[#allocation6_spill] sm:$0xff] %v3408_v44  ;;  %v627_v45 = vrot.slane %v4214_v26, 7  ;;  %v4207_v46 = vshrl.u32 %v3389_v30, 16  ;;  %v4208_v48 = vshll.u32 %v3389_v30, 16  ;;  %v495_v49 = vunpack.c.l.b16 %v431_v33 }
  0x3a   : > { %1202 = vmatpush.bf16.msrb.mxu2 %v2848_v61  ;;  %1435 = vmatpush.bf16.msrb.mxu3 %v2808_v63  ;;  %v375_v50 = vadd.f32 %v3199_v9, %v342_v35  ;;  %v406_v54 = vmax.f32 %v374_v37, 0.0  ;;  %v349_v60 = vmul.f32 %v3191_v3, %v2918_v24  ;;  %v2934_v61 = vunpack.c.l.bf16 %v3033_v38  ;;  %v2839_v63 = vld [vmem:[%s4204_s2 + $0x118] sm:$0xff]  ;;  %v2806_v24 = vld [vmem:[%s4204_s2 + $0x10] sm:$0xff] }
  0x3b   : > { %v630_v57 = vor.u32 %v4222_v27, %v627_v45  ;;  %v655_v58 = vrot.slane %v4207_v46, 7  ;;  %1113 = vmatpush.bf16.msrb.mxu1 %v2840_v31  ;;  %1524 = vmatpush.bf16.msrb.mxu0 %v2816_v32  ;;  %v3426_v0 = vpack.c.b16 %v495_v49, %v494_v34  ;;  %v350_v11 = vmul.f32 %v3191_v3, %v2919_v56 }
  0x3c   : > { %v407_v6 = vmax.f32 %v375_v50, 0.0  ;;  %v438_v10 = vpack.c.bf16 %v406_v54, %v406_v54  ;;  %1034 = vmatmul.bf16.gmra.mxu0 %v3360_v47  ;;  %1054 = vmatmul.bf16.gmra.mxu1 %v3408_v44  ;;  %v382_v21 = vadd.f32 %v3199_v9, %v349_v60  ;;  %v2935_v23 = vunpack.c.h.bf16 %v3033_v38 }
  0x3d   : > { %v3436_v19 = vsel %vm3259_vm2, 0, %v630_v57  ;;  %v658_v20 = vor.u32 %v4208_v48, %v655_v58  ;;  %v576_v31 = vshrl.u32 %v3426_v0, 16  ;;  %v579_v32 = vshll.u32 %v3426_v0, 16  ;;  %v2836_v48 = vld [vmem:[%s4204_s2 + $0x100] sm:$0xff] }
  0x3e   : > { %1203 = vmatpush.bf16.msrb.mxu2 %v2847_v39  ;;  %1436 = vmatpush.bf16.msrb.mxu3 %v2807_v43  ;;  %v439_v33 = vpack.c.bf16 %v407_v6, %v407_v6  ;;  %v502_v34 = vunpack.c.l.b16 %v438_v10  ;;  %v383_v37 = vadd.f32 %v3199_v9, %v350_v11  ;;  %v414_v38 = vmax.f32 %v382_v21, 0.0 }
  0x3f   : > { %1074 = vmatmul.bf16.gmra.mxu2 %v3436_v19  ;;  %v3450_v35 = vsel %vm3259_vm2, 0, %v658_v20  ;;  %v357_v39 = vmul.f32 %v3191_v3, %v2934_v61  ;;  %1114 = vmatpush.bf16.msrb.mxu1 %v2839_v63  ;;  %v578_v43 = vrot.slane %v576_v31, 7  ;;  %v358_v49 = vmul.f32 %v3191_v3, %v2935_v23  ;;  %v3026_v20 = vld [vmem:[%s3186_s28 + $0x38] sm:$0xff]  }
  0x40   : > { %1525 = vmatpush.bf16.msrb.mxu0 %v2815_v59  ;;  %1094 = vmatmul.bf16.gmra.mxu3 %v3450_v35  ;;  %v503_v45 = vunpack.c.l.b16 %v439_v33  ;;  %v2890_v50 = vunpack.c.l.bf16 %v3022_v25  ;;  %v415_v54 = vmax.f32 %v383_v37, 0.0  ;;  %v446_v56 = vpack.c.bf16 %v414_v38, %v414_v38 }
  0x41   : > { %v390_v57 = vadd.f32 %v3199_v9, %v357_v39  ;;  %v2891_v58 = vunpack.c.h.bf16 %v3022_v25  ;;  %v581_v60 = vor.u32 %v579_v32, %v578_v43  ;;  %v391_v63 = vadd.f32 %v3199_v9, %v358_v49 }
  0x42   : > { %1204 = vmatpush.bf16.msrb.mxu2 %v2846_v17  ;;  %1437 = vmatpush.bf16.msrb.mxu3 %v2806_v24  ;;  %v3461_v61 = vpack.c.b16 %v503_v45, %v502_v34  ;;  %v335_v59 = vmul.f32 %v3191_v3, %v2890_v50  ;;  %v447_v6 = vpack.c.bf16 %v415_v54, %v415_v54  ;;  %v510_v10 = vunpack.c.l.b16 %v446_v56  ;;  %v2838_v50 = vld [vmem:[%s4204_s2 + $0x110] sm:$0xff]  ;;  %v2845_v54 = vld [vmem:[%s4204_s2 + $0x148] sm:$0xff] }
  0x43   : > { %v422_v11 = vmax.f32 %v390_v57, 0.0  ;;  %v336_v17 = vmul.f32 %v3191_v3, %v2891_v58  ;;  %v3469_v21 = vsel %vm3259_vm2, 0, %v581_v60  ;;  %v423_v25 = vmax.f32 %v391_v63, 0.0  ;;  %v2805_v56 = vld [vmem:[%s4204_s2 + $0x8] sm:$0xff]  ;;  %1115 = vmatpush.bf16.msrb.mxu1 %v2838_v50 }
  0x44   : > { %4258 = vst [vmem:[#allocation7_spill] sm:$0xff] %v3461_v61  ;;  %v604_v23 = vshrl.u32 %v3461_v61, 16  ;;  %v607_v24 = vshll.u32 %v3461_v61, 16  ;;  %v511_v33 = vunpack.c.l.b16 %v447_v6  ;;  %v368_v37 = vadd.f32 %v3199_v9, %v335_v59  ;;  %v2814_v59 = vld [vmem:[%s4204_s2 + $0x50] sm:$0xff] }
  0x45   : > { %v454_v34 = vpack.c.bf16 %v422_v11, %v422_v11  ;;  %v369_v38 = vadd.f32 %v3199_v9, %v336_v17  ;;  %v455_v43 = vpack.c.bf16 %v423_v25, %v423_v25  ;;  %v2906_v45 = vunpack.c.l.bf16 %v3026_v20  ;;  %v3030_v25 = vld [vmem:[%s3186_s28 + $0x58] sm:$0xff]   ;;  %1526 = vmatpush.bf16.msrb.mxu0 %v2814_v59 }
  0x46   : > { %v606_v39 = vrot.slane %v604_v23, 7  ;;  %v2907_v49 = vunpack.c.h.bf16 %v3026_v20  ;;  %v3486_v57 = vpack.c.b16 %v511_v33, %v510_v10  ;;  %v400_v60 = vmax.f32 %v368_v37, 0.0  ;;  %1205 = vmatpush.bf16.msrb.mxu2 %v2845_v54  ;;  %v2837_v10 = vld [vmem:[%s4204_s2 + $0x108] sm:$0xff]  ;;  %v2844_v33 = vld [vmem:[%s4204_s2 + $0x140] sm:$0xff]  ;;  %1438 = vmatpush.bf16.msrb.mxu3 %v2805_v56 }
  0x47   : > { %v518_v58 = vunpack.c.l.b16 %v454_v34  ;;  %v401_v63 = vmax.f32 %v369_v38, 0.0  ;;  %v519_v11 = vunpack.c.l.b16 %v455_v43  ;;  %v343_v17 = vmul.f32 %v3191_v3, %v2906_v45  ;;  %v2804_v54 = vld [vmem:[%s4204_s2] sm:$0xff]  ;;  %1116 = vmatpush.bf16.msrb.mxu1 %v2837_v10 }
  0x48   : > { %v609_v6 = vor.u32 %v607_v24, %v606_v39  ;;  %v344_v20 = vmul.f32 %v3191_v3, %v2907_v49  ;;  %v4211_v34 = vshrl.u32 %v3486_v57, 16  ;;  %v4213_v37 = vshll.u32 %v3486_v57, 16 }
  0x49   : > { %v432_v38 = vpack.c.bf16 %v400_v60, %v400_v60  ;;  %v433_v39 = vpack.c.bf16 %v401_v63, %v401_v63  ;;  %v3508_v45 = vpack.c.b16 %v519_v11, %v518_v58  ;;  %v376_v49 = vadd.f32 %v3199_v9, %v343_v17  ;;  %v2813_v60 = vld [vmem:[%s4204_s2 + $0x48] sm:$0xff]  ;;  %v3034_v58 = vld [vmem:[%s3186_s28 + $0x78] sm:$0xff]  }
  0x4a   : > { %v3506_v43 = vsel %vm3259_vm2, 0, %v609_v6  ;;  %v377_v50 = vadd.f32 %v3199_v9, %v344_v20  ;;  %v634_v56 = vrot.slane %v4211_v34, 7  ;;  %v2922_v6 = vunpack.c.l.bf16 %v3030_v25  ;;  %1206 = vmatpush.bf16.msrb.mxu2 %v2844_v33  ;;  %1439 = vmatpush.bf16.msrb.mxu3 %v2804_v54  ;;  %v2812_v34 = vld [vmem:[%s4204_s2 + $0x40] sm:$0xff] }
  0x4b   : > { %4259 = vst [vmem:[#allocation8_spill] sm:$0xff] %v3506_v43  ;;  %v496_v63 = vunpack.c.l.b16 %v432_v38  ;;  %v497_v59 = vunpack.c.l.b16 %v433_v39  ;;  %v4212_v11 = vshrl.u32 %v3508_v45, 16  ;;  %v4219_v17 = vshll.u32 %v3508_v45, 16  ;;  %1527 = vmatpush.bf16.msrb.mxu0 %v2813_v60  ;;  %1117 = vmatpush.bf16.msrb.mxu1 %v2836_v48 }
  0x4c   : > { %v408_v20 = vmax.f32 %v376_v49, 0.0  ;;  %v409_v46 = vmax.f32 %v377_v50, 0.0  ;;  %1039 = vmatmul.bf16.gmra.mxu0 %v3469_v21  ;;  %1059 = vmatmul.bf16.gmra.mxu1 %v3506_v43  ;;  %v637_v38 = vor.u32 %v4213_v37, %v634_v56  ;;  %v2923_v28 = vunpack.c.h.bf16 %v3030_v25 }
  0x4d   : > { %v3530_v39 = vpack.c.b16 %v497_v59, %v496_v63  ;;  %v351_v29 = vmul.f32 %v3191_v3, %v2922_v6  ;;  %v662_v10 = vrot.slane %v4212_v11, 7  ;;  %v2938_v50 = vunpack.c.l.bf16 %v3034_v58 }
  0x4e   : > { %v440_v33 = vpack.c.bf16 %v408_v20, %v408_v20  ;;  %v441_v49 = vpack.c.bf16 %v409_v46, %v409_v46  ;;  %v3540_v56 = vsel %vm3259_vm2, 0, %v637_v38  ;;  %v352_v59 = vmul.f32 %v3191_v3, %v2923_v28 }
  0x4f   : > { %v583_v25 = vshrl.u32 %v3530_v39, 16  ;;  %v586_v63 = vshll.u32 %v3530_v39, 16  ;;  %1079 = vmatmul.bf16.gmra.mxu2 %v3540_v56  ;;  %v665_v46 = vor.u32 %v4219_v17, %v662_v10  ;;  %v384_v6 = vadd.f32 %v3199_v9, %v351_v29  ;;  %1528 = vmatpush.bf16.msrb.mxu0 %v2812_v34 }
  0x50   : > { %v504_v54 = vunpack.c.l.b16 %v440_v33  ;;  %v505_v60 = vunpack.c.l.b16 %v441_v49  ;;  %v385_v38 = vadd.f32 %v3199_v9, %v352_v59  ;;  %v2939_v11 = vunpack.c.h.bf16 %v3034_v58 }
  0x51   : > { %v585_v20 = vrot.slane %v583_v25, 7  ;;  %v359_v37 = vmul.f32 %v3191_v3, %v2938_v50  ;;  %v3555_v28 = vsel %vm3259_vm2, 0, %v665_v46  ;;  %v416_v10 = vmax.f32 %v384_v6, 0.0  ;;  %v2867_v6 = vld [vmem:[%s4204_s2 + $0x1f8] sm:$0xff] }
  0x52   : > { %v3557_v26 = vpack.c.b16 %v505_v60, %v504_v54  ;;  %v712_v29 = vrot.slane %v565_v8, 1  ;;  %1099 = vmatmul.bf16.gmra.mxu3 %v3555_v28  ;;  %v417_v48 = vmax.f32 %v385_v38, 0.0  ;;  %v360_v33 = vmul.f32 %v3191_v3, %v2939_v11 }
  0x53   : > { %v392_v58 = vadd.f32 %v3199_v9, %v359_v37  ;;  %v448_v59 = vpack.c.bf16 %v416_v10, %v416_v10  ;;  %v588_v8 = vor.u32 %v586_v63, %v585_v20  ;;  %v2859_v37 = vld [vmem:[%s4204_s2 + $0x1b8] sm:$0xff]  ;;  %1980 = vmatpush.bf16.msra.mxu3 %v2867_v6 }
  0x54   : > { %4260 = vst [vmem:[#allocation9_spill] sm:$0xff] %v3557_v26  ;;  %v4225_v49 = vshrl.u32 %v3557_v26, 16  ;;  %v614_v50 = vshll.u32 %v3557_v26, 16  ;;  %v713_v46 = vor.u32 %v712_v29, %v562_v7  ;;  %v449_v54 = vpack.c.bf16 %v417_v48, %v417_v48  ;;  %v2875_v20 = vld [vmem:[%s4204_s2 + $0x238] sm:$0xff]  ;;  %1891 = vmatpush.bf16.msra.mxu2 %v2859_v37 }
  0x55   : > { %v393_v34 = vadd.f32 %v3199_v9, %v360_v33  ;;  %v424_v60 = vmax.f32 %v392_v58, 0.0  ;;  %v512_v11 = vunpack.c.l.b16 %v448_v59  ;;  %v2827_v9 = vld [vmem:[%s4204_s2 + $0xb8] sm:$0xff]  ;;  %2069 = vmatpush.bf16.msra.mxu0 %v2875_v20  ;;  %v3591_v59 = vsel %vm3259_vm2, 0, %v588_v8 }
  0x56   : > { %v613_v3 = vrot.slane %v4225_v49, 7  ;;  %v513_v7 = vunpack.c.l.b16 %v449_v54  ;;  %1610 = vmatpush.bf16.msra.mxu1 %v2827_v9  ;;  %v714_v8 = vrot.slane %v572_v5, 1 }
  0x57   : > { %v425_v38 = vmax.f32 %v393_v34, 0.0  ;;  %v456_v10 = vpack.c.bf16 %v424_v60, %v424_v60 }
  0x58   : > { %v616_v29 = vor.u32 %v614_v50, %v613_v3  ;;  %v3587_v48 = vpack.c.b16 %v513_v7, %v512_v11 }
  0x59   : > { %v457_v33 = vpack.c.bf16 %v425_v38, %v425_v38  ;;  %v520_v58 = vunpack.c.l.b16 %v456_v10  ;;  %v715_v10 = vor.u32 %v714_v8, %v569_v1  ;;  %2070 = vmatpush.bf16.msra.mxu0 %v2874_v22 }
  0x5a   : > { %v3595_v54 = vsel %vm3259_vm2, 0, %v616_v29  ;;  %v4220_v34 = vshrl.u32 %v3587_v48, 16  ;;  %v4221_v60 = vshll.u32 %v3587_v48, 16 }
  0x5b   : > { %4261 = vst [vmem:[#allocation10_spill] sm:$0xff] %v3595_v54  ;;  %v521_v3 = vunpack.c.l.b16 %v457_v33  ;;  %v4215_v33 = vmov 0  }
  0x5c   : > { %1044 = vmatmul.bf16.gmra.mxu0 %v3591_v59  ;;  %1064 = vmatmul.bf16.gmra.mxu1 %v3595_v54  ;;  %v641_v11 = vrot.slane %v4220_v34, 7 }
  0x5d   : > { %v3603_v37 = vpack.c.b16 %v521_v3, %v520_v58  ;;  %v716_v58 = vrot.slane %v579_v32, 1  ;;  %v3637_v3 = vsel %vm3627_vm5, %v713_v46, 0  ;;  %v2858_v32 = vld [vmem:[%s4204_s2 + $0x1b0] sm:$0xff] }
  0x5e   : > { %v644_v6 = vor.u32 %v4221_v60, %v641_v11  ;;  %v557_v11 = vrot.slane %v4215_v33, 7  ;;  %v2866_v46 = vld [vmem:[%s4204_s2 + $0x1f0] sm:$0xff]  ;;  %1892 = vmatpush.bf16.msra.mxu2 %v2858_v32 }
  0x5f   : > { %v4217_v7 = vshrl.u32 %v3603_v37, 16  ;;  %v4218_v38 = vshll.u32 %v3603_v37, 16  ;;  %v717_v8 = vor.u32 %v716_v58, %v576_v31  ;;  %v2826_v31 = vld [vmem:[%s4204_s2 + $0xb0] sm:$0xff]  ;;  %1981 = vmatpush.bf16.msra.mxu3 %v2866_v46 }
  0x60   : > { %v3615_v9 = vsel %vm3259_vm2, 0, %v644_v6  ;;  %v3645_v6 = vsel %vm3259_vm2, 0, %v557_v11  ;;  %1611 = vmatpush.bf16.msra.mxu1 %v2826_v31 }
  0x61   : > { %v669_v20 = vrot.slane %v4217_v7, 7  ;;  %1084 = vmatmul.bf16.gmra.mxu2 %v3615_v9  ;;  %4265 = vst [vmem:[#allocation12_spill] sm:$0xff] %v3645_v6 }
  0x63   : > { %v672_v5 = vor.u32 %v4218_v38, %v669_v20  ;;  %v718_v20 = vrot.slane %v586_v63, 1  ;;  %v2825_v63 = vld [vmem:[%s4204_s2 + $0xa8] sm:$0xff] }
  0x64   : > { %1612 = vmatpush.bf16.msra.mxu1 %v2825_v63  ;;  %v2824_v63 = vld [vmem:[%s4204_s2 + $0xa0] sm:$0xff] }
  0x65   : > { %v3624_v29 = vsel %vm3259_vm2, 0, %v672_v5  ;;  %v3666_v5 = vsel %vm3627_vm5, %v715_v10, 0  ;;  %v719_v58 = vor.u32 %v718_v20, %v583_v25  ;;  %v2857_v25 = vld [vmem:[%s4204_s2 + $0x1a8] sm:$0xff] }
  0x66   : > { %4262 = vst [vmem:[#allocation11_spill] sm:$0xff] %v3624_v29  ;;  %1104 = vmatmul.bf16.gmra.mxu3 %v3624_v29  ;;  %v2873_v10 = vld [vmem:[%s4204_s2 + $0x228] sm:$0xff]  ;;  %1893 = vmatpush.bf16.msra.mxu2 %v2857_v25 }
  0x67   : > { %2071 = vmatpush.bf16.msra.mxu0 %v2873_v10  ;;  %v3696_v11 = vsel %vm3627_vm5, %v719_v58, 0  ;;  %v722_v10 = vrot.slane %v600_v53, 1 }
  0x68   : > { %1613 = vmatpush.bf16.msra.mxu1 %v2824_v63 }
  0x69   : > { %v723_v17 = vor.u32 %v722_v10, %v597_v52  ;;  %v724_v52 = vrot.slane %v607_v24, 1 }
  0x6b   : > { %v3752_v53 = vsel %vm3627_vm5, %v723_v17, 0  ;;  %v725_v60 = vor.u32 %v724_v52, %v604_v23  ;;  %v2855_v52 = vld [vmem:[%s4204_s2 + $0x198] sm:$0xff] }
  0x6c   : > { %1118 = vmatmul.bf16.vlgmr.msrb.gmra.mxu1 %v3233_v62  ;;  %1529 = vmatmul.bf16.vlgmr.msrb.gmra.mxu0 %v4215_v33  ;;  %4269 = vst [vmem:[#allocation16_spill] sm:$0xff] %v3752_v53 }
  0x6d   : > { %v3780_v15 = vsel %vm3627_vm5, %v725_v60, 0  ;;  %v2863_v60 = vld [vmem:[%s4204_s2 + $0x1d8] sm:$0xff] }
  0x6e   : > { %4272 = vst [vmem:[#allocation19_spill] sm:$0xff] %v3780_v15 }
  0x71   : > { %1207 = vmatmul.bf16.vlgmr.msrb.gmra.mxu2 %v3637_v3 }
  0x76   : > { %1440 = vmatmul.bf16.vlgmr.msrb.gmra.mxu3 %v3645_v6  ;;  %v726_v6 = vrot.slane %v614_v50, 1 }
  0x7c   : > { %1123 = vmatmul.bf16.gmra.mxu1 %v3306_v51  ;;  %1534 = vmatmul.bf16.gmra.mxu0 %v3233_v62  ;;  %v3676_v62 = vsel %vm3627_vm5, %v717_v8, 0  ;;  %v720_v8 = vrot.slane %v593_v14, 1 }
  0x7e   : > { %v721_v31 = vor.u32 %v720_v8, %v590_v13  ;;  %v2856_v13 = vld [vmem:[%s4204_s2 + $0x1a0] sm:$0xff] }
  0x7f   : > { %v2872_v8 = vld [vmem:[%s4204_s2 + $0x220] sm:$0xff]  ;;  %1894 = vmatpush.bf16.msra.mxu2 %v2856_v13 }
  0x80   : > { %v3712_v22 = vsel %vm3627_vm5, %v721_v31, 0  ;;  %2072 = vmatpush.bf16.msra.mxu0 %v2872_v8 }
  0x81   : > { %1212 = vmatmul.bf16.gmra.mxu2 %v3666_v5  ;;  %4266 = vst [vmem:[#allocation13_spill] sm:$0xff] %v3712_v22 }
  0x83   : > { %1895 = vmatpush.bf16.msra.mxu2 %v2855_v52 }
  0x86   : > { %1445 = vmatmul.bf16.gmra.mxu3 %v3281_v36  ;;  %v2865_v36 = vld [vmem:[%s4204_s2 + $0x1e8] sm:$0xff] }
  0x87   : > { %1982 = vmatpush.bf16.msra.mxu3 %v2865_v36  ;;  %v2864_v36 = vld [vmem:[%s4204_s2 + $0x1e0] sm:$0xff] }
  0x8b   : > { %1983 = vmatpush.bf16.msra.mxu3 %v2864_v36 }
  0x8c   : > { %1128 = vmatmul.bf16.gmra.mxu1 %v3426_v0  ;;  %1539 = vmatmul.bf16.gmra.mxu0 %v3306_v51 }
  0x8f   : > { %1984 = vmatpush.bf16.msra.mxu3 %v2863_v60 }
  0x91   : > { %1217 = vmatmul.bf16.gmra.mxu2 %v3676_v62 }
  0x96   : > { %1450 = vmatmul.bf16.gmra.mxu3 %v3360_v47 }
  0x9c   : > { %1133 = vmatmul.bf16.gmra.mxu1 %v3530_v39  ;;  %1544 = vmatmul.bf16.gmra.mxu0 %v3426_v0 }
  0xa1   : > { %1222 = vmatmul.bf16.gmra.mxu2 %v3696_v11 }
  0xa6   : > { %1455 = vmatmul.bf16.gmra.mxu3 %v3469_v21 }
  0xa9   : > { %v3702_v32 = vpop.f32.mrf.mxu0  ;;  %v3704_v46 = vpop.f32.mrf.mxu1 }
  0xac   : > { %1138 = vmatmul.bf16.gmra.mxu1 %v3237_v2  ;;  %1549 = vmatmul.bf16.gmra.mxu0 %v3530_v39 }
  0xb0   : > { %v3714_v20 = vpop.f32.mrf.mxu2  ;;  %v3716_v58 = vpop.f32.mrf.mxu3 }
  0xb1   : > { %4267 = vst [vmem:[#allocation14_spill] sm:$0xff] %v3716_v58  ;;  %1227 = vmatmul.bf16.gmra.mxu2 %v3712_v22  ;;  %v3719_v14 = vpop.f32.mrf.mxu0  ;;  %v3721_v25 = vpop.f32.mrf.mxu1 }
  0xb6   : > { %1460 = vmatmul.bf16.gmra.mxu3 %v3591_v59 }
  0xb8   : > { %v3738_v31 = vpop.f32.mrf.mxu2  ;;  %v3740_v33 = vpop.f32.mrf.mxu3 }
  0xb9   : > { %4268 = vst [vmem:[#allocation15_spill] sm:$0xff] %v3740_v33  ;;  %v3742_v7 = vpop.f32.mrf.mxu0  ;;  %v3744_v38 = vpop.f32.mrf.mxu1  ;;  %v4274_v33 = vshrl.u32 %v3557_v26, 16 }
  0xbc   : > { %1143 = vmatmul.bf16.gmra.mxu1 %v3355_v40  ;;  %1554 = vmatmul.bf16.gmra.mxu0 %v3237_v2 }
  0xc1   : > { %1232 = vmatmul.bf16.gmra.mxu2 %v3752_v53  ;;  %v3757_v36 = vpop.f32.mrf.mxu0  ;;  %v3759_v63 = vpop.f32.mrf.mxu1 }
  0xc2   : > { %v3754_v13 = vpop.f32.mrf.mxu2 }
  0xc3   : > { %v3761_v8 = vpop.f32.mrf.mxu3 }
  0xc4   : > { %4270 = vst [vmem:[#allocation17_spill] sm:$0xff] %v3761_v8  ;;  %v2871_v8 = vld [vmem:[%s4204_s2 + $0x218] sm:$0xff] }
  0xc5   : > { %2073 = vmatpush.bf16.msra.mxu0 %v2871_v8 }
  0xc6   : > { %1465 = vmatmul.bf16.gmra.mxu3 %v3289_v41 }
  0xc9   : > { %v3768_v34 = vpop.f32.mrf.mxu0  ;;  %v3770_v17 = vpop.f32.mrf.mxu1 }
  0xca   : > { %v3766_v10 = vpop.f32.mrf.mxu2 }
  0xcb   : > { %v3774_v27 = vpop.f32.mrf.mxu3 }
  0xcc   : > { %4271 = vst [vmem:[#allocation18_spill] sm:$0xff] %v3774_v27  ;;  %1148 = vmatmul.bf16.gmra.mxu1 %v3461_v61  ;;  %1559 = vmatmul.bf16.gmra.mxu0 %v3355_v40  ;;  %v727_v40 = vor.u32 %v726_v6, %v4274_v33  ;;  %v4278_v33 = vshll.u32 %v3239_v4, 16 }
  0xce   : > { %v3820_v52 = vsel %vm3627_vm5, %v727_v40, 0  ;;  %v728_v6 = vrot.slane %v4278_v33, 1 }
  0xcf   : > { %4276 = vst [vmem:[#allocation22_spill] sm:$0xff] %v3820_v52 }
  0xd1   : > { %1237 = vmatmul.bf16.gmra.mxu2 %v3780_v15  ;;  %v3783_v24 = vpop.f32.mrf.mxu0  ;;  %v3785_v16 = vpop.f32.mrf.mxu1 }
  0xd2   : > { %v3787_v49 = vpop.f32.mrf.mxu2 }
  0xd5   : > { %v3790_v23 = vpop.f32.mrf.mxu3 }
  0xd6   : > { %1470 = vmatmul.bf16.gmra.mxu3 %v3408_v44  ;;  %4273 = vst [vmem:[#allocation20_spill] sm:$0xff] %v3790_v23  ;;  %v2823_v23 = vld [vmem:[%s4204_s2 + $0x98] sm:$0xff] }
  0xd7   : > { %1614 = vmatpush.bf16.msra.mxu1 %v2823_v23 }
  0xd9   : > { %v3800_v29 = vpop.f32.mrf.mxu0  ;;  %v3802_v27 = vpop.f32.mrf.mxu1 }
  0xda   : > { %v3810_v15 = vpop.f32.mrf.mxu2 }
  0xdc   : > { %1153 = vmatmul.bf16.gmra.mxu1 %v3557_v26  ;;  %1564 = vmatmul.bf16.gmra.mxu0 %v3461_v61  ;;  %v4280_v61 = vshrl.u32 %v3239_v4, 16 }
  0xdd   : > { %v3816_v50 = vpop.f32.mrf.mxu3 }
  0xde   : > { %4275 = vst [vmem:[#allocation21_spill] sm:$0xff] %v3816_v50 }
  0xe1   : > { %1242 = vmatmul.bf16.gmra.mxu2 %v3820_v52  ;;  %v3823_v60 = vpop.f32.mrf.mxu0  ;;  %v3825_v58 = vpop.f32.mrf.mxu1  ;;  %v729_v52 = vor.u32 %v728_v6, %v4280_v61  ;;  %v2854_v6 = vld [vmem:[%s4204_s2 + $0x190] sm:$0xff] }
  0xe2   : > { %1896 = vmatpush.bf16.msra.mxu2 %v2854_v6 }
  0xe4   : > { %v3827_v44 = vpop.f32.mrf.mxu2 }
  0xe5   : > { %4277 = vst [vmem:[#allocation23_spill] sm:$0xff] %v3827_v44  ;;  %v4285_v44 = vshrl.u32 %v3382_v12, 16 }
  0xe6   : > { %1475 = vmatmul.bf16.gmra.mxu3 %v3506_v43  ;;  %v3843_v43 = vsel %vm3627_vm5, %v729_v52, 0  ;;  %v2862_v52 = vld [vmem:[%s4204_s2 + $0x1d0] sm:$0xff] }
  0xe7   : > { %4282 = vst [vmem:[#allocation26_spill] sm:$0xff] %v3843_v43  ;;  %1985 = vmatpush.bf16.msra.mxu3 %v2862_v52 }
  0xe9   : > { %v3832_v8 = vpop.f32.mrf.mxu3  ;;  %v1119_v23 = vpop.f32.mrf.mxu1 }
  0xea   : > { %4279 = vst [vmem:[#allocation24_spill] sm:$0xff] %v3832_v8  ;;  %v1530_v50 = vpop.f32.mrf.mxu0  ;;  %v1120_v40 = vadd.f32 %v1119_v23, %v3702_v32 }
  0xec   : > { %v3837_v53 = vpop.f32.mrf.mxu2  ;;  %1158 = vmatmul.bf16.gmra.mxu1 %v3239_v4  ;;  %1569 = vmatmul.bf16.gmra.mxu0 %v3557_v26 }
  0xed   : > { %4281 = vst [vmem:[#allocation25_spill] sm:$0xff] %v3837_v53 }
  0xf1   : > { %v3845_v33 = vpop.f32.mrf.mxu3  ;;  %1247 = vmatmul.bf16.gmra.mxu2 %v3843_v43  ;;  %v1121_v8 = vpop.f32.mrf.mxu1 }
  0xf2   : > { %4283 = vst [vmem:[#allocation27_spill] sm:$0xff] %v3845_v33  ;;  %v1532_v2 = vpop.f32.mrf.mxu0  ;;  %v1122_v32 = vadd.f32 %v1121_v8, %v3719_v14  ;;  %v4284_v33 = vshll.u32 %v3382_v12, 16 }
  0xf4   : > { %v1208_v23 = vpop.f32.mrf.mxu2  ;;  %v730_v26 = vrot.slane %v4284_v33, 1 }
  0xf5   : > { %v1209_v61 = vadd.f32 %v1208_v23, %v1120_v40  ;;  %v2822_v40 = vld [vmem:[%s4204_s2 + $0x90] sm:$0xff] }
  0xf6   : > { %1480 = vmatmul.bf16.gmra.mxu3 %v3595_v54  ;;  %v2870_v23 = vld [vmem:[%s4204_s2 + $0x210] sm:$0xff]  ;;  %v731_v41 = vor.u32 %v730_v26, %v4285_v44  ;;  %1615 = vmatpush.bf16.msra.mxu1 %v2822_v40 }
  0xf7   : > { %2074 = vmatpush.bf16.msra.mxu0 %v2870_v23 }
  0xf8   : > { %v3873_v6 = vsel %vm3627_vm5, %v731_v41, 0 }
  0xf9   : > { %v1441_v43 = vpop.f32.mrf.mxu3  ;;  %v1124_v14 = vpop.f32.mrf.mxu1  ;;  %4287 = vst [vmem:[#allocation29_spill] sm:$0xff] %v3873_v6 }
  0xfa   : > { %v1442_v53 = vadd.f32 %v1441_v43, %v1209_v61  ;;  %v1535_v8 = vpop.f32.mrf.mxu0  ;;  %v1125_v54 = vadd.f32 %v1124_v14, %v3742_v7 }
  0xfc   : > { %v3867_v33 = vadd.f32 %v1530_v50, %v1442_v53  ;;  %v1210_v43 = vpop.f32.mrf.mxu2  ;;  %1163 = vmatmul.bf16.gmra.mxu1 %v3382_v12  ;;  %1574 = vmatmul.bf16.gmra.mxu0 %v3239_v4 }
  0xfd   : > { %v1211_v61 = vadd.f32 %v1210_v43, %v1122_v32  ;;  %v4288_v32 = vshll.u32 %v3486_v57, 16 }
  0xfe   : > { %4286 = vst [vmem:[#allocation28_spill] sm:$0xff] %v3867_v33 }
  0xff   : > { %v732_v40 = vrot.slane %v4288_v32, 1 }
 0x101   : > { %v1443_v52 = vpop.f32.mrf.mxu3  ;;  %1252 = vmatmul.bf16.gmra.mxu2 %v3873_v6  ;;  %v1126_v7 = vpop.f32.mrf.mxu1 }
 0x102   : > { %v1444_v22 = vadd.f32 %v1443_v52, %v1211_v61  ;;  %v1537_v26 = vpop.f32.mrf.mxu0  ;;  %v1127_v44 = vadd.f32 %v1126_v7, %v3757_v36  ;;  %v4289_v52 = vshrl.u32 %v3486_v57, 16 }
 0x104   : > { %v3877_v53 = vadd.f32 %v1532_v2, %v1444_v22  ;;  %v1213_v50 = vpop.f32.mrf.mxu2  ;;  %v733_v6 = vor.u32 %v732_v40, %v4289_v52 }
 0x105   : > { %v1214_v14 = vadd.f32 %v1213_v50, %v1125_v54 }
 0x106   : > { %1485 = vmatmul.bf16.gmra.mxu3 %v3293_v42  ;;  %v3891_v22 = vsel %vm3627_vm5, %v733_v6, 0  ;;  %v2861_v6 = vld [vmem:[%s4204_s2 + $0x1c8] sm:$0xff] }
 0x107   : > { %1986 = vmatpush.bf16.msra.mxu3 %v2861_v6 }
 0x109   : > { %v1446_v23 = vpop.f32.mrf.mxu3  ;;  %v1129_v43 = vpop.f32.mrf.mxu1 }
 0x10a   : > { %v1447_v41 = vadd.f32 %v1446_v23, %v1214_v14  ;;  %v1540_v33 = vpop.f32.mrf.mxu0  ;;  %v1130_v61 = vadd.f32 %v1129_v43, %v3768_v34  ;;  %v4291_v23 = vshll.u32 %v3587_v48, 16 }
 0x10c   : > { %v3885_v4 = vadd.f32 %v1535_v8, %v1447_v41  ;;  %v1215_v2 = vpop.f32.mrf.mxu2  ;;  %1168 = vmatmul.bf16.gmra.mxu1 %v3486_v57  ;;  %1579 = vmatmul.bf16.gmra.mxu0 %v3382_v12  ;;  %v734_v41 = vrot.slane %v4291_v23, 1 }
 0x10d   : > { %v1216_v54 = vadd.f32 %v1215_v2, %v1127_v44  ;;  %v2853_v44 = vld [vmem:[%s4204_s2 + $0x188] sm:$0xff] }
 0x10e   : > { %1897 = vmatpush.bf16.msra.mxu2 %v2853_v44  ;;  %v2869_v2 = vld [vmem:[%s4204_s2 + $0x208] sm:$0xff] }
 0x10f   : > { %2075 = vmatpush.bf16.msra.mxu0 %v2869_v2 }
 0x111   : > { %v1448_v36 = vpop.f32.mrf.mxu3  ;;  %1257 = vmatmul.bf16.gmra.mxu2 %v3891_v22  ;;  %v1131_v34 = vpop.f32.mrf.mxu1 }
 0x112   : > { %v1449_v7 = vadd.f32 %v1448_v36, %v1216_v54  ;;  %v1542_v50 = vpop.f32.mrf.mxu0  ;;  %v1132_v14 = vadd.f32 %v1131_v34, %v3783_v24  ;;  %v4292_v36 = vshrl.u32 %v3587_v48, 16 }
 0x114   : > { %v3895_v8 = vadd.f32 %v1537_v26, %v1449_v7  ;;  %v1218_v32 = vpop.f32.mrf.mxu2  ;;  %v735_v7 = vor.u32 %v734_v41, %v4292_v36 }
 0x115   : > { %v1219_v40 = vadd.f32 %v1218_v32, %v1130_v61  ;;  %v2821_v61 = vld [vmem:[%s4204_s2 + $0x88] sm:$0xff] }
 0x116   : > { %4290 = vst [vmem:[#allocation30_spill] sm:$0xff] %v3895_v8  ;;  %1490 = vmatmul.bf16.gmra.mxu3 %v3436_v19  ;;  %1616 = vmatpush.bf16.msra.mxu1 %v2821_v61  ;;  %v3921_v44 = vsel %vm3627_vm5, %v735_v7, 0 }
 0x119   : > { %v1451_v24 = vpop.f32.mrf.mxu3  ;;  %v1134_v43 = vpop.f32.mrf.mxu1 }
 0x11a   : > { %v1452_v26 = vadd.f32 %v1451_v24, %v1219_v40  ;;  %v1545_v52 = vpop.f32.mrf.mxu0  ;;  %v1135_v54 = vadd.f32 %v1134_v43, %v3800_v29 }
 0x11c   : > { %v3915_v34 = vadd.f32 %v1540_v33, %v1452_v26  ;;  %v1220_v32 = vpop.f32.mrf.mxu2  ;;  %1173 = vmatmul.bf16.gmra.mxu1 %v3587_v48  ;;  %1584 = vmatmul.bf16.gmra.mxu0 %v3486_v57 }
 0x11d   : > { %v1221_v40 = vadd.f32 %v1220_v32, %v1132_v14  ;;  %v4294_v14 = vshll.u32 %v3254_v18, 16 }
 0x11e   : > { %4293 = vst [vmem:[#allocation31_spill] sm:$0xff] %v3915_v34 }
 0x11f   : > { %v736_v61 = vrot.slane %v4294_v14, 1 }
 0x121   : > { %v1453_v6 = vpop.f32.mrf.mxu3  ;;  %1262 = vmatmul.bf16.gmra.mxu2 %v3921_v44  ;;  %v1136_v29 = vpop.f32.mrf.mxu1 }
 0x122   : > { %v1454_v23 = vadd.f32 %v1453_v6, %v1221_v40  ;;  %v1547_v41 = vpop.f32.mrf.mxu0  ;;  %v1137_v24 = vadd.f32 %v1136_v29, %v3823_v60  ;;  %v4295_v40 = vshrl.u32 %v3254_v18, 16 }
 0x124   : > { %v3925_v33 = vadd.f32 %v1542_v50, %v1454_v23  ;;  %v1223_v26 = vpop.f32.mrf.mxu2  ;;  %v737_v6 = vor.u32 %v736_v61, %v4295_v40 }
 0x125   : > { %v1224_v43 = vadd.f32 %v1223_v26, %v1135_v54 }
 0x126   : > { %1495 = vmatmul.bf16.gmra.mxu3 %v3540_v56  ;;  %v3938_v50 = vsel %vm3627_vm5, %v737_v6, 0  ;;  %v2820_v6 = vld [vmem:[%s4204_s2 + $0x80] sm:$0xff] }
 0x127   : > { %1617 = vmatpush.bf16.msra.mxu1 %v2820_v6 }
 0x129   : > { %v1456_v2 = vpop.f32.mrf.mxu3  ;;  %v1139_v7 = vpop.f32.mrf.mxu1 }
 0x12a   : > { %v1457_v36 = vadd.f32 %v1456_v2, %v1224_v43  ;;  %v1550_v32 = vpop.f32.mrf.mxu0  ;;  %v1140_v43 = vadd.f32 %v1139_v7, %v3704_v46  ;;  %v4297_v2 = vshll.u32 %v3389_v30, 16 }
 0x12c   : > { %v3932_v34 = vadd.f32 %v1545_v52, %v1457_v36  ;;  %v1225_v8 = vpop.f32.mrf.mxu2  ;;  %1178 = vmatmul.bf16.gmra.mxu1 %v3254_v18  ;;  %1589 = vmatmul.bf16.gmra.mxu0 %v3587_v48  ;;  %v738_v36 = vrot.slane %v4297_v2, 1 }
 0x12d   : > { %v1226_v60 = vadd.f32 %v1225_v8, %v1137_v24  ;;  %v2852_v8 = vld [vmem:[%s4204_s2 + $0x180] sm:$0xff] }
 0x12e   : > { %v2860_v24 = vld [vmem:[%s4204_s2 + $0x1c0] sm:$0xff]  ;;  %1898 = vmatpush.bf16.msra.mxu2 %v2852_v8 }
 0x12f   : > { %1987 = vmatpush.bf16.msra.mxu3 %v2860_v24 }
 0x131   : > { %v1458_v54 = vpop.f32.mrf.mxu3  ;;  %1267 = vmatmul.bf16.gmra.mxu2 %v3938_v50  ;;  %v1141_v29 = vpop.f32.mrf.mxu1 }
 0x132   : > { %v1459_v23 = vadd.f32 %v1458_v54, %v1226_v60  ;;  %v1552_v26 = vpop.f32.mrf.mxu0  ;;  %v2868_v60 = vld [vmem:[%s4204_s2 + $0x200] sm:$0xff]  ;;  %v4298_v54 = vshrl.u32 %v3389_v30, 16 }
 0x133   : > { %2076 = vmatpush.bf16.msra.mxu0 %v2868_v60  ;;  %v4301_v60 = vshll.u32 %v3508_v45, 16 }
 0x134   : > { %v3942_v52 = vadd.f32 %v1547_v41, %v1459_v23  ;;  %v1228_v14 = vpop.f32.mrf.mxu2  ;;  %v739_v23 = vor.u32 %v738_v36, %v4298_v54 }
 0x135   : > { %v1229_v61 = vadd.f32 %v1228_v14, %v1140_v43  ;;  %v1142_v43 = vadd.f32 %v1141_v29, %v3721_v25  ;;  %v740_v54 = vrot.slane %v4301_v60, 1 }
 0x136   : > { %4296 = vst [vmem:[#allocation32_spill] sm:$0xff] %v3942_v52  ;;  %1500 = vmatmul.bf16.gmra.mxu3 %v3615_v9  ;;  %v3968_v24 = vsel %vm3627_vm5, %v739_v23, 0 }
 0x137   : > { %4300 = vst [vmem:[#allocation34_spill] sm:$0xff] %v3968_v24 }
 0x139   : > { %v1461_v46 = vpop.f32.mrf.mxu3  ;;  %v1144_v7 = vpop.f32.mrf.mxu1 }
 0x13a   : > { %v1462_v41 = vadd.f32 %v1461_v46, %v1229_v61  ;;  %v1555_v40 = vpop.f32.mrf.mxu0  ;;  %v1145_v29 = vadd.f32 %v1144_v7, %v3744_v38 }
 0x13c   : > { %v3962_v14 = vadd.f32 %v1550_v32, %v1462_v41  ;;  %v1230_v61 = vpop.f32.mrf.mxu2  ;;  %1183 = vmatmul.bf16.gmra.mxu1 %v3389_v30  ;;  %1594 = vmatmul.bf16.gmra.mxu0 %v3254_v18 }
 0x13d   : > { %v1231_v8 = vadd.f32 %v1230_v61, %v1142_v43 }
 0x13e   : > { %4299 = vst [vmem:[#allocation33_spill] sm:$0xff] %v3962_v14 }
 0x141   : > { %v1463_v2 = vpop.f32.mrf.mxu3  ;;  %1272 = vmatmul.bf16.gmra.mxu2 %v3968_v24  ;;  %v1146_v36 = vpop.f32.mrf.mxu1 }
 0x142   : > { %v1464_v46 = vadd.f32 %v1463_v2, %v1231_v8  ;;  %v1557_v25 = vpop.f32.mrf.mxu0  ;;  %v4302_v8 = vshrl.u32 %v3508_v45, 16  ;;  %v1147_v52 = vadd.f32 %v1146_v36, %v3759_v63 }
 0x144   : > { %v3972_v32 = vadd.f32 %v1552_v26, %v1464_v46  ;;  %v1233_v41 = vpop.f32.mrf.mxu2  ;;  %v741_v2 = vor.u32 %v740_v54, %v4302_v8 }
 0x145   : > { %v1234_v6 = vadd.f32 %v1233_v41, %v1145_v29 }
 0x146   : > { %1505 = vmatmul.bf16.gmra.mxu3 %v3310_v55  ;;  %v3986_v7 = vsel %vm3627_vm5, %v741_v2, 0 }
 0x149   : > { %v1466_v43 = vpop.f32.mrf.mxu3  ;;  %v1149_v61 = vpop.f32.mrf.mxu1 }
 0x14a   : > { %v1467_v23 = vadd.f32 %v1466_v43, %v1234_v6  ;;  %v1560_v14 = vpop.f32.mrf.mxu0  ;;  %v1150_v63 = vadd.f32 %v1149_v61, %v3770_v17 }
 0x14c   : > { %v3980_v24 = vadd.f32 %v1555_v40, %v1467_v23  ;;  %v1235_v38 = vpop.f32.mrf.mxu2  ;;  %1188 = vmatmul.bf16.gmra.mxu1 %v3508_v45  ;;  %1599 = vmatmul.bf16.gmra.mxu0 %v3389_v30 }
 0x14d   : > { %v1236_v26 = vadd.f32 %v1235_v38, %v1147_v52  ;;  %v4304_v52 = vshll.u32 %v3603_v37, 16  ;;  %v4305_v38 = vshrl.u32 %v3603_v37, 16 }
 0x14e   : > { %4303 = vst [vmem:[#allocation35_spill] sm:$0xff] %v3980_v24 }
 0x14f   : > { %v742_v54 = vrot.slane %v4304_v52, 1 }
 0x151   : > { %v1468_v46 = vpop.f32.mrf.mxu3  ;;  %1277 = vmatmul.bf16.gmra.mxu2 %v3986_v7  ;;  %v1151_v41 = vpop.f32.mrf.mxu1 }
 0x152   : > { %v1469_v29 = vadd.f32 %v1468_v46, %v1236_v26  ;;  %v1562_v6 = vpop.f32.mrf.mxu0  ;;  %v743_v26 = vor.u32 %v742_v54, %v4305_v38  ;;  %v1152_v46 = vadd.f32 %v1151_v41, %v3785_v16  ;;  %v4306_v54 = vmov 0  }
 0x154   : > { %v3990_v40 = vadd.f32 %v1557_v25, %v1469_v29  ;;  %v1238_v36 = vpop.f32.mrf.mxu2  ;;  %v4004_v61 = vsel %vm3627_vm5, %v743_v26, 0 }
 0x155   : > { %v1239_v60 = vadd.f32 %v1238_v36, %v1150_v63 }
 0x156   : > { %1510 = vmatmul.bf16.gmra.mxu3 %v3450_v35 }
 0x159   : > { %v1471_v43 = vpop.f32.mrf.mxu3  ;;  %v1154_v8 = vpop.f32.mrf.mxu1 }
 0x15a   : > { %v1472_v23 = vadd.f32 %v1471_v43, %v1239_v60  ;;  %v1565_v2 = vpop.f32.mrf.mxu0  ;;  %v1155_v16 = vadd.f32 %v1154_v8, %v3802_v27  ;;  %v710_v43 = vrot.slane %v4306_v54, 1 }
 0x15c   : > { %v3998_v24 = vadd.f32 %v1560_v14, %v1472_v23  ;;  %v1240_v17 = vpop.f32.mrf.mxu2  ;;  %1193 = vmatmul.bf16.gmra.mxu1 %v3603_v37  ;;  %1604 = vmatmul.bf16.gmra.mxu0 %v3508_v45 }
 0x15d   : > { %v1241_v25 = vadd.f32 %v1240_v17, %v1152_v46  ;;  %v4014_v17 = vsel %vm3627_vm5, %v710_v43, 0 }
 0x161   : > { %v1473_v29 = vpop.f32.mrf.mxu3  ;;  %1282 = vmatmul.bf16.gmra.mxu2 %v4004_v61  ;;  %v1156_v36 = vpop.f32.mrf.mxu1 }
 0x162   : > { %v1474_v63 = vadd.f32 %v1473_v29, %v1241_v25  ;;  %v1567_v60 = vpop.f32.mrf.mxu0  ;;  %v1157_v25 = vadd.f32 %v1156_v36, %v3825_v58 }
 0x164   : > { %v4008_v14 = vadd.f32 %v1562_v6, %v1474_v63  ;;  %v1243_v41 = vpop.f32.mrf.mxu2 }
 0x165   : > { %v1244_v52 = vadd.f32 %v1243_v41, %v1155_v16 }
 0x166   : > { %1515 = vmatmul.bf16.gmra.mxu3 %v3555_v28 }
 0x169   : > { %v1476_v23 = vpop.f32.mrf.mxu3  ;;  %v1159_v26 = vpop.f32.mrf.mxu1 }
 0x16a   : > { %v1477_v38 = vadd.f32 %v1476_v23, %v1244_v52  ;;  %v1570_v46 = vpop.f32.mrf.mxu0  ;;  %v1160_v1 = vadd.f32 %v1159_v26, %v3714_v20 }
 0x16c   : > { %v4017_v29 = vadd.f32 %v1565_v2, %v1477_v38  ;;  %v1245_v27 = vpop.f32.mrf.mxu2  ;;  %1618 = vmatmul.bf16.vlgmr.msra.gmra.mxu1 %v4014_v17  ;;  %2077 = vmatmul.bf16.vlgmr.msra.gmra.mxu0 %v3666_v5 }
 0x16d   : > { %v1246_v6 = vadd.f32 %v1245_v27, %v1157_v25 }
 0x171   : > { %v1478_v8 = vpop.f32.mrf.mxu3  ;;  %1899 = vmatmul.bf16.vlgmr.msra.gmra.mxu2 %v3360_v47  ;;  %v1161_v16 = vpop.f32.mrf.mxu1 }
 0x172   : > { %v1479_v63 = vadd.f32 %v1478_v8, %v1246_v6  ;;  %v1572_v41 = vpop.f32.mrf.mxu0  ;;  %v1162_v25 = vadd.f32 %v1161_v16, %v3738_v31 }
 0x174   : > { %v4023_v52 = vadd.f32 %v1567_v60, %v1479_v63  ;;  %v1248_v43 = vpop.f32.mrf.mxu2 }
 0x175   : > { %v1249_v58 = vadd.f32 %v1248_v43, %v1160_v1 }
 0x176   : > { %1988 = vmatmul.bf16.vlgmr.msra.gmra.mxu3 %v3306_v51 }
 0x179   : > { %v1481_v2 = vpop.f32.mrf.mxu3  ;;  %v1164_v23 = vpop.f32.mrf.mxu1 }
 0x17a   : > { %v1482_v36 = vadd.f32 %v1481_v2, %v1249_v58  ;;  %v1575_v38 = vpop.f32.mrf.mxu0  ;;  %v1165_v8 = vadd.f32 %v1164_v23, %v3754_v13 }
 0x17c   : > { %v4027_v27 = vadd.f32 %v1570_v46, %v1482_v36  ;;  %v1250_v6 = vpop.f32.mrf.mxu2  ;;  %1623 = vmatmul.bf16.gmra.mxu1 %v3637_v3  ;;  %2082 = vmatmul.bf16.gmra.mxu0 %v3676_v62 }
 0x17d   : > { %v1251_v47 = vadd.f32 %v1250_v6, %v1162_v25 }
 0x181   : > { %v1483_v20 = vpop.f32.mrf.mxu3  ;;  %1904 = vmatmul.bf16.gmra.mxu2 %v3469_v21  ;;  %v1166_v51 = vpop.f32.mrf.mxu1 }
 0x182   : > { %v1484_v60 = vadd.f32 %v1483_v20, %v1251_v47  ;;  %v1577_v26 = vpop.f32.mrf.mxu0  ;;  %v1167_v58 = vadd.f32 %v1166_v51, %v3766_v10 }
 0x184   : > { %v4033_v63 = vadd.f32 %v1572_v41, %v1484_v60  ;;  %v1253_v1 = vpop.f32.mrf.mxu2 }
 0x185   : > { %v1254_v31 = vadd.f32 %v1253_v1, %v1165_v8 }
 0x186   : > { %1993 = vmatmul.bf16.gmra.mxu3 %v3426_v0 }
 0x189   : > { %v1486_v46 = vpop.f32.mrf.mxu3  ;;  %v1169_v3 = vpop.f32.mrf.mxu1 }
 0x18a   : > { %v1487_v16 = vadd.f32 %v1486_v46, %v1254_v31  ;;  %v1580_v43 = vpop.f32.mrf.mxu0  ;;  %v1170_v25 = vadd.f32 %v1169_v3, %v3787_v49  ;;  %v4308_v46 = vld [vmem:[#allocation4_spill] sm:$0xff]  ;;  %v4309_v3 = vld [vmem:[#allocation23_spill] sm:$0xff] }
 0x18c   : > { %v4037_v2 = vadd.f32 %v1575_v38, %v1487_v16  ;;  %v1255_v36 = vpop.f32.mrf.mxu2  ;;  %1628 = vmatmul.bf16.gmra.mxu1 %v3666_v5  ;;  %2087 = vmatmul.bf16.gmra.mxu0 %v3696_v11 }
 0x18d   : > { %v1256_v21 = vadd.f32 %v1255_v36, %v1167_v58 }
 0x191   : > { %v1488_v13 = vpop.f32.mrf.mxu3  ;;  %1909 = vmatmul.bf16.gmra.mxu2 %v3591_v59  ;;  %v1171_v0 = vpop.f32.mrf.mxu1  ;;  %v4307_v59 = vld [vmem:[#allocation13_spill] sm:$0xff] }
 0x192   : > { %v1489_v41 = vadd.f32 %v1488_v13, %v1256_v21  ;;  %v1582_v23 = vpop.f32.mrf.mxu0  ;;  %v1172_v51 = vadd.f32 %v1171_v0, %v3810_v15  ;;  %v4310_v15 = vld [vmem:[#allocation2_spill] sm:$0xff] }
 0x194   : > { %v4043_v6 = vadd.f32 %v1577_v26, %v1489_v41  ;;  %v1258_v47 = vpop.f32.mrf.mxu2 }
 0x195   : > { %v1259_v10 = vadd.f32 %v1258_v47, %v1170_v25  ;;  %v4311_v25 = vld [vmem:[#allocation25_spill] sm:$0xff] }
 0x196   : > { %1998 = vmatmul.bf16.gmra.mxu3 %v3530_v39 }
 0x199   : > { %v1491_v38 = vpop.f32.mrf.mxu3  ;;  %v1174_v5 = vpop.f32.mrf.mxu1 }
 0x19a   : > { %v1492_v20 = vadd.f32 %v1491_v38, %v1259_v10  ;;  %v1585_v60 = vpop.f32.mrf.mxu0  ;;  %v1175_v58 = vadd.f32 %v1174_v5, %v4309_v3 }
 0x19c   : > { %v4047_v8 = vadd.f32 %v1580_v43, %v1492_v20  ;;  %v1260_v1 = vpop.f32.mrf.mxu2  ;;  %1633 = vmatmul.bf16.gmra.mxu1 %v3676_v62  ;;  %2092 = vmatmul.bf16.gmra.mxu0 %v4307_v59  ;;  %v4312_v20 = vld [vmem:[#allocation16_spill] sm:$0xff] }
 0x19d   : > { %v1261_v49 = vadd.f32 %v1260_v1, %v1172_v51  ;;  %v4313_v1 = vld [vmem:[#allocation6_spill] sm:$0xff] }
 0x1a1   : > { %v1493_v26 = vpop.f32.mrf.mxu3  ;;  %1914 = vmatmul.bf16.gmra.mxu2 %v4308_v46  ;;  %v1176_v39 = vpop.f32.mrf.mxu1 }
 0x1a2   : > { %v1494_v31 = vadd.f32 %v1493_v26, %v1261_v49  ;;  %v1587_v16 = vpop.f32.mrf.mxu0  ;;  %v1177_v47 = vadd.f32 %v1176_v39, %v4311_v25  ;;  %v4315_v39 = vld [vmem:[#allocation5_spill] sm:$0xff] }
 0x1a4   : > { %v4053_v36 = vadd.f32 %v1582_v23, %v1494_v31  ;;  %v1263_v21 = vpop.f32.mrf.mxu2  ;;  %v4314_v31 = vld [vmem:[#allocation14_spill] sm:$0xff] }
 0x1a5   : > { %v1264_v43 = vadd.f32 %v1263_v21, %v1175_v58 }
 0x1a6   : > { %2003 = vmatmul.bf16.gmra.mxu3 %v4310_v15 }
 0x1a9   : > { %v1496_v13 = vpop.f32.mrf.mxu3  ;;  %v1179_v62 = vpop.f32.mrf.mxu1 }
 0x1aa   : > { %v1497_v41 = vadd.f32 %v1496_v13, %v1264_v43  ;;  %v1590_v0 = vpop.f32.mrf.mxu0  ;;  %v1180_v46 = vadd.f32 %v1179_v62, %v4314_v31  ;;  %v4316_v13 = vld [vmem:[#allocation15_spill] sm:$0xff]  ;;  %v4319_v31 = vld [vmem:[#allocation17_spill] sm:$0xff] }
 0x1ac   : > { %v4057_v10 = vadd.f32 %v1585_v60, %v1497_v41  ;;  %v1265_v38 = vpop.f32.mrf.mxu2  ;;  %1638 = vmatmul.bf16.gmra.mxu1 %v3696_v11  ;;  %2097 = vmatmul.bf16.gmra.mxu0 %v4312_v20 }
 0x1ad   : > { %v1266_v5 = vadd.f32 %v1265_v38, %v1177_v47  ;;  %v4317_v38 = vld [vmem:[#allocation19_spill] sm:$0xff] }
 0x1b1   : > { %v1498_v23 = vpop.f32.mrf.mxu3  ;;  %1919 = vmatmul.bf16.gmra.mxu2 %v4313_v1  ;;  %v1181_v49 = vpop.f32.mrf.mxu1 }
 0x1b2   : > { %v1499_v51 = vadd.f32 %v1498_v23, %v1266_v5  ;;  %v1592_v26 = vpop.f32.mrf.mxu0  ;;  %v1182_v41 = vadd.f32 %v1181_v49, %v4316_v13  ;;  %v4318_v23 = vld [vmem:[#allocation8_spill] sm:$0xff]  ;;  %v4321_v49 = vld [vmem:[#allocation7_spill] sm:$0xff]  ;;  %v4322_v13 = vld [vmem:[#allocation18_spill] sm:$0xff] }
 0x1b4   : > { %v4063_v3 = vadd.f32 %v1587_v16, %v1499_v51  ;;  %v1268_v58 = vpop.f32.mrf.mxu2 }
 0x1b5   : > { %v1269_v60 = vadd.f32 %v1268_v58, %v1180_v46 }
 0x1b6   : > { %2008 = vmatmul.bf16.gmra.mxu3 %v4315_v39 }
 0x1b9   : > { %v1501_v21 = vpop.f32.mrf.mxu3  ;;  %v1184_v11 = vpop.f32.mrf.mxu1 }
 0x1ba   : > { %v1502_v15 = vadd.f32 %v1501_v21, %v1269_v60  ;;  %v1595_v43 = vpop.f32.mrf.mxu0  ;;  %v1185_v46 = vadd.f32 %v1184_v11, %v4319_v31 }
 0x1bc   : > { %v4067_v25 = vadd.f32 %v1590_v0, %v1502_v15  ;;  %v1270_v47 = vpop.f32.mrf.mxu2  ;;  %1643 = vmatmul.bf16.gmra.mxu1 %v4307_v59  ;;  %2102 = vmatmul.bf16.gmra.mxu0 %v4317_v38 }
 0x1bd   : > { %v1271_v62 = vadd.f32 %v1270_v47, %v1182_v41 }
 0x1c1   : > { %v1503_v16 = vpop.f32.mrf.mxu3  ;;  %1924 = vmatmul.bf16.gmra.mxu2 %v4318_v23  ;;  %v1186_v51 = vpop.f32.mrf.mxu1  ;;  %v4325_v23 = vld [vmem:[#allocation10_spill] sm:$0xff] }
 0x1c2   : > { %v1504_v5 = vadd.f32 %v1503_v16, %v1271_v62  ;;  %v1597_v1 = vpop.f32.mrf.mxu0  ;;  %v1187_v41 = vadd.f32 %v1186_v51, %v4322_v13  ;;  %v4324_v16 = vld [vmem:[#allocation22_spill] sm:$0xff]  ;;  %v4327_v51 = vld [vmem:[#allocation9_spill] sm:$0xff] }
 0x1c4   : > { %v4073_v58 = vadd.f32 %v1592_v26, %v1504_v5  ;;  %v1273_v39 = vpop.f32.mrf.mxu2 }
 0x1c5   : > { %v1274_v0 = vadd.f32 %v1273_v39, %v1185_v46  ;;  %v4326_v39 = vld [vmem:[#allocation20_spill] sm:$0xff] }
 0x1c6   : > { %4320 = vst [vmem:[#allocation13_spill] sm:$0xff] %v4073_v58  ;;  %2013 = vmatmul.bf16.gmra.mxu3 %v4321_v49  ;;  %v4328_v58 = vld [vmem:[#allocation21_spill] sm:$0xff] }
 0x1c9   : > { %v1506_v60 = vpop.f32.mrf.mxu3  ;;  %v1189_v59 = vpop.f32.mrf.mxu1 }
 0x1ca   : > { %v1507_v21 = vadd.f32 %v1506_v60, %v1274_v0  ;;  %v1600_v15 = vpop.f32.mrf.mxu0  ;;  %v1190_v49 = vadd.f32 %v1189_v59, %v4326_v39 }
 0x1cc   : > { %v4077_v47 = vadd.f32 %v1595_v43, %v1507_v21  ;;  %v1275_v62 = vpop.f32.mrf.mxu2  ;;  %1648 = vmatmul.bf16.gmra.mxu1 %v4312_v20  ;;  %2107 = vmatmul.bf16.gmra.mxu0 %v4324_v16 }
 0x1cd   : > { %v1276_v11 = vadd.f32 %v1275_v62, %v1187_v41 }
 0x1ce   : > { %4323 = vst [vmem:[#allocation4_spill] sm:$0xff] %v4077_v47 }
 0x1d1   : > { %v1508_v26 = vpop.f32.mrf.mxu3  ;;  %1929 = vmatmul.bf16.gmra.mxu2 %v4325_v23  ;;  %v1191_v31 = vpop.f32.mrf.mxu1 }
 0x1d2   : > { %v1509_v5 = vadd.f32 %v1508_v26, %v1276_v11  ;;  %v1602_v46 = vpop.f32.mrf.mxu0  ;;  %v1192_v41 = vadd.f32 %v1191_v31, %v4328_v58  ;;  %v4330_v26 = vld [vmem:[#allocation26_spill] sm:$0xff]  ;;  %v4332_v58 = vld [vmem:[#allocation3_spill] sm:$0xff] }
 0x1d4   : > { %v4083_v0 = vadd.f32 %v1597_v1, %v1509_v5  ;;  %v1278_v60 = vpop.f32.mrf.mxu2 }
 0x1d5   : > { %v1279_v43 = vadd.f32 %v1278_v60, %v1190_v49  ;;  %v4331_v49 = vld [vmem:[#allocation24_spill] sm:$0xff] }
 0x1d6   : > { %2018 = vmatmul.bf16.gmra.mxu3 %v4327_v51 }
 0x1d9   : > { %v1511_v21 = vpop.f32.mrf.mxu3  ;;  %v1194_v20 = vpop.f32.mrf.mxu1 }
 0x1da   : > { %v1512_v13 = vadd.f32 %v1511_v21, %v1279_v43  ;;  %v1605_v47 = vpop.f32.mrf.mxu0  ;;  %v1195_v60 = vadd.f32 %v1194_v20, %v4331_v49 }
 0x1dc   : > { %v4087_v62 = vadd.f32 %v1600_v15, %v1512_v13  ;;  %v1280_v11 = vpop.f32.mrf.mxu2  ;;  %1653 = vmatmul.bf16.gmra.mxu1 %v4317_v38  ;;  %2112 = vmatmul.bf16.gmra.mxu0 %v4330_v26 }
 0x1dd   : > { %v1281_v59 = vadd.f32 %v1280_v11, %v1192_v41 }
 0x1de   : > { %4329 = vst [vmem:[#allocation23_spill] sm:$0xff] %v4087_v62  ;;  %v4333_v62 = vld [vmem:[#allocation27_spill] sm:$0xff] }
 0x1e1   : > { %v1513_v1 = vpop.f32.mrf.mxu3  ;;  %1934 = vmatmul.bf16.gmra.mxu2 %v3293_v42  ;;  %v1196_v23 = vpop.f32.mrf.mxu1  ;;  %v4334_v42 = vld [vmem:[#allocation29_spill] sm:$0xff] }
 0x1e2   : > { %v1514_v5 = vadd.f32 %v1513_v1, %v1281_v59  ;;  %v1607_v39 = vpop.f32.mrf.mxu0  ;;  %v1197_v41 = vadd.f32 %v1196_v23, %v4333_v62 }
 0x1e4   : > { %v4093_v51 = vadd.f32 %v1602_v46, %v1514_v5  ;;  %v1283_v43 = vpop.f32.mrf.mxu2 }
 0x1e5   : > { %v1284_v15 = vadd.f32 %v1283_v43, %v1195_v60 }
 0x1e6   : > { %2023 = vmatmul.bf16.gmra.mxu3 %v4332_v58 }
 0x1e9   : > { %v1516_v31 = vpop.f32.mrf.mxu3  ;;  %v1619_v38 = vpop.f32.mrf.mxu1 }
 0x1ea   : > { %v1517_v21 = vadd.f32 %v1516_v31, %v1284_v15  ;;  %v2078_v13 = vpop.f32.mrf.mxu0 }
 0x1ec   : > { %v4097_v11 = vadd.f32 %v1605_v47, %v1517_v21  ;;  %v1285_v59 = vpop.f32.mrf.mxu2  ;;  %1658 = vmatmul.bf16.gmra.mxu1 %v4324_v16  ;;  %2117 = vmatmul.bf16.gmra.mxu0 %v4334_v42 }
 0x1ed   : > { %v1286_v20 = vadd.f32 %v1285_v59, %v1197_v41 }
 0x1f1   : > { %v1518_v46 = vpop.f32.mrf.mxu3  ;;  %1939 = vmatmul.bf16.gmra.mxu2 %v3436_v19  ;;  %v1621_v5 = vpop.f32.mrf.mxu1  ;;  %v4335_v19 = vld [vmem:[#allocation28_spill] sm:$0xff] }
 0x1f2   : > { %v1519_v1 = vadd.f32 %v1518_v46, %v1286_v20  ;;  %v2080_v49 = vpop.f32.mrf.mxu0  ;;  %v1620_v21 = vadd.f32 %v1619_v38, %v4335_v19  ;;  %v1622_v20 = vadd.f32 %v1621_v5, %v3877_v53 }
 0x1f4   : > { %v4102_v60 = vadd.f32 %v1607_v39, %v1519_v1  ;;  %v1900_v43 = vpop.f32.mrf.mxu2 }
 0x1f6   : > { %2028 = vmatmul.bf16.gmra.mxu3 %v3382_v12 }
 0x1f9   : > { %v1989_v62 = vpop.f32.mrf.mxu3  ;;  %v1624_v47 = vpop.f32.mrf.mxu1 }
 0x1fa   : > { %v2083_v23 = vpop.f32.mrf.mxu0  ;;  %v1990_v58 = vadd.f32 %v1989_v62, %v1900_v43 }
 0x1fc   : > { %v1902_v15 = vpop.f32.mrf.mxu2  ;;  %1663 = vmatmul.bf16.gmra.mxu1 %v4330_v26  ;;  %2122 = vmatmul.bf16.gmra.mxu0 %v3891_v22  ;;  %v2079_v16 = vadd.f32 %v2078_v13, %v1990_v58 }
 0x1fe   : > { %v2158_v12 = vadd.f32 %v2079_v16, %v1620_v21 }
 0x200   : > { %v2291_v26 = vmul.f32 %v2158_v12, %v2158_v12 }
 0x201   : > { %v1991_v31 = vpop.f32.mrf.mxu3  ;;  %1944 = vmatmul.bf16.gmra.mxu2 %v3540_v56  ;;  %v1626_v39 = vpop.f32.mrf.mxu1 }
 0x202   : > { %v1992_v41 = vadd.f32 %v1991_v31, %v1902_v15  ;;  %v2085_v59 = vpop.f32.mrf.mxu0  ;;  %v1625_v15 = vadd.f32 %v1624_v47, %v3885_v4 }
 0x204   : > { %v2081_v46 = vadd.f32 %v2080_v49, %v1992_v41  ;;  %v1905_v1 = vpop.f32.mrf.mxu2 }
 0x206   : > { %v2159_v43 = vadd.f32 %v2081_v46, %v1622_v20  ;;  %2033 = vmatmul.bf16.gmra.mxu3 %v3486_v57 }
 0x208   : > { %v2943_v38 = vpack.c.bf16 %v2159_v43, %v2158_v12  ;;  %v2254_v56 = vadd.f32 %v2159_v43, %v2158_v12  ;;  %v2292_v13 = vmul.f32 %v2159_v43, %v2159_v43  ;;  %v4336_v43 = vld [vmem:[#allocation30_spill] sm:$0xff] }
 0x209   : > { %v1994_v62 = vpop.f32.mrf.mxu3  ;;  %v1629_v5 = vpop.f32.mrf.mxu1 }
 0x20a   : > { %2944 = vst [vmem:[%s4116_s29] sm:$0xff] %v2943_v38   ;;  %v2323_v58 = vadd.f32 %v2292_v13, %v2291_v26  ;;  %v1995_v53 = vadd.f32 %v1994_v62, %v1905_v1  ;;  %v2088_v49 = vpop.f32.mrf.mxu0  ;;  %v1627_v26 = vadd.f32 %v1626_v39, %v4336_v43 }
 0x20c   : > { %v2084_v57 = vadd.f32 %v2083_v23, %v1995_v53  ;;  %v1907_v16 = vpop.f32.mrf.mxu2  ;;  %1668 = vmatmul.bf16.gmra.mxu1 %v4334_v42  ;;  %2127 = vmatmul.bf16.gmra.mxu0 %v3921_v44 }
 0x20e   : > { %v2160_v31 = vadd.f32 %v2084_v57, %v1625_v15  ;;  %v4337_v57 = vld [vmem:[#allocation31_spill] sm:$0xff] }
 0x210   : > { %v2255_v19 = vadd.f32 %v2254_v56, %v2160_v31  ;;  %v2293_v21 = vmul.f32 %v2160_v31, %v2160_v31 }
 0x211   : > { %v1996_v41 = vpop.f32.mrf.mxu3  ;;  %1949 = vmatmul.bf16.gmra.mxu2 %v3615_v9  ;;  %v1631_v46 = vpop.f32.mrf.mxu1  ;;  %v1630_v9 = vadd.f32 %v1629_v5, %v4337_v57 }
 0x212   : > { %v2324_v12 = vadd.f32 %v2323_v58, %v2293_v21  ;;  %v1997_v20 = vadd.f32 %v1996_v41, %v1907_v16  ;;  %v2090_v1 = vpop.f32.mrf.mxu0  ;;  %v1632_v43 = vadd.f32 %v1631_v46, %v3925_v33  ;;  %v4338_v33 = vld [vmem:[#allocation34_spill] sm:$0xff] }
 0x214   : > { %v2086_v4 = vadd.f32 %v2085_v59, %v1997_v20  ;;  %v1910_v47 = vpop.f32.mrf.mxu2 }
 0x216   : > { %v2161_v23 = vadd.f32 %v2086_v4, %v1627_v26  ;;  %2038 = vmatmul.bf16.gmra.mxu3 %v3587_v48 }
 0x218   : > { %v2948_v42 = vpack.c.bf16 %v2161_v23, %v2160_v31  ;;  %v2256_v38 = vadd.f32 %v2255_v19, %v2161_v23  ;;  %v2294_v13 = vmul.f32 %v2161_v23, %v2161_v23 }
 0x219   : > { %v1999_v56 = vpop.f32.mrf.mxu3  ;;  %v1634_v58 = vpop.f32.mrf.mxu1 }
 0x21a   : > { %3035 = vst [vmem:[%s4116_s29 + $0x8] sm:$0xff] %v2948_v42   ;;  %v2325_v62 = vadd.f32 %v2324_v12, %v2294_v13  ;;  %v2000_v53 = vadd.f32 %v1999_v56, %v1910_v47  ;;  %v2093_v15 = vpop.f32.mrf.mxu0 }
 0x21c   : > { %v2089_v16 = vadd.f32 %v2088_v49, %v2000_v53  ;;  %v1912_v21 = vpop.f32.mrf.mxu2  ;;  %1673 = vmatmul.bf16.gmra.mxu1 %v3891_v22  ;;  %2132 = vmatmul.bf16.gmra.mxu0 %v3938_v50 }
 0x21e   : > { %v2162_v39 = vadd.f32 %v2089_v16, %v1630_v9 }
 0x220   : > { %v2257_v59 = vadd.f32 %v2256_v38, %v2162_v39  ;;  %v2295_v48 = vmul.f32 %v2162_v39, %v2162_v39 }
 0x221   : > { %v2001_v31 = vpop.f32.mrf.mxu3  ;;  %1954 = vmatmul.bf16.gmra.mxu2 %v3310_v55  ;;  %v1636_v12 = vpop.f32.mrf.mxu1  ;;  %v1635_v55 = vadd.f32 %v1634_v58, %v3932_v34 }
 0x222   : > { %v2326_v19 = vadd.f32 %v2325_v62, %v2295_v48  ;;  %v2002_v41 = vadd.f32 %v2001_v31, %v1912_v21  ;;  %v2095_v20 = vpop.f32.mrf.mxu0 }
 0x224   : > { %v2091_v5 = vadd.f32 %v2090_v1, %v2002_v41  ;;  %v1915_v49 = vpop.f32.mrf.mxu2 }
 0x226   : > { %v2163_v26 = vadd.f32 %v2091_v5, %v1632_v43  ;;  %2043 = vmatmul.bf16.gmra.mxu3 %v3254_v18 }
 0x228   : > { %v2953_v22 = vpack.c.bf16 %v2163_v26, %v2162_v39  ;;  %v2258_v4 = vadd.f32 %v2257_v59, %v2163_v26  ;;  %v2296_v47 = vmul.f32 %v2163_v26, %v2163_v26  ;;  %v4339_v59 = vld [vmem:[#allocation32_spill] sm:$0xff] }
 0x229   : > { %v2004_v23 = vpop.f32.mrf.mxu3  ;;  %v1639_v13 = vpop.f32.mrf.mxu1  ;;  %v1637_v48 = vadd.f32 %v1636_v12, %v4339_v59 }
 0x22a   : > { %3036 = vst [vmem:[%s4116_s29 + $0x10] sm:$0xff] %v2953_v22   ;;  %v2327_v42 = vadd.f32 %v2326_v19, %v2296_v47  ;;  %v2005_v38 = vadd.f32 %v2004_v23, %v1915_v49  ;;  %v2098_v56 = vpop.f32.mrf.mxu0  ;;  %v4340_v22 = vld [vmem:[#allocation33_spill] sm:$0xff] }
 0x22c   : > { %v2094_v62 = vadd.f32 %v2093_v15, %v2005_v38  ;;  %v1917_v53 = vpop.f32.mrf.mxu2  ;;  %1678 = vmatmul.bf16.gmra.mxu1 %v3921_v44  ;;  %2137 = vmatmul.bf16.gmra.mxu0 %v4338_v33 }
 0x22e   : > { %v2164_v46 = vadd.f32 %v2094_v62, %v1635_v55 }
 0x230   : > { %v2259_v1 = vadd.f32 %v2258_v4, %v2164_v46  ;;  %v2297_v18 = vmul.f32 %v2164_v46, %v2164_v46 }
 0x231   : > { %v2006_v57 = vpop.f32.mrf.mxu3  ;;  %1959 = vmatmul.bf16.gmra.mxu2 %v3450_v35  ;;  %v1641_v21 = vpop.f32.mrf.mxu1  ;;  %v1640_v35 = vadd.f32 %v1639_v13, %v4340_v22 }
 0x232   : > { %v2328_v9 = vadd.f32 %v2327_v42, %v2297_v18  ;;  %v2007_v16 = vadd.f32 %v2006_v57, %v1917_v53  ;;  %v2100_v39 = vpop.f32.mrf.mxu0  ;;  %v1642_v53 = vadd.f32 %v1641_v21, %v3972_v32 }
 0x234   : > { %v2096_v34 = vadd.f32 %v2095_v20, %v2007_v16  ;;  %v1920_v58 = vpop.f32.mrf.mxu2 }
 0x236   : > { %v2165_v15 = vadd.f32 %v2096_v34, %v1637_v48  ;;  %2048 = vmatmul.bf16.gmra.mxu3 %v3389_v30  ;;  %v4341_v34 = vld [vmem:[#allocation35_spill] sm:$0xff] }
 0x238   : > { %v2958_v44 = vpack.c.bf16 %v2165_v15, %v2164_v46  ;;  %v2260_v31 = vadd.f32 %v2259_v1, %v2165_v15  ;;  %v2298_v19 = vmul.f32 %v2165_v15, %v2165_v15 }
 0x239   : > { %v2009_v41 = vpop.f32.mrf.mxu3  ;;  %v1644_v49 = vpop.f32.mrf.mxu1 }
 0x23a   : > { %3037 = vst [vmem:[%s4116_s29 + $0x18] sm:$0xff] %v2958_v44   ;;  %v2329_v43 = vadd.f32 %v2328_v9, %v2298_v19  ;;  %v2010_v5 = vadd.f32 %v2009_v41, %v1920_v58  ;;  %v2103_v26 = vpop.f32.mrf.mxu0  ;;  %v4342_v19 = vld [vmem:[#allocation11_spill] sm:$0xff] }
 0x23c   : > { %v2099_v4 = vadd.f32 %v2098_v56, %v2010_v5  ;;  %v1922_v47 = vpop.f32.mrf.mxu2  ;;  %1683 = vmatmul.bf16.gmra.mxu1 %v3938_v50  ;;  %2142 = vmatmul.bf16.gmra.mxu0 %v3986_v7 }
 0x23e   : > { %v2166_v12 = vadd.f32 %v2099_v4, %v1640_v35 }
 0x240   : > { %v2261_v20 = vadd.f32 %v2260_v31, %v2166_v12  ;;  %v2299_v30 = vmul.f32 %v2166_v12, %v2166_v12 }
 0x241   : > { %v2011_v23 = vpop.f32.mrf.mxu3  ;;  %1964 = vmatmul.bf16.gmra.mxu2 %v3555_v28  ;;  %v1646_v55 = vpop.f32.mrf.mxu1  ;;  %v1645_v28 = vadd.f32 %v1644_v49, %v4341_v34 }
 0x242   : > { %v2330_v42 = vadd.f32 %v2329_v43, %v2299_v30  ;;  %v2012_v38 = vadd.f32 %v2011_v23, %v1922_v47  ;;  %v2105_v62 = vpop.f32.mrf.mxu0  ;;  %v1647_v5 = vadd.f32 %v1646_v55, %v3990_v40 }
 0x244   : > { %v2101_v13 = vadd.f32 %v2100_v39, %v2012_v38  ;;  %v1925_v56 = vpop.f32.mrf.mxu2 }
 0x246   : > { %v2167_v46 = vadd.f32 %v2101_v13, %v1642_v53  ;;  %2053 = vmatmul.bf16.gmra.mxu3 %v3508_v45 }
 0x248   : > { %v2963_v50 = vpack.c.bf16 %v2167_v46, %v2166_v12  ;;  %v2262_v1 = vadd.f32 %v2261_v20, %v2167_v46  ;;  %v2300_v18 = vmul.f32 %v2167_v46, %v2167_v46 }
 0x249   : > { %v2014_v57 = vpop.f32.mrf.mxu3  ;;  %v1649_v59 = vpop.f32.mrf.mxu1 }
 0x24a   : > { %3038 = vst [vmem:[%s4116_s29 + $0x20] sm:$0xff] %v2963_v50   ;;  %v2331_v9 = vadd.f32 %v2330_v42, %v2300_v18  ;;  %v2015_v16 = vadd.f32 %v2014_v57, %v1925_v56  ;;  %v2108_v48 = vpop.f32.mrf.mxu0  ;;  %v1650_v23 = vadd.f32 %v1649_v59, %v3998_v24  ;;  %v4343_v56 = vld [vmem:[#allocation12_spill] sm:$0xff] }
 0x24c   : > { %v2104_v58 = vadd.f32 %v2103_v26, %v2015_v16  ;;  %v1927_v15 = vpop.f32.mrf.mxu2  ;;  %1688 = vmatmul.bf16.gmra.mxu1 %v4338_v33  ;;  %2147 = vmatmul.bf16.gmra.mxu0 %v4004_v61 }
 0x24e   : > { %v2168_v32 = vadd.f32 %v2104_v58, %v1645_v28 }
 0x250   : > { %v2263_v21 = vadd.f32 %v2262_v1, %v2168_v32  ;;  %v2301_v45 = vmul.f32 %v2168_v32, %v2168_v32 }
 0x251   : > { %v2016_v39 = vpop.f32.mrf.mxu3  ;;  %1969 = vmatmul.bf16.gmra.mxu2 %v4342_v19  ;;  %v1651_v41 = vpop.f32.mrf.mxu1 }
 0x252   : > { %v2332_v44 = vadd.f32 %v2331_v9, %v2301_v45  ;;  %v2017_v31 = vadd.f32 %v2016_v39, %v1927_v15  ;;  %v2110_v43 = vpop.f32.mrf.mxu0  ;;  %v1652_v1 = vadd.f32 %v1651_v41, %v4008_v14 }
 0x254   : > { %v2106_v49 = vadd.f32 %v2105_v62, %v2017_v31  ;;  %v1930_v26 = vpop.f32.mrf.mxu2 }
 0x256   : > { %v2169_v22 = vadd.f32 %v2106_v49, %v1647_v5  ;;  %2058 = vmatmul.bf16.gmra.mxu3 %v3603_v37 }
 0x258   : > { %v2968_v33 = vpack.c.bf16 %v2169_v22, %v2168_v32  ;;  %v2264_v61 = vadd.f32 %v2263_v21, %v2169_v22  ;;  %v2302_v35 = vmul.f32 %v2169_v22, %v2169_v22 }
 0x259   : > { %v2019_v4 = vpop.f32.mrf.mxu3  ;;  %v1654_v20 = vpop.f32.mrf.mxu1 }
 0x25a   : > { %3039 = vst [vmem:[%s4116_s29 + $0x28] sm:$0xff] %v2968_v33   ;;  %v2333_v47 = vadd.f32 %v2332_v44, %v2302_v35  ;;  %v2020_v12 = vadd.f32 %v2019_v4, %v1930_v26  ;;  %v2113_v30 = vpop.f32.mrf.mxu0  ;;  %v1655_v58 = vadd.f32 %v1654_v20, %v4017_v29 }
 0x25c   : > { %v2109_v42 = vadd.f32 %v2108_v48, %v2020_v12  ;;  %v1932_v38 = vpop.f32.mrf.mxu2  ;;  %1693 = vmatmul.bf16.gmra.mxu1 %v3986_v7  ;;  %2152 = vmatmul.bf16.gmra.mxu0 %v4014_v17 }
 0x25e   : > { %v2170_v40 = vadd.f32 %v2109_v42, %v1650_v23 }
 0x260   : > { %v2265_v55 = vadd.f32 %v2264_v61, %v2170_v40  ;;  %v2303_v37 = vmul.f32 %v2170_v40, %v2170_v40 }
 0x261   : > { %v2021_v62 = vpop.f32.mrf.mxu3  ;;  %1974 = vmatmul.bf16.gmra.mxu2 %v4343_v56  ;;  %v1656_v46 = vpop.f32.mrf.mxu1 }
 0x262   : > { %v2334_v53 = vadd.f32 %v2333_v47, %v2303_v37  ;;  %v2022_v13 = vadd.f32 %v2021_v62, %v1932_v38  ;;  %v2115_v50 = vpop.f32.mrf.mxu0  ;;  %v1657_v41 = vadd.f32 %v1656_v46, %v4023_v52 }
 0x264   : > { %v2111_v24 = vadd.f32 %v2110_v43, %v2022_v13  ;;  %v1935_v18 = vpop.f32.mrf.mxu2 }
 0x266   : > { %v2171_v57 = vadd.f32 %v2111_v24, %v1652_v1  ;;  %2063 = vmatmul.bf16.gmra.mxu3 %v4306_v54 }
 0x268   : > { %v2973_v7 = vpack.c.bf16 %v2171_v57, %v2170_v40  ;;  %v2266_v17 = vadd.f32 %v2265_v55, %v2171_v57  ;;  %v2304_v9 = vmul.f32 %v2171_v57, %v2171_v57 }
 0x269   : > { %v2024_v16 = vpop.f32.mrf.mxu3  ;;  %v1659_v34 = vpop.f32.mrf.mxu1 }
 0x26a   : > { %3040 = vst [vmem:[%s4116_s29 + $0x30] sm:$0xff] %v2973_v7   ;;  %v2335_v59 = vadd.f32 %v2334_v53, %v2304_v9  ;;  %v2025_v48 = vadd.f32 %v2024_v16, %v1935_v18  ;;  %v2118_v28 = vpop.f32.mrf.mxu0  ;;  %v1660_v12 = vadd.f32 %v1659_v34, %v4027_v27 }
 0x26c   : > { %v2114_v15 = vadd.f32 %v2113_v30, %v2025_v48  ;;  %v1937_v32 = vpop.f32.mrf.mxu2 }
 0x26e   : > { %v2172_v21 = vadd.f32 %v2114_v15, %v1655_v58 }
 0x270   : > { %v2267_v14 = vadd.f32 %v2266_v17, %v2172_v21  ;;  %v2305_v45 = vmul.f32 %v2172_v21, %v2172_v21 }
 0x271   : > { %v2026_v39 = vpop.f32.mrf.mxu3  ;;  %v1661_v31 = vpop.f32.mrf.mxu1 }
 0x272   : > { %v2336_v44 = vadd.f32 %v2335_v59, %v2305_v45  ;;  %v2027_v54 = vadd.f32 %v2026_v39, %v1937_v32  ;;  %v2120_v19 = vpop.f32.mrf.mxu0  ;;  %v1662_v53 = vadd.f32 %v1661_v31, %v4033_v63 }
 0x274   : > { %v2116_v43 = vadd.f32 %v2115_v50, %v2027_v54  ;;  %v1940_v5 = vpop.f32.mrf.mxu2 }
 0x276   : > { %v2173_v49 = vadd.f32 %v2116_v43, %v1657_v41 }
 0x278   : > { %v2978_v26 = vpack.c.bf16 %v2173_v49, %v2172_v21  ;;  %v2268_v22 = vadd.f32 %v2267_v14, %v2173_v49  ;;  %v2306_v33 = vmul.f32 %v2173_v49, %v2173_v49 }
 0x279   : > { %v2029_v29 = vpop.f32.mrf.mxu3  ;;  %v1664_v4 = vpop.f32.mrf.mxu1 }
 0x27a   : > { %3041 = vst [vmem:[%s4116_s29 + $0x38] sm:$0xff] %v2978_v26   ;;  %v2337_v61 = vadd.f32 %v2336_v44, %v2306_v33  ;;  %v2030_v35 = vadd.f32 %v2029_v29, %v1940_v5  ;;  %v2123_v47 = vpop.f32.mrf.mxu0  ;;  %v1665_v9 = vadd.f32 %v1664_v4, %v4037_v2 }
 0x27c   : > { %v2119_v20 = vadd.f32 %v2118_v28, %v2030_v35  ;;  %v1942_v30 = vpop.f32.mrf.mxu2 }
 0x27e   : > { %v2174_v23 = vadd.f32 %v2119_v20, %v1660_v12 }
 0x280   : > { %v2269_v42 = vadd.f32 %v2268_v22, %v2174_v23  ;;  %v2307_v52 = vmul.f32 %v2174_v23, %v2174_v23 }
 0x281   : > { %v2031_v38 = vpop.f32.mrf.mxu3  ;;  %v1666_v37 = vpop.f32.mrf.mxu1 }
 0x282   : > { %v2338_v40 = vadd.f32 %v2337_v61, %v2307_v52  ;;  %v2032_v55 = vadd.f32 %v2031_v38, %v1942_v30  ;;  %v2125_v62 = vpop.f32.mrf.mxu0  ;;  %v1667_v14 = vadd.f32 %v1666_v37, %v4043_v6 }
 0x284   : > { %v2121_v13 = vadd.f32 %v2120_v19, %v2032_v55  ;;  %v1945_v56 = vpop.f32.mrf.mxu2 }
 0x286   : > { %v2175_v46 = vadd.f32 %v2121_v13, %v1662_v53 }
 0x288   : > { %v2983_v50 = vpack.c.bf16 %v2175_v46, %v2174_v23  ;;  %v2270_v1 = vadd.f32 %v2269_v42, %v2175_v46  ;;  %v2308_v24 = vmul.f32 %v2175_v46, %v2175_v46 }
 0x289   : > { %v2034_v27 = vpop.f32.mrf.mxu3  ;;  %v1669_v7 = vpop.f32.mrf.mxu1 }
 0x28a   : > { %3042 = vst [vmem:[%s4116_s29 + $0x40] sm:$0xff] %v2983_v50   ;;  %v2339_v18 = vadd.f32 %v2338_v40, %v2308_v24  ;;  %v2035_v57 = vadd.f32 %v2034_v27, %v1945_v56  ;;  %v2128_v17 = vpop.f32.mrf.mxu0  ;;  %v1670_v26 = vadd.f32 %v1669_v7, %v4047_v8 }
 0x28c   : > { %v2124_v16 = vadd.f32 %v2123_v47, %v2035_v57  ;;  %v1947_v59 = vpop.f32.mrf.mxu2 }
 0x28e   : > { %v2176_v48 = vadd.f32 %v2124_v16, %v1665_v9 }
 0x290   : > { %v2271_v34 = vadd.f32 %v2270_v1, %v2176_v48  ;;  %v2309_v63 = vmul.f32 %v2176_v48, %v2176_v48 }
 0x291   : > { %v2036_v28 = vpop.f32.mrf.mxu3  ;;  %v1671_v32 = vpop.f32.mrf.mxu1 }
 0x292   : > { %v2340_v58 = vadd.f32 %v2339_v18, %v2309_v63  ;;  %v2037_v15 = vadd.f32 %v2036_v28, %v1947_v59  ;;  %v2130_v21 = vpop.f32.mrf.mxu0  ;;  %v1672_v30 = vadd.f32 %v1671_v32, %v4053_v36 }
 0x294   : > { %v2126_v45 = vadd.f32 %v2125_v62, %v2037_v15  ;;  %v1950_v39 = vpop.f32.mrf.mxu2 }
 0x296   : > { %v2177_v44 = vadd.f32 %v2126_v45, %v1667_v14 }
 0x298   : > { %v2988_v54 = vpack.c.bf16 %v2177_v44, %v2176_v48  ;;  %v2272_v31 = vadd.f32 %v2271_v34, %v2177_v44  ;;  %v2310_v19 = vmul.f32 %v2177_v44, %v2177_v44 }
 0x299   : > { %v2039_v2 = vpop.f32.mrf.mxu3  ;;  %v1674_v5 = vpop.f32.mrf.mxu1 }
 0x29a   : > { %3043 = vst [vmem:[%s4116_s29 + $0x48] sm:$0xff] %v2988_v54   ;;  %v2341_v41 = vadd.f32 %v2340_v58, %v2310_v19  ;;  %v2040_v43 = vadd.f32 %v2039_v2, %v1950_v39  ;;  %v2133_v49 = vpop.f32.mrf.mxu0  ;;  %v1675_v13 = vadd.f32 %v1674_v5, %v4057_v10 }
 0x29c   : > { %v2129_v22 = vadd.f32 %v2128_v17, %v2040_v43  ;;  %v1952_v33 = vpop.f32.mrf.mxu2 }
 0x29e   : > { %v2178_v29 = vadd.f32 %v2129_v22, %v1670_v26 }
 0x2a0   : > { %v2273_v61 = vadd.f32 %v2272_v31, %v2178_v29  ;;  %v2311_v6 = vmul.f32 %v2178_v29, %v2178_v29 }
 0x2a1   : > { %v2041_v35 = vpop.f32.mrf.mxu3  ;;  %v1676_v12 = vpop.f32.mrf.mxu1 }
 0x2a2   : > { %v2342_v4 = vadd.f32 %v2341_v41, %v2311_v6  ;;  %v2042_v47 = vadd.f32 %v2041_v35, %v1952_v33  ;;  %v2135_v20 = vpop.f32.mrf.mxu0  ;;  %v1677_v7 = vadd.f32 %v1676_v12, %v4063_v3  ;;  %v4344_v41 = vld [vmem:[#allocation13_spill] sm:$0xff] }
 0x2a4   : > { %v2131_v23 = vadd.f32 %v2130_v21, %v2042_v47  ;;  %v1955_v42 = vpop.f32.mrf.mxu2  ;;  %v4345_v47 = vld [vmem:[#allocation4_spill] sm:$0xff] }
 0x2a6   : > { %v2179_v52 = vadd.f32 %v2131_v23, %v1672_v30 }
 0x2a8   : > { %v2993_v38 = vpack.c.bf16 %v2179_v52, %v2178_v29  ;;  %v2274_v40 = vadd.f32 %v2273_v61, %v2179_v52  ;;  %v2312_v55 = vmul.f32 %v2179_v52, %v2179_v52 }
 0x2a9   : > { %v2044_v8 = vpop.f32.mrf.mxu3  ;;  %v1679_v53 = vpop.f32.mrf.mxu1 }
 0x2aa   : > { %3044 = vst [vmem:[%s4116_s29 + $0x50] sm:$0xff] %v2993_v38   ;;  %v2343_v37 = vadd.f32 %v2342_v4, %v2312_v55  ;;  %v2045_v62 = vadd.f32 %v2044_v8, %v1955_v42  ;;  %v2138_v50 = vpop.f32.mrf.mxu0  ;;  %v1680_v32 = vadd.f32 %v1679_v53, %v4067_v25 }
 0x2ac   : > { %v2134_v56 = vadd.f32 %v2133_v49, %v2045_v62  ;;  %v1957_v46 = vpop.f32.mrf.mxu2 }
 0x2ae   : > { %v2180_v1 = vadd.f32 %v2134_v56, %v1675_v13 }
 0x2b0   : > { %v2275_v24 = vadd.f32 %v2274_v40, %v2180_v1  ;;  %v2313_v36 = vmul.f32 %v2180_v1, %v2180_v1 }
 0x2b1   : > { %v2046_v27 = vpop.f32.mrf.mxu3  ;;  %v1681_v16 = vpop.f32.mrf.mxu1 }
 0x2b2   : > { %v2344_v18 = vadd.f32 %v2343_v37, %v2313_v36  ;;  %v2047_v57 = vadd.f32 %v2046_v27, %v1957_v46  ;;  %v2140_v48 = vpop.f32.mrf.mxu0  ;;  %v1682_v43 = vadd.f32 %v1681_v16, %v4344_v41 }
 0x2b4   : > { %v2136_v17 = vadd.f32 %v2135_v20, %v2047_v57  ;;  %v1960_v9 = vpop.f32.mrf.mxu2 }
 0x2b6   : > { %v2181_v59 = vadd.f32 %v2136_v17, %v1677_v7 }
 0x2b8   : > { %v2998_v34 = vpack.c.bf16 %v2181_v59, %v2180_v1  ;;  %v2276_v63 = vadd.f32 %v2275_v24, %v2181_v59  ;;  %v2314_v10 = vmul.f32 %v2181_v59, %v2181_v59 }
 0x2b9   : > { %v2049_v28 = vpop.f32.mrf.mxu3  ;;  %v1684_v39 = vpop.f32.mrf.mxu1 }
 0x2ba   : > { %3045 = vst [vmem:[%s4116_s29 + $0x58] sm:$0xff] %v2998_v34   ;;  %v2345_v58 = vadd.f32 %v2344_v18, %v2314_v10  ;;  %v2050_v15 = vadd.f32 %v2049_v28, %v1960_v9  ;;  %v2143_v31 = vpop.f32.mrf.mxu0  ;;  %v1685_v12 = vadd.f32 %v1684_v39, %v4345_v47  ;;  %v4346_v18 = vld [vmem:[#allocation23_spill] sm:$0xff] }
 0x2bc   : > { %v2139_v21 = vadd.f32 %v2138_v50, %v2050_v15  ;;  %v1962_v14 = vpop.f32.mrf.mxu2 }
 0x2be   : > { %v2182_v45 = vadd.f32 %v2139_v21, %v1680_v32 }
 0x2c0   : > { %v2277_v3 = vadd.f32 %v2276_v63, %v2182_v45  ;;  %v2315_v44 = vmul.f32 %v2182_v45, %v2182_v45 }
 0x2c1   : > { %v2051_v54 = vpop.f32.mrf.mxu3  ;;  %v1686_v61 = vpop.f32.mrf.mxu1 }
 0x2c2   : > { %v2346_v19 = vadd.f32 %v2345_v58, %v2315_v44  ;;  %v2052_v2 = vadd.f32 %v2051_v54, %v1962_v14  ;;  %v2145_v4 = vpop.f32.mrf.mxu0  ;;  %v1687_v37 = vadd.f32 %v1686_v61, %v4083_v0 }
 0x2c4   : > { %v2141_v5 = vadd.f32 %v2140_v48, %v2052_v2  ;;  %v1965_v49 = vpop.f32.mrf.mxu2 }
 0x2c6   : > { %v2183_v26 = vadd.f32 %v2141_v5, %v1682_v43 }
 0x2c8   : > { %v3003_v22 = vpack.c.bf16 %v2183_v26, %v2182_v45  ;;  %v2278_v33 = vadd.f32 %v2277_v3, %v2183_v26  ;;  %v2316_v29 = vmul.f32 %v2183_v26, %v2183_v26 }
 0x2c9   : > { %v2054_v25 = vpop.f32.mrf.mxu3  ;;  %v1689_v8 = vpop.f32.mrf.mxu1 }
 0x2ca   : > { %3046 = vst [vmem:[%s4116_s29 + $0x60] sm:$0xff] %v3003_v22   ;;  %v2347_v6 = vadd.f32 %v2346_v19, %v2316_v29  ;;  %v2055_v35 = vadd.f32 %v2054_v25, %v1965_v49  ;;  %v2148_v53 = vpop.f32.mrf.mxu0  ;;  %v1690_v57 = vadd.f32 %v1689_v8, %v4346_v18 }
 0x2cc   : > { %v2144_v20 = vadd.f32 %v2143_v31, %v2055_v35  ;;  %v1967_v30 = vpop.f32.mrf.mxu2 }
 0x2ce   : > { %v2184_v23 = vadd.f32 %v2144_v20, %v1685_v12 }
 0x2d0   : > { %v2279_v42 = vadd.f32 %v2278_v33, %v2184_v23  ;;  %v2317_v52 = vmul.f32 %v2184_v23, %v2184_v23 }
 0x2d1   : > { %v2056_v38 = vpop.f32.mrf.mxu3  ;;  %v1691_v17 = vpop.f32.mrf.mxu1 }
 0x2d2   : > { %v2348_v40 = vadd.f32 %v2347_v6, %v2317_v52  ;;  %v2057_v55 = vadd.f32 %v2056_v38, %v1967_v30  ;;  %v2150_v59 = vpop.f32.mrf.mxu0  ;;  %v1692_v28 = vadd.f32 %v1691_v17, %v4093_v51 }
 0x2d4   : > { %v2146_v62 = vadd.f32 %v2145_v4, %v2057_v55  ;;  %v1970_v13 = vpop.f32.mrf.mxu2 }
 0x2d6   : > { %v2185_v56 = vadd.f32 %v2146_v62, %v1687_v37 }
 0x2d8   : > { %v3008_v46 = vpack.c.bf16 %v2185_v56, %v2184_v23  ;;  %v2280_v50 = vadd.f32 %v2279_v42, %v2185_v56  ;;  %v2318_v1 = vmul.f32 %v2185_v56, %v2185_v56 }
 0x2d9   : > { %v2059_v24 = vpop.f32.mrf.mxu3  ;;  %v1694_v21 = vpop.f32.mrf.mxu1 }
 0x2da   : > { %3047 = vst [vmem:[%s4116_s29 + $0x68] sm:$0xff] %v3008_v46   ;;  %v2349_v36 = vadd.f32 %v2348_v40, %v2318_v1  ;;  %v2060_v27 = vadd.f32 %v2059_v24, %v1970_v13  ;;  %v2153_v3 = vpop.f32.mrf.mxu0  ;;  %v1695_v19 = vadd.f32 %v1694_v21, %v4097_v11 }
 0x2dc   : > { %v2149_v7 = vadd.f32 %v2148_v53, %v2060_v27  ;;  %v1972_v9 = vpop.f32.mrf.mxu2 }
 0x2de   : > { %v2186_v16 = vadd.f32 %v2149_v7, %v1690_v57 }
 0x2e0   : > { %v2281_v0 = vadd.f32 %v2280_v50, %v2186_v16  ;;  %v2319_v48 = vmul.f32 %v2186_v16, %v2186_v16 }
 0x2e1   : > { %v2061_v34 = vpop.f32.mrf.mxu3  ;;  %v1696_v49 = vpop.f32.mrf.mxu1 }
 0x2e2   : > { %v2350_v63 = vadd.f32 %v2349_v36, %v2319_v48  ;;  %v2062_v10 = vadd.f32 %v2061_v34, %v1972_v9  ;;  %v2155_v29 = vpop.f32.mrf.mxu0  ;;  %v1697_v25 = vadd.f32 %v1696_v49, %v4102_v60 }
 0x2e4   : > { %v2151_v58 = vadd.f32 %v2150_v59, %v2062_v10  ;;  %v1975_v15 = vpop.f32.mrf.mxu2 }
 0x2e6   : > { %v2187_v32 = vadd.f32 %v2151_v58, %v1692_v28 }
 0x2e8   : > { %v3013_v14 = vpack.c.bf16 %v2187_v32, %v2186_v16  ;;  %v2282_v45 = vadd.f32 %v2281_v0, %v2187_v32  ;;  %v2320_v39 = vmul.f32 %v2187_v32, %v2187_v32 }
 0x2e9   : > { %v2064_v44 = vpop.f32.mrf.mxu3 }
 0x2ea   : > { %3048 = vst [vmem:[%s4116_s29 + $0x70] sm:$0xff] %v3013_v14   ;;  %v2351_v54 = vadd.f32 %v2350_v63, %v2320_v39  ;;  %v2065_v31 = vadd.f32 %v2064_v44, %v1975_v15 }
 0x2ec   : > { %v2154_v2 = vadd.f32 %v2153_v3, %v2065_v31  ;;  %v1977_v43 = vpop.f32.mrf.mxu2 }
 0x2ee   : > { %v2188_v41 = vadd.f32 %v2154_v2, %v1695_v19 }
 0x2f0   : > { %v2283_v5 = vadd.f32 %v2282_v45, %v2188_v41  ;;  %v2321_v51 = vmul.f32 %v2188_v41, %v2188_v41 }
 0x2f1   : > { %v2066_v26 = vpop.f32.mrf.mxu3 }
 0x2f2   : > { %v2352_v22 = vadd.f32 %v2351_v54, %v2321_v51  ;;  %v2067_v33 = vadd.f32 %v2066_v26, %v1977_v43 }
 0x2f4   : > { %v2156_v61 = vadd.f32 %v2155_v29, %v2067_v33 }
 0x2f6   : > { %v2189_v6 = vadd.f32 %v2156_v61, %v1697_v25 }
 0x2f8   : > { %v3018_v35 = vpack.c.bf16 %v2189_v6, %v2188_v41  ;;  %v2284_v4 = vadd.f32 %v2283_v5, %v2189_v6  ;;  %v2322_v47 = vmul.f32 %v2189_v6, %v2189_v6 }
 0x2fa   : > { %3049 = vst [vmem:[%s4116_s29 + $0x78] sm:$0xff] %v3018_v35   ;;  %v2285_v11 = vrot.slane %v2284_v4, 4  ;;  %v2353_v12 = vadd.f32 %v2352_v22, %v2322_v47 }
 0x2fc   : > { %v2286_v20 = vadd.f32 %v2285_v11, %v2284_v4  ;;  %v2354_v30 = vrot.slane %v2353_v12, 4 }
 0x2fe   : > { %v2287_v23 = vrot.slane %v2286_v20, 2  ;;  %v2355_v42 = vadd.f32 %v2354_v30, %v2353_v12 }
 0x300   : > { %v2288_v52 = vadd.f32 %v2287_v23, %v2286_v20  ;;  %v2356_v38 = vrot.slane %v2355_v42, 2 }
 0x302   : > { %v2289_v40 = vrot.slane %v2288_v52, 1  ;;  %v2357_v55 = vadd.f32 %v2356_v38, %v2355_v42 }
 0x304   : > { %v2358_v8 = vrot.slane %v2357_v55, 1  ;;  %v2290_v60 = vadd.f32 %v2289_v40, %v2288_v52 }
 0x306   : > { %v2359_v37 = vadd.f32 %v2358_v8, %v2357_v55 }
 0x308   : > { %v2361_v62 = vsel %vm690_vm0, %v2290_v60, %v2359_v37 }
 0x309   : > { %v2363_v53 = vsel %vm2362_vm6, %v2361_v62, 0.0 }
 0x30a   : > { %2364 = vst [vmem:[%s260_s6] sm:$0xff] %v2363_v53 }
 0x30b PF: > { %s15_s17 = sadd.s32 1, %s3123_s17   ;;  %s4347_s15 = smov %s3119_s16 }
 0x30c   : > { %p12_p5 = scmp.ge.s32.totalorder %s15_s17, 4   ;;  %s4348_s16 = smov %s4350_s18 }
 0x30e   :  { %14 = sbr.rel (!%p12_p5) target bundleno = 2 (0x2), region = 74 }

</bundles_post_ra>
